<compile_context>
chip_gen: v5e
topology: v5e:2x2
jax: 0.10.0
libtpu: 0.0.40
codegen_flags: <defaults>
</compile_context>

<pallas_src>
import functools

import jax
import jax.numpy as jnp
from jax import lax
from jax.experimental import pallas as pl
from jax.experimental.pallas import tpu as pltpu

BN_EPS = 1e-5


def rcl2d_kernel(x_ref, w0_ref, wc_ref, cr_ref, out_ref, pad_ref,
                 *, steps, H, W):
    R, Wc = x_ref.shape
    B = R // H                       # N * D independent depth slices
    inv_n = 1.0 / float(R * W)       # elements per channel = N*D*H*W

    # Zero the H-padded scratch once; only its interior rows are rewritten, so
    # the zero border rows implement the "same" padding along H.
    pad_ref[...] = jnp.zeros(pad_ref.shape, pad_ref.dtype)

    def conv(x2d, w):
        """3x3 'same' conv as one im2col matmul: (R, 3*Wc) x (3*Wc, n_out)."""
        x3 = x2d.reshape(B, H, Wc)
        pad_ref[:, 1:H + 1, :] = x3
        xc = jnp.concatenate(
            [pad_ref[:, 0:H, :], x3, pad_ref[:, 2:H + 2, :]], axis=-1)
        return jnp.dot(xc.reshape(R, 3 * Wc), w,
                       preferred_element_type=jnp.float32)

    def batchnorm(x):
        """Training-mode BN (biased var, gamma=1, beta=0), single-pass stats.

        Channels are interleaved along lanes (lane = w*C + c); cr_ref folds the
        W groups of each channel and broadcasts the per-channel totals back to
        every lane in one tiny MXU matmul.
        """
        s = jnp.sum(x, axis=0, keepdims=True)                  # (1, Wc)
        ss = jnp.sum(x * x, axis=0, keepdims=True)             # (1, Wc)
        mean = jnp.dot(s, cr_ref[...],
                       preferred_element_type=jnp.float32) * inv_n
        ex2 = jnp.dot(ss, cr_ref[...],
                      preferred_element_type=jnp.float32) * inv_n
        var = jnp.maximum(ex2 - mean * mean, 0.0)              # clamp >= 0
        return (x - mean) * lax.rsqrt(var + BN_EPS)
        # TODO(synk): running_mean/running_var (momentum) buffer updates are
        # not materialized; they do not affect the training-mode forward.

    # Step 0: one fused matmul produces conv(x0) and shortcut(x0) together.
    x = x_ref[...]
    y0 = conv(x, w0_ref[...])                                  # (R, 2*Wc)
    sc = y0[:, Wc:2 * Wc]                                      # shortcut(x0)
    x = batchnorm(jnp.maximum(y0[:, 0:Wc], 0.0))

    def step(_, xc):
        z = conv(xc, wc_ref[...]) + sc
        return batchnorm(jnp.maximum(z, 0.0))

    # fori_loop bounds live ranges if `steps` grows; unroll for LLO visibility.
    x = lax.fori_loop(1, steps, step, x, unroll=True)
    out_ref[...] = x.astype(out_ref.dtype)


def _banded_weights(w_hwio, W):
    """(3,3,Cin,Cout) conv weights -> (3*W*C, W*C) stacked banded matrices.

    Row block kh is a block-tridiagonal matrix whose (w_in, w_out) block equals
    w[kh, kw] iff w_in == w_out + kw - 1: this implements the kw taps and the
    zero padding along W entirely inside a single matmul operand.
    """
    C = w_hwio.shape[-1]
    bands = []
    for kh in range(3):
        m = jnp.zeros((W * C, W * C), jnp.float32)
        for kw in range(3):
            m = m + jnp.kron(jnp.eye(W, k=1 - kw, dtype=jnp.float32),
                             w_hwio[kh, kw].astype(jnp.float32))
        bands.append(m)
    return jnp.concatenate(bands, axis=0)                      # (3*Wc, Wc)


def rcl2d_forward(x_ncdhw, w_conv, w_short, steps=4):
    N, C, D, H, W = x_ncdhw.shape
    R, Wc = N * D * H, W * C
    # Lane-dense relayout: NCDHW -> (N, D, H, W, C) -> (R, W*C).
    x2d = jnp.transpose(x_ncdhw, (0, 2, 3, 4, 1)).reshape(R, Wc)
    x2d = x2d.astype(jnp.float32)

    band_conv = _banded_weights(w_conv, W)                     # (3*Wc, Wc)
    band_short = _banded_weights(w_short, W)                   # (3*Wc, Wc)
    w0 = jnp.concatenate([band_conv, band_short], axis=1)      # (3*Wc, 2*Wc)
    # cr[j, l] = 1 iff lanes j and l hold the same channel (j % C == l % C).
    lane = jnp.arange(Wc)
    chan_reduce = (lane[:, None] % C == lane[None, :] % C).astype(jnp.float32)

    kern = functools.partial(rcl2d_kernel, steps=steps, H=H, W=W)
    vmem = pl.BlockSpec(memory_space=pltpu.MemorySpace.VMEM)
    flops = (2 * R * 3 * Wc * 2 * Wc                   # fused step-0 conv+shortcut
             + (steps - 1) * 2 * R * 3 * Wc * Wc       # recurrent convs
             + steps * (4 * Wc * Wc + 8 * R * Wc))     # BN stats + normalize
    bytes_accessed = 4 * (2 * R * Wc + 10 * Wc * Wc)
    # TODO(synk): for large N*D*H the whole slab no longer fits one VMEM block
    # (earliest on v7x's 64 MiB); tile the row axis over a grid with a
    # two-phase BN reduction per step and mark it "parallel" for megacore.
    out = pl.pallas_call(
        kern,
        out_shape=jax.ShapeDtypeStruct((R, Wc), jnp.float32),
        in_specs=[vmem, vmem, vmem, vmem],
        out_specs=vmem,
        scratch_shapes=[pltpu.VMEM((N * D, H + 2, Wc), jnp.float32)],
        compiler_params=pltpu.CompilerParams(
            vmem_limit_bytes=32 * 1024 * 1024),
        cost_estimate=pl.CostEstimate(flops=int(flops),
                                      transcendentals=int(steps * Wc),
                                      bytes_accessed=int(bytes_accessed)),
    )(x2d, w0, band_conv, chan_reduce)

    return out.reshape(N, D, H, W, C).transpose(0, 4, 1, 2, 3)


def _reference_forward(x_ncdhw, w_conv, w_short, steps=4, eps=BN_EPS):
    """Pure-JAX reference matching the PyTorch forward (training-mode BN)."""
    N, C, D, H, W = x_ncdhw.shape
    x = jnp.transpose(x_ncdhw, (0, 2, 3, 4, 1)).reshape(N * D, H, W, C)

    def conv(z, w):
        return lax.conv_general_dilated(
            z, w, window_strides=(1, 1), padding=((1, 1), (1, 1)),
            dimension_numbers=("NHWC", "HWIO", "NHWC"))

    rx = x
    sc = conv(rx, w_short)
    for i in range(steps):
        z = conv(x, w_conv)
        if i > 0:
            z = z + sc
        x = jnp.maximum(z, 0.0)
        mean = jnp.mean(x, axis=(0, 1, 2), keepdims=True)
        var = jnp.mean((x - mean) ** 2, axis=(0, 1, 2), keepdims=True)
        x = (x - mean) / jnp.sqrt(var + eps)
    return x.reshape(N, D, H, W, C).transpose(0, 4, 1, 2, 3)


if __name__ == "__main__":
    N, C, D, H, W = 2, 8, 4, 16, 16   # W * C == 128 -> fully lane-dense
    steps = 4

    key = jax.random.PRNGKey(0)
    kx, kc, ks = jax.random.split(key, 3)
    x = jax.random.normal(kx, (N, C, D, H, W), jnp.float32)
    # Conv3d(channels, channels, (1,3,3), bias=False) weights stored as
    # (kh, kw, Cin, Cout), i.e. w[kh, kw, ci, co] == torch_w[co, ci, 0, kh, kw].
    w_conv = jax.random.normal(kc, (3, 3, C, C), jnp.float32) * 0.1
    w_short = jax.random.normal(ks, (3, 3, C, C), jnp.float32) * 0.1

    out = jax.block_until_ready(rcl2d_forward(x, w_conv, w_short, steps=steps))
    assert out.shape == (N, C, D, H, W)

    ref = _reference_forward(x, w_conv, w_short, steps=steps)
    max_err = float(jnp.max(jnp.abs(out - ref)))
    if not jnp.allclose(out, ref, atol=2e-3, rtol=2e-3):
        raise AssertionError(f"Pallas output mismatch vs reference, max_err={max_err}")

    print("KERNEL_OK")
</pallas_src>

<mosaic_0001>
module attributes {stable_mosaic.version = 11 : i64} {
  func.func @rcl2d_kernel(%arg0: memref<128x128xf32, #tpu.memory_space<vmem>>, %arg1: memref<384x256xf32, #tpu.memory_space<vmem>>, %arg2: memref<384x128xf32, #tpu.memory_space<vmem>>, %arg3: memref<128x128xf32, #tpu.memory_space<vmem>>, %arg4: memref<128x128xf32, #tpu.memory_space<vmem>>, %arg5: memref<8x18x128xf32, #tpu.memory_space<vmem>>) attributes {dimension_semantics = [], scalar_prefetch = 0 : i64, scratch_operands = 1 : i64, tpu.core_type = #tpu.core_type<tc>} {
    %cst = arith.constant 0.000000e+00 : f32
    %0 = vector.broadcast %cst : f32 to vector<8x18x128xf32>
    %c0 = arith.constant 0 : index
    %c0_0 = arith.constant 0 : index
    %c0_1 = arith.constant 0 : index
    %1 = vector.load %arg5[%c0, %c0_0, %c0_1] : memref<8x18x128xf32, #tpu.memory_space<vmem>>, vector<8x18x128xf32>
    tpu.vector_store %arg5[%c0, %c0_0, %c0_1], %0 {strides = array<i32>} : memref<8x18x128xf32, #tpu.memory_space<vmem>>, vector<8x18x128xf32>,
    %c0_2 = arith.constant 0 : index
    %c0_3 = arith.constant 0 : index
    %2 = vector.load %arg0[%c0_2, %c0_3] : memref<128x128xf32, #tpu.memory_space<vmem>>, vector<128x128xf32>
    %c0_4 = arith.constant 0 : index
    %c0_5 = arith.constant 0 : index
    %3 = vector.load %arg1[%c0_4, %c0_5] : memref<384x256xf32, #tpu.memory_space<vmem>>, vector<384x256xf32>
    %4 = vector.shape_cast %2 : vector<128x128xf32> to vector<8x16x128xf32>
    %c0_6 = arith.constant 0 : index
    %c1 = arith.constant 1 : index
    %c0_7 = arith.constant 0 : index
    %5 = vector.load %arg5[%c0_6, %c1, %c0_7] : memref<8x18x128xf32, #tpu.memory_space<vmem>>, vector<8x16x128xf32>
    tpu.vector_store %arg5[%c0_6, %c1, %c0_7], %4 {strides = array<i32>} : memref<8x18x128xf32, #tpu.memory_space<vmem>>, vector<8x16x128xf32>,
    %c0_8 = arith.constant 0 : index
    %c0_9 = arith.constant 0 : index
    %c0_10 = arith.constant 0 : index
    %6 = vector.load %arg5[%c0_8, %c0_9, %c0_10] : memref<8x18x128xf32, #tpu.memory_space<vmem>>, vector<8x16x128xf32>
    %c0_11 = arith.constant 0 : index
    %c2 = arith.constant 2 : index
    %c0_12 = arith.constant 0 : index
    %7 = vector.load %arg5[%c0_11, %c2, %c0_12] : memref<8x18x128xf32, #tpu.memory_space<vmem>>, vector<8x16x128xf32>
    %8 = tpu.concatenate %6, %4, %7 in 2 : vector<8x16x128xf32>, vector<8x16x128xf32>, vector<8x16x128xf32> -> vector<8x16x384xf32>
    %9 = vector.shape_cast %8 : vector<8x16x384xf32> to vector<128x384xf32>
    %cst_13 = arith.constant dense<0.000000e+00> : vector<128x256xf32>
    %10 = tpu.matmul %9, %3, %cst_13 {dimension_numbers = #tpu.dot_dimension_numbers<[1], [0], [0], [1], [0, 0, 1, 1], [], []>} : vector<128x384xf32>, vector<384x256xf32>, vector<128x256xf32> -> vector<128x256xf32>
    %11 = vector.extract_strided_slice %10 {offsets = [0, 128], sizes = [128, 128], strides = [1, 1]} : vector<128x256xf32> to vector<128x128xf32>
    %12 = vector.extract_strided_slice %10 {offsets = [0, 0], sizes = [128, 128], strides = [1, 1]} : vector<128x256xf32> to vector<128x128xf32>
    %cst_14 = arith.constant 0.000000e+00 : f32
    %13 = vector.broadcast %cst_14 : f32 to vector<128x128xf32>
    %14 = arith.maximumf %12, %13 : vector<128x128xf32>
    %cst_15 = arith.constant dense<0.000000e+00> : vector<128xf32>
    %15 = vector.multi_reduction <add>, %14, %cst_15 [0] : vector<128x128xf32> to vector<128xf32>
    %16 = vector.shape_cast %15 : vector<128xf32> to vector<1x128xf32>
    %17 = arith.mulf %14, %14 : vector<128x128xf32>
    %cst_16 = arith.constant dense<0.000000e+00> : vector<128xf32>
    %18 = vector.multi_reduction <add>, %17, %cst_16 [0] : vector<128x128xf32> to vector<128xf32>
    %19 = vector.shape_cast %18 : vector<128xf32> to vector<1x128xf32>
    %c0_17 = arith.constant 0 : index
    %c0_18 = arith.constant 0 : index
    %20 = vector.load %arg3[%c0_17, %c0_18] : memref<128x128xf32, #tpu.memory_space<vmem>>, vector<128x128xf32>
    %cst_19 = arith.constant dense<0.000000e+00> : vector<1x128xf32>
    %21 = tpu.matmul %16, %20, %cst_19 {dimension_numbers = #tpu.dot_dimension_numbers<[1], [0], [0], [1], [0, 0, 1, 1], [], []>} : vector<1x128xf32>, vector<128x128xf32>, vector<1x128xf32> -> vector<1x128xf32>
    %cst_20 = arith.constant 4.8828125E-4 : f32
    %22 = vector.broadcast %cst_20 : f32 to vector<1x128xf32>
    %23 = arith.mulf %21, %22 : vector<1x128xf32>
    %c0_21 = arith.constant 0 : index
    %c0_22 = arith.constant 0 : index
    %24 = vector.load %arg3[%c0_21, %c0_22] : memref<128x128xf32, #tpu.memory_space<vmem>>, vector<128x128xf32>
    %cst_23 = arith.constant dense<0.000000e+00> : vector<1x128xf32>
    %25 = tpu.matmul %19, %24, %cst_23 {dimension_numbers = #tpu.dot_dimension_numbers<[1], [0], [0], [1], [0, 0, 1, 1], [], []>} : vector<1x128xf32>, vector<128x128xf32>, vector<1x128xf32> -> vector<1x128xf32>
    %cst_24 = arith.constant 4.8828125E-4 : f32
    %26 = vector.broadcast %cst_24 : f32 to vector<1x128xf32>
    %27 = arith.mulf %25, %26 : vector<1x128xf32>
    %28 = arith.mulf %23, %23 : vector<1x128xf32>
    %29 = arith.subf %27, %28 : vector<1x128xf32>
    %cst_25 = arith.constant 0.000000e+00 : f32
    %30 = vector.broadcast %cst_25 : f32 to vector<1x128xf32>
    %31 = arith.maximumf %29, %30 : vector<1x128xf32>
    %32 = vector.broadcast %23 : vector<1x128xf32> to vector<128x128xf32>
    %33 = arith.subf %14, %32 : vector<128x128xf32>
    %cst_26 = arith.constant 9.99999974E-6 : f32
    %34 = vector.broadcast %cst_26 : f32 to vector<1x128xf32>
    %35 = arith.addf %31, %34 : vector<1x128xf32>
    %36 = math.rsqrt %35 : vector<1x128xf32>
    %37 = vector.broadcast %36 : vector<1x128xf32> to vector<128x128xf32>
    %38 = arith.mulf %33, %37 : vector<128x128xf32>
    %c0_i32 = arith.constant 0 : i32
    %c0_27 = arith.constant 0 : index
    %c0_28 = arith.constant 0 : index
    %39 = vector.load %arg2[%c0_27, %c0_28] : memref<384x128xf32, #tpu.memory_space<vmem>>, vector<384x128xf32>
    %40 = vector.shape_cast %38 : vector<128x128xf32> to vector<8x16x128xf32>
    %c0_29 = arith.constant 0 : index
    %c1_30 = arith.constant 1 : index
    %c0_31 = arith.constant 0 : index
    %41 = vector.load %arg5[%c0_29, %c1_30, %c0_31] : memref<8x18x128xf32, #tpu.memory_space<vmem>>, vector<8x16x128xf32>
    tpu.vector_store %arg5[%c0_29, %c1_30, %c0_31], %40 {strides = array<i32>} : memref<8x18x128xf32, #tpu.memory_space<vmem>>, vector<8x16x128xf32>,
    %c0_32 = arith.constant 0 : index
    %c0_33 = arith.constant 0 : index
    %c0_34 = arith.constant 0 : index
    %42 = vector.load %arg5[%c0_32, %c0_33, %c0_34] : memref<8x18x128xf32, #tpu.memory_space<vmem>>, vector<8x16x128xf32>
    %c0_35 = arith.constant 0 : index
    %c2_36 = arith.constant 2 : index
    %c0_37 = arith.constant 0 : index
    %43 = vector.load %arg5[%c0_35, %c2_36, %c0_37] : memref<8x18x128xf32, #tpu.memory_space<vmem>>, vector<8x16x128xf32>
    %44 = tpu.concatenate %42, %40, %43 in 2 : vector<8x16x128xf32>, vector<8x16x128xf32>, vector<8x16x128xf32> -> vector<8x16x384xf32>
    %45 = vector.shape_cast %44 : vector<8x16x384xf32> to vector<128x384xf32>
    %cst_38 = arith.constant dense<0.000000e+00> : vector<128x128xf32>
    %46 = tpu.matmul %45, %39, %cst_38 {dimension_numbers = #tpu.dot_dimension_numbers<[1], [0], [0], [1], [0, 0, 1, 1], [], []>} : vector<128x384xf32>, vector<384x128xf32>, vector<128x128xf32> -> vector<128x128xf32>
    %47 = arith.addf %46, %11 : vector<128x128xf32>
    %cst_39 = arith.constant 0.000000e+00 : f32
    %48 = vector.broadcast %cst_39 : f32 to vector<128x128xf32>
    %49 = arith.maximumf %47, %48 : vector<128x128xf32>
    %cst_40 = arith.constant dense<0.000000e+00> : vector<128xf32>
    %50 = vector.multi_reduction <add>, %49, %cst_40 [0] : vector<128x128xf32> to vector<128xf32>
    %51 = vector.shape_cast %50 : vector<128xf32> to vector<1x128xf32>
    %52 = arith.mulf %49, %49 : vector<128x128xf32>
    %cst_41 = arith.constant dense<0.000000e+00> : vector<128xf32>
    %53 = vector.multi_reduction <add>, %52, %cst_41 [0] : vector<128x128xf32> to vector<128xf32>
    %54 = vector.shape_cast %53 : vector<128xf32> to vector<1x128xf32>
    %c0_42 = arith.constant 0 : index
    %c0_43 = arith.constant 0 : index
    %55 = vector.load %arg3[%c0_42, %c0_43] : memref<128x128xf32, #tpu.memory_space<vmem>>, vector<128x128xf32>
    %cst_44 = arith.constant dense<0.000000e+00> : vector<1x128xf32>
    %56 = tpu.matmul %51, %55, %cst_44 {dimension_numbers = #tpu.dot_dimension_numbers<[1], [0], [0], [1], [0, 0, 1, 1], [], []>} : vector<1x128xf32>, vector<128x128xf32>, vector<1x128xf32> -> vector<1x128xf32>
    %cst_45 = arith.constant 4.8828125E-4 : f32
    %57 = vector.broadcast %cst_45 : f32 to vector<1x128xf32>
    %58 = arith.mulf %56, %57 : vector<1x128xf32>
    %c0_46 = arith.constant 0 : index
    %c0_47 = arith.constant 0 : index
    %59 = vector.load %arg3[%c0_46, %c0_47] : memref<128x128xf32, #tpu.memory_space<vmem>>, vector<128x128xf32>
    %cst_48 = arith.constant dense<0.000000e+00> : vector<1x128xf32>
    %60 = tpu.matmul %54, %59, %cst_48 {dimension_numbers = #tpu.dot_dimension_numbers<[1], [0], [0], [1], [0, 0, 1, 1], [], []>} : vector<1x128xf32>, vector<128x128xf32>, vector<1x128xf32> -> vector<1x128xf32>
    %cst_49 = arith.constant 4.8828125E-4 : f32
    %61 = vector.broadcast %cst_49 : f32 to vector<1x128xf32>
    %62 = arith.mulf %60, %61 : vector<1x128xf32>
    %63 = arith.mulf %58, %58 : vector<1x128xf32>
    %64 = arith.subf %62, %63 : vector<1x128xf32>
    %cst_50 = arith.constant 0.000000e+00 : f32
    %65 = vector.broadcast %cst_50 : f32 to vector<1x128xf32>
    %66 = arith.maximumf %64, %65 : vector<1x128xf32>
    %67 = vector.broadcast %58 : vector<1x128xf32> to vector<128x128xf32>
    %68 = arith.subf %49, %67 : vector<128x128xf32>
    %cst_51 = arith.constant 9.99999974E-6 : f32
    %69 = vector.broadcast %cst_51 : f32 to vector<1x128xf32>
    %70 = arith.addf %66, %69 : vector<1x128xf32>
    %71 = math.rsqrt %70 : vector<1x128xf32>
    %72 = vector.broadcast %71 : vector<1x128xf32> to vector<128x128xf32>
    %73 = arith.mulf %68, %72 : vector<128x128xf32>
    %c1_i32 = arith.constant 1 : i32
    %c0_52 = arith.constant 0 : index
    %c0_53 = arith.constant 0 : index
    %74 = vector.load %arg2[%c0_52, %c0_53] : memref<384x128xf32, #tpu.memory_space<vmem>>, vector<384x128xf32>
    %75 = vector.shape_cast %73 : vector<128x128xf32> to vector<8x16x128xf32>
    %c0_54 = arith.constant 0 : index
    %c1_55 = arith.constant 1 : index
    %c0_56 = arith.constant 0 : index
    %76 = vector.load %arg5[%c0_54, %c1_55, %c0_56] : memref<8x18x128xf32, #tpu.memory_space<vmem>>, vector<8x16x128xf32>
    tpu.vector_store %arg5[%c0_54, %c1_55, %c0_56], %75 {strides = array<i32>} : memref<8x18x128xf32, #tpu.memory_space<vmem>>, vector<8x16x128xf32>,
    %c0_57 = arith.constant 0 : index
    %c0_58 = arith.constant 0 : index
    %c0_59 = arith.constant 0 : index
    %77 = vector.load %arg5[%c0_57, %c0_58, %c0_59] : memref<8x18x128xf32, #tpu.memory_space<vmem>>, vector<8x16x128xf32>
    %c0_60 = arith.constant 0 : index
    %c2_61 = arith.constant 2 : index
    %c0_62 = arith.constant 0 : index
    %78 = vector.load %arg5[%c0_60, %c2_61, %c0_62] : memref<8x18x128xf32, #tpu.memory_space<vmem>>, vector<8x16x128xf32>
    %79 = tpu.concatenate %77, %75, %78 in 2 : vector<8x16x128xf32>, vector<8x16x128xf32>, vector<8x16x128xf32> -> vector<8x16x384xf32>
    %80 = vector.shape_cast %79 : vector<8x16x384xf32> to vector<128x384xf32>
    %cst_63 = arith.constant dense<0.000000e+00> : vector<128x128xf32>
    %81 = tpu.matmul %80, %74, %cst_63 {dimension_numbers = #tpu.dot_dimension_numbers<[1], [0], [0], [1], [0, 0, 1, 1], [], []>} : vector<128x384xf32>, vector<384x128xf32>, vector<128x128xf32> -> vector<128x128xf32>
    %82 = arith.addf %81, %11 : vector<128x128xf32>
    %cst_64 = arith.constant 0.000000e+00 : f32
    %83 = vector.broadcast %cst_64 : f32 to vector<128x128xf32>
    %84 = arith.maximumf %82, %83 : vector<128x128xf32>
    %cst_65 = arith.constant dense<0.000000e+00> : vector<128xf32>
    %85 = vector.multi_reduction <add>, %84, %cst_65 [0] : vector<128x128xf32> to vector<128xf32>
    %86 = vector.shape_cast %85 : vector<128xf32> to vector<1x128xf32>
    %87 = arith.mulf %84, %84 : vector<128x128xf32>
    %cst_66 = arith.constant dense<0.000000e+00> : vector<128xf32>
    %88 = vector.multi_reduction <add>, %87, %cst_66 [0] : vector<128x128xf32> to vector<128xf32>
    %89 = vector.shape_cast %88 : vector<128xf32> to vector<1x128xf32>
    %c0_67 = arith.constant 0 : index
    %c0_68 = arith.constant 0 : index
    %90 = vector.load %arg3[%c0_67, %c0_68] : memref<128x128xf32, #tpu.memory_space<vmem>>, vector<128x128xf32>
    %cst_69 = arith.constant dense<0.000000e+00> : vector<1x128xf32>
    %91 = tpu.matmul %86, %90, %cst_69 {dimension_numbers = #tpu.dot_dimension_numbers<[1], [0], [0], [1], [0, 0, 1, 1], [], []>} : vector<1x128xf32>, vector<128x128xf32>, vector<1x128xf32> -> vector<1x128xf32>
    %cst_70 = arith.constant 4.8828125E-4 : f32
    %92 = vector.broadcast %cst_70 : f32 to vector<1x128xf32>
    %93 = arith.mulf %91, %92 : vector<1x128xf32>
    %c0_71 = arith.constant 0 : index
    %c0_72 = arith.constant 0 : index
    %94 = vector.load %arg3[%c0_71, %c0_72] : memref<128x128xf32, #tpu.memory_space<vmem>>, vector<128x128xf32>
    %cst_73 = arith.constant dense<0.000000e+00> : vector<1x128xf32>
    %95 = tpu.matmul %89, %94, %cst_73 {dimension_numbers = #tpu.dot_dimension_numbers<[1], [0], [0], [1], [0, 0, 1, 1], [], []>} : vector<1x128xf32>, vector<128x128xf32>, vector<1x128xf32> -> vector<1x128xf32>
    %cst_74 = arith.constant 4.8828125E-4 : f32
    %96 = vector.broadcast %cst_74 : f32 to vector<1x128xf32>
    %97 = arith.mulf %95, %96 : vector<1x128xf32>
    %98 = arith.mulf %93, %93 : vector<1x128xf32>
    %99 = arith.subf %97, %98 : vector<1x128xf32>
    %cst_75 = arith.constant 0.000000e+00 : f32
    %100 = vector.broadcast %cst_75 : f32 to vector<1x128xf32>
    %101 = arith.maximumf %99, %100 : vector<1x128xf32>
    %102 = vector.broadcast %93 : vector<1x128xf32> to vector<128x128xf32>
    %103 = arith.subf %84, %102 : vector<128x128xf32>
    %cst_76 = arith.constant 9.99999974E-6 : f32
    %104 = vector.broadcast %cst_76 : f32 to vector<1x128xf32>
    %105 = arith.addf %101, %104 : vector<1x128xf32>
    %106 = math.rsqrt %105 : vector<1x128xf32>
    %107 = vector.broadcast %106 : vector<1x128xf32> to vector<128x128xf32>
    %108 = arith.mulf %103, %107 : vector<128x128xf32>
    %c2_i32 = arith.constant 2 : i32
    %c0_77 = arith.constant 0 : index
    %c0_78 = arith.constant 0 : index
    %109 = vector.load %arg2[%c0_77, %c0_78] : memref<384x128xf32, #tpu.memory_space<vmem>>, vector<384x128xf32>
    %110 = vector.shape_cast %108 : vector<128x128xf32> to vector<8x16x128xf32>
    %c0_79 = arith.constant 0 : index
    %c1_80 = arith.constant 1 : index
    %c0_81 = arith.constant 0 : index
    %111 = vector.load %arg5[%c0_79, %c1_80, %c0_81] : memref<8x18x128xf32, #tpu.memory_space<vmem>>, vector<8x16x128xf32>
    tpu.vector_store %arg5[%c0_79, %c1_80, %c0_81], %110 {strides = array<i32>} : memref<8x18x128xf32, #tpu.memory_space<vmem>>, vector<8x16x128xf32>,
    %c0_82 = arith.constant 0 : index
    %c0_83 = arith.constant 0 : index
    %c0_84 = arith.constant 0 : index
    %112 = vector.load %arg5[%c0_82, %c0_83, %c0_84] : memref<8x18x128xf32, #tpu.memory_space<vmem>>, vector<8x16x128xf32>
    %c0_85 = arith.constant 0 : index
    %c2_86 = arith.constant 2 : index
    %c0_87 = arith.constant 0 : index
    %113 = vector.load %arg5[%c0_85, %c2_86, %c0_87] : memref<8x18x128xf32, #tpu.memory_space<vmem>>, vector<8x16x128xf32>
    %114 = tpu.concatenate %112, %110, %113 in 2 : vector<8x16x128xf32>, vector<8x16x128xf32>, vector<8x16x128xf32> -> vector<8x16x384xf32>
    %115 = vector.shape_cast %114 : vector<8x16x384xf32> to vector<128x384xf32>
    %cst_88 = arith.constant dense<0.000000e+00> : vector<128x128xf32>
    %116 = tpu.matmul %115, %109, %cst_88 {dimension_numbers = #tpu.dot_dimension_numbers<[1], [0], [0], [1], [0, 0, 1, 1], [], []>} : vector<128x384xf32>, vector<384x128xf32>, vector<128x128xf32> -> vector<128x128xf32>
    %117 = arith.addf %116, %11 : vector<128x128xf32>
    %cst_89 = arith.constant 0.000000e+00 : f32
    %118 = vector.broadcast %cst_89 : f32 to vector<128x128xf32>
    %119 = arith.maximumf %117, %118 : vector<128x128xf32>
    %cst_90 = arith.constant dense<0.000000e+00> : vector<128xf32>
    %120 = vector.multi_reduction <add>, %119, %cst_90 [0] : vector<128x128xf32> to vector<128xf32>
    %121 = vector.shape_cast %120 : vector<128xf32> to vector<1x128xf32>
    %122 = arith.mulf %119, %119 : vector<128x128xf32>
    %cst_91 = arith.constant dense<0.000000e+00> : vector<128xf32>
    %123 = vector.multi_reduction <add>, %122, %cst_91 [0] : vector<128x128xf32> to vector<128xf32>
    %124 = vector.shape_cast %123 : vector<128xf32> to vector<1x128xf32>
    %c0_92 = arith.constant 0 : index
    %c0_93 = arith.constant 0 : index
    %125 = vector.load %arg3[%c0_92, %c0_93] : memref<128x128xf32, #tpu.memory_space<vmem>>, vector<128x128xf32>
    %cst_94 = arith.constant dense<0.000000e+00> : vector<1x128xf32>
    %126 = tpu.matmul %121, %125, %cst_94 {dimension_numbers = #tpu.dot_dimension_numbers<[1], [0], [0], [1], [0, 0, 1, 1], [], []>} : vector<1x128xf32>, vector<128x128xf32>, vector<1x128xf32> -> vector<1x128xf32>
    %cst_95 = arith.constant 4.8828125E-4 : f32
    %127 = vector.broadcast %cst_95 : f32 to vector<1x128xf32>
    %128 = arith.mulf %126, %127 : vector<1x128xf32>
    %c0_96 = arith.constant 0 : index
    %c0_97 = arith.constant 0 : index
    %129 = vector.load %arg3[%c0_96, %c0_97] : memref<128x128xf32, #tpu.memory_space<vmem>>, vector<128x128xf32>
    %cst_98 = arith.constant dense<0.000000e+00> : vector<1x128xf32>
    %130 = tpu.matmul %124, %129, %cst_98 {dimension_numbers = #tpu.dot_dimension_numbers<[1], [0], [0], [1], [0, 0, 1, 1], [], []>} : vector<1x128xf32>, vector<128x128xf32>, vector<1x128xf32> -> vector<1x128xf32>
    %cst_99 = arith.constant 4.8828125E-4 : f32
    %131 = vector.broadcast %cst_99 : f32 to vector<1x128xf32>
    %132 = arith.mulf %130, %131 : vector<1x128xf32>
    %133 = arith.mulf %128, %128 : vector<1x128xf32>
    %134 = arith.subf %132, %133 : vector<1x128xf32>
    %cst_100 = arith.constant 0.000000e+00 : f32
    %135 = vector.broadcast %cst_100 : f32 to vector<1x128xf32>
    %136 = arith.maximumf %134, %135 : vector<1x128xf32>
    %137 = vector.broadcast %128 : vector<1x128xf32> to vector<128x128xf32>
    %138 = arith.subf %119, %137 : vector<128x128xf32>
    %cst_101 = arith.constant 9.99999974E-6 : f32
    %139 = vector.broadcast %cst_101 : f32 to vector<1x128xf32>
    %140 = arith.addf %136, %139 : vector<1x128xf32>
    %141 = math.rsqrt %140 : vector<1x128xf32>
    %142 = vector.broadcast %141 : vector<1x128xf32> to vector<128x128xf32>
    %143 = arith.mulf %138, %142 : vector<128x128xf32>
    %c0_102 = arith.constant 0 : index
    %c0_103 = arith.constant 0 : index
    %144 = vector.load %arg4[%c0_102, %c0_103] : memref<128x128xf32, #tpu.memory_space<vmem>>, vector<128x128xf32>
    tpu.vector_store %arg4[%c0_102, %c0_103], %143 {strides = array<i32>} : memref<128x128xf32, #tpu.memory_space<vmem>>, vector<128x128xf32>,
    return
  }
}

</mosaic_0001>

<bundles_post_ra>
// kernel: tpu_custom_call.1
= control target key start
LH: loop header
LB: loop body
LE: loop exit
PB: predicated region body
PF: predicated region fallthrough
CT: control target
= control target key end

     0   :  { %9 = vsyncpa [#allocation4], 0  ;;  %s4038_s0 = inlined_call_operand.hbm [shape: f32[128,128], index: 0, kind: input, shape index: {}]   ;;  %s4039_s1 = inlined_call_operand.hbm [shape: f32[384,256], index: 1, kind: input, shape index: {}]   ;;  %s4040_s2 = inlined_call_operand.hbm [shape: f32[384,128], index: 2, kind: input, shape index: {}]   ;;  %s4041_s3 = inlined_call_operand.hbm [shape: f32[128,128], index: 3, kind: input, shape index: {}]   ;;  %s4042_s4 = inlined_call_operand.hbm [shape: f32[128,128], index: 4, kind: output, shape index: {}]  }
   0x1   :  { %10 = vsyncpa [#allocation7], 0 }
   0x2   :  { %11 = vsyncpa [#allocation10], 0  ;;  %s30_s17 = sshll.u32 %s4039_s1, 4  ;;  %s31_s17 = int_to_ptr.hbm [resolvable:$true] %s30_s17 }
   0x3   :  { %12 = vsyncpa [#allocation5], 0  ;;  %s2451_s18 = smov [#allocation6]   ;;  %s17_s22 = sshll.u32 %s4038_s0, 4  ;;  %s18_s22 = int_to_ptr.hbm [resolvable:$true] %s17_s22 }
   0x4   :  { %s32_s19 = sshll.u32 %s2451_s18, 4  ;;  %s2452_s23 = smov 256   ;;  %s33_s19 = int_to_ptr.vmem [resolvable:$true] %s32_s19 }
   0x5   :  { %s2453_s24 = smov 16   ;;  %s2454_s25 = smov [#allocation3]  }
   0x6   :  { %38 = dma.hbm_to_vmem [thread:$0]  %s31_s17, 12288, %s33_s19, [#allocation7], %s2452_s23, %s2452_s23, %s2453_s24  }
   0x7   :  { %s19_s26 = sshll.u32 %s2454_s25, 4  ;;  %s2455_s27 = smov 128   ;;  %s20_s26 = int_to_ptr.vmem [resolvable:$true] %s19_s26 }
   0x8   :  { %s2456_s28 = smov 8   ;;  %s43_s30 = sshll.u32 %s4040_s2, 4  ;;  %s44_s30 = int_to_ptr.hbm [resolvable:$true] %s43_s30 }
   0x9   :  { %25 = dma.hbm_to_vmem [thread:$0]  %s18_s22, 2048, %s20_s26, [#allocation4], %s2455_s27, %s2455_s27, %s2456_s28  }
   0xa   :  { %s2457_s5 = smov [#allocation8]   ;;  %s56_s8 = sshll.u32 %s4041_s3, 4  ;;  %s57_s8 = int_to_ptr.hbm [resolvable:$true] %s56_s8 }
   0xb   :  { %s45_s0 = sshll.u32 %s2457_s5, 4  ;;  %s2458_s9 = smov [#allocation9]   ;;  %s46_s0 = int_to_ptr.vmem [resolvable:$true] %s45_s0 }
   0xc   :  { %51 = dma.hbm_to_vmem [thread:$0]  %s44_s30, 6144, %s46_s0, [#allocation7], %s2455_s27, %s2455_s27, %s2456_s28  }
   0xd   :  { %s58_s10 = sshll.u32 %s2458_s9, 4  ;;  %s59_s10 = int_to_ptr.vmem [resolvable:$true] %s58_s10 }
   0xe   :  { %64 = dma.hbm_to_vmem [thread:$0]  %s57_s8, 2048, %s59_s10, [#allocation10], %s2455_s27, %s2455_s27, %s2456_s28  }
   0xf   :  { %2443 = dma.done.wait [#allocation4], 2048  }
  0x10   :  { %2444 = vsyncadd [#allocation4], 4294965248 }
  0x11   :  { %2445 = dma.done.wait [#allocation7], 18432  }
  0x12   :  { %2446 = vsyncadd [#allocation7], 4294948864 }
  0x13   :  { %2447 = dma.done.wait [#allocation10], 2048  }
  0x14   :  { %2448 = vsyncadd [#allocation10], 4294965248  ;;  %v2459_v0 = vmov 0.0   ;;  %v151_v1 = vld [vmem:[#allocation6 + $0xf0] sm:$0xff]  ;;  %v149_v2 = vld [vmem:[#allocation6 + $0xe0] sm:$0xff]  ;;  %s2460_s2 = smov [#allocation11]  }
  0x15   :  { %99 = vst [vmem:[#allocation2 + $0x90] sm:$0xff] %v2459_v0  ;;  %2285 = vmatpush.msra.mxu1 %v151_v1  ;;  %265 = vmatpush.msra.mxu0 %v151_v1  ;;  %v147_v3 = vld [vmem:[#allocation6 + $0xd0] sm:$0xff]  ;;  %v145_v4 = vld [vmem:[#allocation6 + $0xc0] sm:$0xff]  ;;  %v2521_v9 = vld [vmem:[#allocation3 + $0x68] sm:$0xff]  ;;  %s2268_s3 = sshll.u32 %s2460_s2, 4  ;;  %s2270_s13 = sshll.u32 %s4042_s4, 4  ;;  %s2269_s3 = int_to_ptr.vmem [resolvable:$true] %s2268_s3  ;;  %s2271_s13 = int_to_ptr.hbm [resolvable:$true] %s2270_s13 }
  0x16   :  { %100 = vst [vmem:[#allocation2 + $0x98] sm:$0xff] %v2459_v0  ;;  %v215_v5 = vld [vmem:[#allocation6 + $0x2f0] sm:$0xff]  ;;  %v213_v6 = vld [vmem:[#allocation6 + $0x2e0] sm:$0xff]  ;;  %v2538_v23 = vld [vmem:[#allocation3 + $0x78] sm:$0xff] }
  0x17   :  { %101 = vst [vmem:[#allocation2 + $0xa0] sm:$0x3] %v2459_v0  ;;  %2286 = vmatpush.msra.mxu1 %v149_v2  ;;  %266 = vmatpush.msra.mxu0 %v149_v2  ;;  %v143_v7 = vld [vmem:[#allocation6 + $0xb0] sm:$0xff]  ;;  %v2519_v8 = vld [vmem:[#allocation3 + $0x60] sm:$0xff]  ;;  %v2544_v27 = vld [vmem:[#allocation3 + $0x8] sm:$0xff] }
  0x18   :  { %81 = vst [vmem:[#allocation2] sm:$0xff] %v2459_v0  ;;  %395 = vmatpush.msra.mxu2 %v215_v5  ;;  %v211_v10 = vld [vmem:[#allocation6 + $0x2d0] sm:$0xff]  ;;  %v141_v11 = vld [vmem:[#allocation6 + $0xa0] sm:$0xff]  ;;  %v2559_v46 = vld [vmem:[#allocation3 + $0x18] sm:$0xff] }
  0x19   :  { %82 = vst [vmem:[#allocation2 + $0x8] sm:$0xff] %v2459_v0  ;;  %2287 = vmatpush.msra.mxu1 %v147_v3  ;;  %267 = vmatpush.msra.mxu0 %v147_v3  ;;  %v209_v12 = vld [vmem:[#allocation6 + $0x2c0] sm:$0xff]  ;;  %v139_v13 = vld [vmem:[#allocation6 + $0x90] sm:$0xff]  ;;  %v2583_v62 = vld [vmem:[#allocation3 + $0x28] sm:$0xff] }
  0x1a   :  { %83 = vst [vmem:[#allocation2 + $0x10] sm:$0x3] %v2459_v0  ;;  %396 = vmatpush.msra.mxu2 %v213_v6  ;;  %v207_v14 = vld [vmem:[#allocation6 + $0x2b0] sm:$0xff]  ;;  %v137_v15 = vld [vmem:[#allocation6 + $0x80] sm:$0xff] }
  0x1b   :  { %84 = vst [vmem:[#allocation2 + $0x18] sm:$0xff] %v2459_v0  ;;  %2288 = vmatpush.msra.mxu1 %v145_v4  ;;  %268 = vmatpush.msra.mxu0 %v145_v4  ;;  %v205_v16 = vld [vmem:[#allocation6 + $0x2a0] sm:$0xff]  ;;  %v135_v17 = vld [vmem:[#allocation6 + $0x70] sm:$0xff] }
  0x1c   :  { %85 = vst [vmem:[#allocation2 + $0x20] sm:$0xff] %v2459_v0  ;;  %397 = vmatpush.msra.mxu2 %v211_v10  ;;  %v203_v18 = vld [vmem:[#allocation6 + $0x290] sm:$0xff]  ;;  %v133_v19 = vld [vmem:[#allocation6 + $0x60] sm:$0xff] }
  0x1d   :  { %86 = vst [vmem:[#allocation2 + $0x28] sm:$0x3] %v2459_v0  ;;  %2289 = vmatpush.msra.mxu1 %v143_v7  ;;  %269 = vmatpush.msra.mxu0 %v143_v7  ;;  %v201_v20 = vld [vmem:[#allocation6 + $0x280] sm:$0xff]  ;;  %v2535_v21 = vld [vmem:[#allocation3 + $0x70] sm:$0xff] }
  0x1e   :  { %87 = vst [vmem:[#allocation2 + $0x30] sm:$0xff] %v2459_v0  ;;  %398 = vmatpush.msra.mxu2 %v209_v12  ;;  %v131_v22 = vld [vmem:[#allocation6 + $0x50] sm:$0xff]  ;;  %v2541_v25 = vld [vmem:[#allocation3] sm:$0xff]  ;;  %v2605_v12 = vld [vmem:[#allocation3 + $0x38] sm:$0xff] }
  0x1f   :  { %88 = vst [vmem:[#allocation2 + $0x38] sm:$0xff] %v2459_v0  ;;  %2290 = vmatpush.msra.mxu1 %v141_v11  ;;  %270 = vmatpush.msra.mxu0 %v141_v11  ;;  %v199_v24 = vld [vmem:[#allocation6 + $0x270] sm:$0xff]  ;;  %v129_v26 = vld [vmem:[#allocation6 + $0x40] sm:$0xff] }
  0x20   :  { %89 = vst [vmem:[#allocation2 + $0x40] sm:$0x3] %v2459_v0  ;;  %399 = vmatpush.msra.mxu2 %v207_v14  ;;  %v197_v28 = vld [vmem:[#allocation6 + $0x260] sm:$0xff]  ;;  %v127_v29 = vld [vmem:[#allocation6 + $0x30] sm:$0xff] }
  0x21   :  { %90 = vst [vmem:[#allocation2 + $0x48] sm:$0xff] %v2459_v0  ;;  %2291 = vmatpush.msra.mxu1 %v139_v13  ;;  %271 = vmatpush.msra.mxu0 %v139_v13  ;;  %v195_v30 = vld [vmem:[#allocation6 + $0x250] sm:$0xff]  ;;  %v125_v31 = vld [vmem:[#allocation6 + $0x20] sm:$0xff] }
  0x22   :  { %229 = vst [vmem:[#allocation2 + $0x91] sm:$0xff] %v2519_v8  ;;  %400 = vmatpush.msra.mxu2 %v205_v16  ;;  %v193_v32 = vld [vmem:[#allocation6 + $0x240] sm:$0xff]  ;;  %v123_v33 = vld [vmem:[#allocation6 + $0x10] sm:$0xff] }
  0x23   :  { %230 = vst [vmem:[#allocation2 + $0x99] sm:$0xff] %v2521_v9  ;;  %2292 = vmatpush.msra.mxu1 %v137_v15  ;;  %272 = vmatpush.msra.mxu0 %v137_v15  ;;  %v191_v34 = vld [vmem:[#allocation6 + $0x230] sm:$0xff]  ;;  %v121_v35 = vld [vmem:[#allocation6] sm:$0xff] }
  0x24   :  { %91 = vst [vmem:[#allocation2 + $0x50] sm:$0xff] %v2459_v0  ;;  %401 = vmatpush.msra.mxu2 %v203_v18  ;;  %v189_v37 = vld [vmem:[#allocation6 + $0x220] sm:$0xff]  ;;  %v183_v38 = vld [vmem:[#allocation6 + $0x1f0] sm:$0xff]  ;;  %v2625_v18 = vld [vmem:[#allocation3 + $0x48] sm:$0xff] }
  0x25   :  { %92 = vst [vmem:[#allocation2 + $0x58] sm:$0x3] %v2459_v0  ;;  %2293 = vmatpush.msra.mxu1 %v135_v17  ;;  %273 = vmatpush.msra.mxu0 %v135_v17  ;;  %v187_v39 = vld [vmem:[#allocation6 + $0x210] sm:$0xff]  ;;  %v181_v41 = vld [vmem:[#allocation6 + $0x1e0] sm:$0xff] }
  0x26   :  { %93 = vst [vmem:[#allocation2 + $0x60] sm:$0xff] %v2459_v0  ;;  %402 = vmatpush.msra.mxu2 %v201_v20  ;;  %v185_v42 = vld [vmem:[#allocation6 + $0x200] sm:$0xff]  ;;  %v179_v43 = vld [vmem:[#allocation6 + $0x1d0] sm:$0xff] }
  0x27   :  { %94 = vst [vmem:[#allocation2 + $0x68] sm:$0xff] %v2459_v0  ;;  %2294 = vmatpush.msra.mxu1 %v133_v19  ;;  %274 = vmatpush.msra.mxu0 %v133_v19  ;;  %v2557_v45 = vld [vmem:[#allocation3 + $0x10] sm:$0xff]  ;;  %v177_v47 = vld [vmem:[#allocation6 + $0x1c0] sm:$0xff] }
  0x28   :  { %95 = vst [vmem:[#allocation2 + $0x70] sm:$0x3] %v2459_v0  ;;  %403 = vmatpush.msra.mxu2 %v199_v24  ;;  %v175_v49 = vld [vmem:[#allocation6 + $0x1b0] sm:$0xff]  ;;  %v173_v51 = vld [vmem:[#allocation6 + $0x1a0] sm:$0xff] }
  0x29   :  { %96 = vst [vmem:[#allocation2 + $0x78] sm:$0xff] %v2459_v0  ;;  %2295 = vmatpush.msra.mxu1 %v131_v22  ;;  %275 = vmatpush.msra.mxu0 %v131_v22  ;;  %v2549_v36 = vld [vmem:[#allocation2 + $0x90] sm:$0xff]  ;;  %v169_v54 = vld [vmem:[#allocation6 + $0x180] sm:$0xff] }
  0x2a   :  { %97 = vst [vmem:[#allocation2 + $0x80] sm:$0xff] %v2459_v0  ;;  %404 = vmatpush.msra.mxu2 %v197_v28  ;;  %v2562_v48 = vld [vmem:[#allocation2 + $0x98] sm:$0xff]  ;;  %v171_v52 = vld [vmem:[#allocation6 + $0x190] sm:$0xff]  ;;  %v165_v58 = vld [vmem:[#allocation6 + $0x160] sm:$0xff] }
  0x2b   :  { %98 = vst [vmem:[#allocation2 + $0x88] sm:$0x3] %v2459_v0  ;;  %2296 = vmatpush.msra.mxu1 %v129_v26  ;;  %276 = vmatpush.msra.mxu0 %v129_v26  ;;  %v167_v56 = vld [vmem:[#allocation6 + $0x170] sm:$0xff]  ;;  %v2581_v61 = vld [vmem:[#allocation3 + $0x20] sm:$0xff]  ;;  %v2645_v28 = vld [vmem:[#allocation3 + $0x58] sm:$0xff] }
  0x2c   :  { %102 = vst [vmem:[#allocation2 + $0xa8] sm:$0xff] %v2459_v0  ;;  %405 = vmatpush.msra.mxu2 %v195_v30  ;;  %v163_v59 = vld [vmem:[#allocation6 + $0x150] sm:$0xff]  ;;  %v161_v63 = vld [vmem:[#allocation6 + $0x140] sm:$0xff] }
  0x2d   :  { %103 = vst [vmem:[#allocation2 + $0xb0] sm:$0xff] %v2459_v0  ;;  %2297 = vmatpush.msra.mxu1 %v127_v29  ;;  %277 = vmatpush.msra.mxu0 %v127_v29  ;;  %v159_v1 = vld [vmem:[#allocation6 + $0x130] sm:$0xff]  ;;  %v157_v3 = vld [vmem:[#allocation6 + $0x120] sm:$0xff] }
  0x2e   :  { %104 = vst [vmem:[#allocation2 + $0xb8] sm:$0x3] %v2459_v0  ;;  %406 = vmatpush.msra.mxu2 %v193_v32  ;;  %v155_v4 = vld [vmem:[#allocation6 + $0x110] sm:$0xff]  ;;  %v153_v6 = vld [vmem:[#allocation6 + $0x100] sm:$0xff] }
  0x2f   :  { %231 = vst [vmem:[#allocation2 + $0xa9] sm:$0xff] %v2535_v21  ;;  %2298 = vmatpush.msra.mxu1 %v125_v31  ;;  %278 = vmatpush.msra.mxu0 %v125_v31  ;;  %v2603_v11 = vld [vmem:[#allocation3 + $0x30] sm:$0xff]  ;;  %v2623_v17 = vld [vmem:[#allocation3 + $0x40] sm:$0xff] }
  0x30   :  { %232 = vst [vmem:[#allocation2 + $0xb1] sm:$0xff] %v2538_v23  ;;  %407 = vmatpush.msra.mxu2 %v191_v34  ;;  %v2643_v26 = vld [vmem:[#allocation3 + $0x50] sm:$0xff] }
  0x31   :  { %217 = vst [vmem:[#allocation2 + $0x1] sm:$0xff] %v2541_v25  ;;  %2299 = vmatpush.msra.mxu1 %v123_v33  ;;  %279 = vmatpush.msra.mxu0 %v123_v33 }
  0x32   :  { %218 = vst [vmem:[#allocation2 + $0x9] sm:$0xff] %v2544_v27  ;;  %408 = vmatpush.msra.mxu2 %v189_v37  ;;  %v2676_v37 = vld [vmem:[#allocation2 + $0x9a] sm:$0xff] }
  0x33   :  { %2300 = vmatpush.msra.mxu1 %v121_v35  ;;  %280 = vmatpush.msra.mxu0 %v121_v35  ;;  %219 = vst [vmem:[#allocation2 + $0x19] sm:$0xff] %v2557_v45  ;;  %v2672_v35 = vld [vmem:[#allocation2 + $0x92] sm:$0xff] }
  0x34   :  { %317 = vmatmul.f32.vlgmr.msra.gmra.mxu1 %v2549_v36  ;;  %409 = vmatpush.msra.mxu2 %v187_v39  ;;  %220 = vst [vmem:[#allocation2 + $0x21] sm:$0xff] %v2559_v46  ;;  %v150_v39 = vld [vmem:[#allocation6 + $0xe8] sm:$0xff] }
  0x35   :  { %330 = vmatpush.msrb.mxu1 %v183_v38  ;;  %221 = vst [vmem:[#allocation2 + $0x31] sm:$0xff] %v2581_v61  ;;  %v152_v38 = vld [vmem:[#allocation6 + $0xf8] sm:$0xff] }
  0x36   :  { %410 = vmatpush.msra.mxu2 %v185_v42  ;;  %v2572_v55 = vld [vmem:[#allocation2 + $0xa8] sm:$0xff]  ;;  %222 = vst [vmem:[#allocation2 + $0x39] sm:$0xff] %v2583_v62  ;;  %460 = vmatpush.msra.mxu3 %v152_v38 }
  0x37   :  { %331 = vmatpush.msrb.mxu1 %v181_v41  ;;  %v2586_v0 = vld [vmem:[#allocation2 + $0xb0] sm:$0xff]  ;;  %223 = vst [vmem:[#allocation2 + $0x49] sm:$0xff] %v2603_v11  ;;  %v148_v41 = vld [vmem:[#allocation6 + $0xd8] sm:$0xff]  ;;  %v146_v42 = vld [vmem:[#allocation6 + $0xc8] sm:$0xff] }
  0x38   :  { %v2551_v40 = vld [vmem:[#allocation2] sm:$0xff]  ;;  %224 = vst [vmem:[#allocation2 + $0x51] sm:$0xff] %v2605_v12  ;;  %461 = vmatpush.msra.mxu3 %v150_v39  ;;  %v210_v38 = vld [vmem:[#allocation6 + $0x2c8] sm:$0xff]  ;;  %v136_v39 = vld [vmem:[#allocation6 + $0x78] sm:$0xff] }
  0x39   :  { %281 = vmatmul.f32.vlgmr.msra.gmra.mxu0 %v2551_v40  ;;  %v2555_v44 = vld [vmem:[#allocation2 + $0x2] sm:$0xff]  ;;  %332 = vmatpush.msrb.mxu1 %v179_v43  ;;  %v2570_v53 = vld [vmem:[#allocation2 + $0xa] sm:$0xff]  ;;  %225 = vst [vmem:[#allocation2 + $0x61] sm:$0xff] %v2623_v17  ;;  %v184_v43 = vld [vmem:[#allocation6 + $0x1f8] sm:$0xff] }
  0x3a   :  { %411 = vmatmul.f32.vlgmr.msra.gmra.mxu2 %v2555_v44  ;;  %v2566_v50 = vld [vmem:[#allocation2 + $0x8] sm:$0xff]  ;;  %v2575_v57 = vld [vmem:[#allocation2 + $0x18] sm:$0xff]  ;;  %226 = vst [vmem:[#allocation2 + $0x69] sm:$0xff] %v2625_v18  ;;  %462 = vmatpush.msra.mxu3 %v148_v41 }
  0x3b   :  { %333 = vmatpush.msrb.mxu1 %v177_v47  ;;  %v2579_v60 = vld [vmem:[#allocation2 + $0x1a] sm:$0xff]  ;;  %v2594_v5 = vld [vmem:[#allocation2 + $0x22] sm:$0xff]  ;;  %227 = vst [vmem:[#allocation2 + $0x79] sm:$0xff] %v2643_v26  ;;  %525 = vmatpush.msrb.mxu0 %v184_v43  ;;  %v2680_v47 = vld [vmem:[#allocation2 + $0xaa] sm:$0xff] }
  0x3c   :  { %320 = vmatmul.f32.gmra.mxu1 %v2562_v48  ;;  %v2590_v2 = vld [vmem:[#allocation2 + $0x20] sm:$0xff]  ;;  %v2597_v7 = vld [vmem:[#allocation2 + $0x30] sm:$0xff]  ;;  %228 = vst [vmem:[#allocation2 + $0x81] sm:$0xff] %v2645_v28  ;;  %463 = vmatpush.msra.mxu3 %v146_v42  ;;  %v174_v41 = vld [vmem:[#allocation6 + $0x1a8] sm:$0xff] }
  0x3d   :  { %334 = vmatpush.msrb.mxu1 %v175_v49  ;;  %v2601_v10 = vld [vmem:[#allocation2 + $0x32] sm:$0xff]  ;;  %v2614_v14 = vld [vmem:[#allocation2 + $0x3a] sm:$0xff] }
  0x3e   :  { %v2610_v13 = vld [vmem:[#allocation2 + $0x38] sm:$0xff]  ;;  %v2617_v15 = vld [vmem:[#allocation2 + $0x48] sm:$0xff] }
  0x3f   :  { %335 = vmatpush.msrb.mxu1 %v173_v51  ;;  %v2621_v16 = vld [vmem:[#allocation2 + $0x4a] sm:$0xff]  ;;  %v2634_v20 = vld [vmem:[#allocation2 + $0x52] sm:$0xff] }
  0x40   :  { %v2630_v19 = vld [vmem:[#allocation2 + $0x50] sm:$0xff]  ;;  %v2637_v22 = vld [vmem:[#allocation2 + $0x60] sm:$0xff]  ;;  %v144_v49 = vld [vmem:[#allocation6 + $0xb8] sm:$0xff] }
  0x41   :  { %284 = vmatmul.f32.gmra.mxu0 %v2566_v50  ;;  %336 = vmatpush.msrb.mxu1 %v171_v52  ;;  %v2641_v24 = vld [vmem:[#allocation2 + $0x62] sm:$0xff]  ;;  %v2654_v30 = vld [vmem:[#allocation2 + $0x6a] sm:$0xff]  ;;  %v216_v52 = vld [vmem:[#allocation6 + $0x2f8] sm:$0xff] }
  0x42   :  { %414 = vmatmul.f32.gmra.mxu2 %v2570_v53  ;;  %v2650_v29 = vld [vmem:[#allocation2 + $0x68] sm:$0xff]  ;;  %v2657_v31 = vld [vmem:[#allocation2 + $0x78] sm:$0xff]  ;;  %464 = vmatpush.msra.mxu3 %v144_v49 }
  0x43   :  { %337 = vmatpush.msrb.mxu1 %v169_v54  ;;  %v2661_v32 = vld [vmem:[#allocation2 + $0x7a] sm:$0xff]  ;;  %v2668_v34 = vld [vmem:[#allocation2 + $0x82] sm:$0xff] }
  0x44   :  { %323 = vmatmul.f32.gmra.mxu1 %v2572_v55  ;;  %v2664_v33 = vld [vmem:[#allocation2 + $0x80] sm:$0xff]  ;;  %v182_v51 = vld [vmem:[#allocation6 + $0x1e8] sm:$0xff]  ;;  %v208_v42 = vld [vmem:[#allocation6 + $0x2b8] sm:$0xff] }
  0x45   :  { %338 = vmatpush.msrb.mxu1 %v167_v56  ;;  %v142_v54 = vld [vmem:[#allocation6 + $0xa8] sm:$0xff]  ;;  %v180_v56 = vld [vmem:[#allocation6 + $0x1d8] sm:$0xff]  ;;  %526 = vmatpush.msrb.mxu0 %v182_v51 }
  0x46   :  { %465 = vmatpush.msra.mxu3 %v142_v54  ;;  %v134_v49 = vld [vmem:[#allocation6 + $0x68] sm:$0xff]  ;;  %v172_v51 = vld [vmem:[#allocation6 + $0x198] sm:$0xff] }
  0x47   :  { %339 = vmatpush.msrb.mxu1 %v165_v58  ;;  %v214_v58 = vld [vmem:[#allocation6 + $0x2e8] sm:$0xff]  ;;  %527 = vmatpush.msrb.mxu0 %v180_v56  ;;  %v132_v54 = vld [vmem:[#allocation6 + $0x58] sm:$0xff] }
  0x48   :  { %v170_v56 = vld [vmem:[#allocation6 + $0x188] sm:$0xff] }
  0x49   :  { %287 = vmatmul.f32.gmra.mxu0 %v2575_v57  ;;  %340 = vmatpush.msrb.mxu1 %v163_v59  ;;  %v140_v59 = vld [vmem:[#allocation6 + $0x98] sm:$0xff] }
  0x4a   :  { %417 = vmatmul.f32.gmra.mxu2 %v2579_v60  ;;  %466 = vmatpush.msra.mxu3 %v140_v59  ;;  %v130_v59 = vld [vmem:[#allocation6 + $0x48] sm:$0xff] }
  0x4b   :  { %341 = vmatpush.msrb.mxu1 %v161_v63  ;;  %v178_v63 = vld [vmem:[#allocation6 + $0x1c8] sm:$0xff] }
  0x4c   :  { %326 = vmatmul.f32.gmra.mxu1 %v2586_v0  ;;  %528 = vmatpush.msrb.mxu0 %v178_v63  ;;  %v168_v63 = vld [vmem:[#allocation6 + $0x178] sm:$0xff] }
  0x4d   :  { %342 = vmatpush.msrb.mxu1 %v159_v1  ;;  %v212_v1 = vld [vmem:[#allocation6 + $0x2d8] sm:$0xff] }
  0x4f   :  { %343 = vmatpush.msrb.mxu1 %v157_v3  ;;  %v138_v3 = vld [vmem:[#allocation6 + $0x88] sm:$0xff] }
  0x50   :  { %467 = vmatpush.msra.mxu3 %v138_v3  ;;  %v128_v3 = vld [vmem:[#allocation6 + $0x38] sm:$0xff] }
  0x51   :  { %290 = vmatmul.f32.gmra.mxu0 %v2590_v2  ;;  %344 = vmatpush.msrb.mxu1 %v155_v4  ;;  %v176_v4 = vld [vmem:[#allocation6 + $0x1b8] sm:$0xff] }
  0x52   :  { %420 = vmatmul.f32.gmra.mxu2 %v2594_v5  ;;  %529 = vmatpush.msrb.mxu0 %v176_v4  ;;  %v166_v4 = vld [vmem:[#allocation6 + $0x168] sm:$0xff] }
  0x53   :  { %345 = vmatpush.msrb.mxu1 %v153_v6  ;;  %v2684_v6 = vld [vmem:[#allocation2 + $0xb2] sm:$0xff]  ;;  %468 = vmatpush.msra.mxu3 %v136_v39 }
  0x54   :  { %346 = vmatmul.f32.vlgmr.msrb.gmra.mxu1 %v2541_v25  ;;  %530 = vmatpush.msrb.mxu0 %v174_v41  ;;  %v126_v41 = vld [vmem:[#allocation6 + $0x28] sm:$0xff] }
  0x55   :  { %590 = vmatpush.msra.mxu1 %v216_v52  ;;  %v206_v52 = vld [vmem:[#allocation6 + $0x2a8] sm:$0xff]  ;;  %469 = vmatpush.msra.mxu3 %v134_v49 }
  0x56   :  { %531 = vmatpush.msrb.mxu0 %v172_v51  ;;  %v198_v49 = vld [vmem:[#allocation6 + $0x268] sm:$0xff] }
  0x57   :  { %591 = vmatpush.msra.mxu1 %v214_v58  ;;  %v204_v58 = vld [vmem:[#allocation6 + $0x298] sm:$0xff]  ;;  %470 = vmatpush.msra.mxu3 %v132_v54  ;;  %v162_v54 = vld [vmem:[#allocation6 + $0x148] sm:$0xff] }
  0x58   :  { %532 = vmatpush.msrb.mxu0 %v170_v56  ;;  %v196_v56 = vld [vmem:[#allocation6 + $0x258] sm:$0xff] }
  0x59   :  { %293 = vmatmul.f32.gmra.mxu0 %v2597_v7  ;;  %592 = vmatpush.msra.mxu1 %v212_v1  ;;  %v202_v1 = vld [vmem:[#allocation6 + $0x288] sm:$0xff] }
  0x5a   :  { %423 = vmatmul.f32.gmra.mxu2 %v2601_v10  ;;  %471 = vmatpush.msra.mxu3 %v130_v59  ;;  %v160_v59 = vld [vmem:[#allocation6 + $0x138] sm:$0xff] }
  0x5b   :  { %593 = vmatpush.msra.mxu1 %v210_v38  ;;  %v200_v38 = vld [vmem:[#allocation6 + $0x278] sm:$0xff]  ;;  %533 = vmatpush.msrb.mxu0 %v168_v63  ;;  %v194_v63 = vld [vmem:[#allocation6 + $0x248] sm:$0xff] }
  0x5c   :  { %349 = vmatmul.f32.gmra.mxu1 %v2544_v27  ;;  %472 = vmatpush.msra.mxu3 %v128_v3  ;;  %v158_v3 = vld [vmem:[#allocation6 + $0x128] sm:$0xff] }
  0x5d   :  { %594 = vmatpush.msra.mxu1 %v208_v42  ;;  %v164_v42 = vld [vmem:[#allocation6 + $0x158] sm:$0xff]  ;;  %534 = vmatpush.msrb.mxu0 %v166_v4 }
  0x5e   :  { %473 = vmatpush.msra.mxu3 %v126_v41  ;;  %v744_v4 = vld [vmem:[#allocation9 + $0x78] sm:$0xff] }
  0x5f   :  { %595 = vmatpush.msra.mxu1 %v206_v52  ;;  %v124_v52 = vld [vmem:[#allocation6 + $0x18] sm:$0xff]  ;;  %535 = vmatpush.msrb.mxu0 %v164_v42 }
  0x60   :  { %474 = vmatpush.msra.mxu3 %v124_v52  ;;  %745 = vmatpush.msrb.mxu2 %v744_v4  ;;  %v156_v41 = vld [vmem:[#allocation6 + $0x118] sm:$0xff]  ;;  %v154_v52 = vld [vmem:[#allocation6 + $0x108] sm:$0xff] }
  0x61   :  { %296 = vmatmul.f32.gmra.mxu0 %v2610_v13  ;;  %596 = vmatpush.msra.mxu1 %v204_v58  ;;  %v122_v58 = vld [vmem:[#allocation6 + $0x8] sm:$0xff] }
  0x62   :  { %426 = vmatmul.f32.gmra.mxu2 %v2614_v14  ;;  %536 = vmatpush.msrb.mxu0 %v162_v54  ;;  %v188_v54 = vld [vmem:[#allocation6 + $0x218] sm:$0xff] }
  0x63   :  { %597 = vmatpush.msra.mxu1 %v202_v1  ;;  %475 = vmatpush.msra.mxu3 %v122_v58 }
  0x64   :  { %352 = vmatmul.f32.gmra.mxu1 %v2557_v45  ;;  %537 = vmatpush.msrb.mxu0 %v160_v59  ;;  %v743_v59 = vld [vmem:[#allocation9 + $0x70] sm:$0xff] }
  0x65   :  { %598 = vmatpush.msra.mxu1 %v200_v38  ;;  %476 = vmatmul.f32.vlgmr.msra.gmra.mxu3 %v2551_v40  ;;  %v192_v38 = vld [vmem:[#allocation6 + $0x238] sm:$0xff] }
  0x66   :  { %766 = vmatpush.msrb.mxu3 %v744_v4  ;;  %538 = vmatpush.msrb.mxu0 %v158_v3  ;;  %v742_v4 = vld [vmem:[#allocation9 + $0x68] sm:$0xff] }
  0x67   :  { %599 = vmatpush.msra.mxu1 %v198_v49  ;;  %v190_v49 = vld [vmem:[#allocation6 + $0x228] sm:$0xff]  ;;  %746 = vmatpush.msrb.mxu2 %v743_v59 }
  0x68   :  { %539 = vmatpush.msrb.mxu0 %v156_v41  ;;  %767 = vmatpush.msrb.mxu3 %v743_v59  ;;  %v741_v41 = vld [vmem:[#allocation9 + $0x60] sm:$0xff]  ;;  %v735_v59 = vld [vmem:[#allocation9 + $0x30] sm:$0xff] }
  0x69   :  { %299 = vmatmul.f32.gmra.mxu0 %v2617_v15  ;;  %600 = vmatpush.msra.mxu1 %v196_v56  ;;  %v186_v56 = vld [vmem:[#allocation6 + $0x208] sm:$0xff] }
  0x6a   :  { %429 = vmatmul.f32.gmra.mxu2 %v2621_v16  ;;  %540 = vmatpush.msrb.mxu0 %v154_v52  ;;  %v739_v52 = vld [vmem:[#allocation9 + $0x50] sm:$0xff] }
  0x6b   :  { %601 = vmatpush.msra.mxu1 %v194_v63  ;;  %747 = vmatpush.msrb.mxu2 %v742_v4 }
  0x6c   :  { %355 = vmatmul.f32.gmra.mxu1 %v2559_v46  ;;  %768 = vmatpush.msrb.mxu3 %v742_v4  ;;  %v734_v4 = vld [vmem:[#allocation9 + $0x28] sm:$0xff] }
  0x6d   :  { %602 = vmatpush.msra.mxu1 %v192_v38  ;;  %479 = vmatmul.f32.gmra.mxu3 %v2566_v50 }
  0x6e   :  { %748 = vmatpush.msrb.mxu2 %v741_v41  ;;  %769 = vmatpush.msrb.mxu3 %v741_v41 }
  0x6f   :  { %603 = vmatpush.msra.mxu1 %v190_v49 }
  0x71   :  { %302 = vmatmul.f32.gmra.mxu0 %v2630_v19  ;;  %604 = vmatpush.msra.mxu1 %v188_v54  ;;  %v738_v54 = vld [vmem:[#allocation9 + $0x48] sm:$0xff] }
  0x72   :  { %432 = vmatmul.f32.gmra.mxu2 %v2634_v20 }
  0x73   :  { %605 = vmatpush.msra.mxu1 %v186_v56 }
  0x74   :  { %358 = vmatmul.f32.gmra.mxu1 %v2581_v61 }
  0x75   :  { %482 = vmatmul.f32.gmra.mxu3 %v2575_v57 }
  0x79   :  { %305 = vmatmul.f32.gmra.mxu0 %v2637_v22 }
  0x7a   :  { %435 = vmatmul.f32.gmra.mxu2 %v2641_v24 }
  0x7c   :  { %361 = vmatmul.f32.gmra.mxu1 %v2583_v62 }
  0x7d   :  { %485 = vmatmul.f32.gmra.mxu3 %v2590_v2 }
  0x81   :  { %308 = vmatmul.f32.gmra.mxu0 %v2650_v29 }
  0x82   :  { %438 = vmatmul.f32.gmra.mxu2 %v2654_v30 }
  0x84   :  { %364 = vmatmul.f32.gmra.mxu1 %v2603_v11 }
  0x85   :  { %488 = vmatmul.f32.gmra.mxu3 %v2597_v7 }
  0x89   :  { %311 = vmatmul.f32.gmra.mxu0 %v2657_v31 }
  0x8a   :  { %441 = vmatmul.f32.gmra.mxu2 %v2661_v32 }
  0x8c   :  { %367 = vmatmul.f32.gmra.mxu1 %v2605_v12 }
  0x8d   :  { %491 = vmatmul.f32.gmra.mxu3 %v2610_v13 }
  0x91   :  { %314 = vmatmul.f32.gmra.mxu0 %v2664_v33 }
  0x92   :  { %444 = vmatmul.f32.gmra.mxu2 %v2668_v34 }
  0x94   :  { %370 = vmatmul.f32.gmra.mxu1 %v2623_v17 }
  0x95   :  { %494 = vmatmul.f32.gmra.mxu3 %v2617_v15 }
  0x99   :  { %541 = vmatmul.f32.vlgmr.msrb.gmra.mxu0 %v2541_v25 }
  0x9a   :  { %447 = vmatmul.f32.gmra.mxu2 %v2672_v35 }
  0x9c   :  { %373 = vmatmul.f32.gmra.mxu1 %v2625_v18 }
  0x9d   :  { %497 = vmatmul.f32.gmra.mxu3 %v2630_v19 }
  0xa1   :  { %544 = vmatmul.f32.gmra.mxu0 %v2544_v27 }
  0xa2   :  { %450 = vmatmul.f32.gmra.mxu2 %v2676_v37 }
  0xa4   :  { %376 = vmatmul.f32.gmra.mxu1 %v2643_v26 }
  0xa5   :  { %500 = vmatmul.f32.gmra.mxu3 %v2637_v22 }
  0xa9   :  { %547 = vmatmul.f32.gmra.mxu0 %v2557_v45 }
  0xaa   :  { %453 = vmatmul.f32.gmra.mxu2 %v2680_v47 }
  0xac   :  { %379 = vmatmul.f32.gmra.mxu1 %v2645_v28 }
  0xad   :  { %503 = vmatmul.f32.gmra.mxu3 %v2650_v29 }
  0xb1   :  { %v2686_v43 = vpop.f32.mrf.mxu1  ;;  %550 = vmatmul.f32.gmra.mxu0 %v2559_v46 }
  0xb2   :  { %456 = vmatmul.f32.gmra.mxu2 %v2684_v6 }
  0xb4   :  { %382 = vmatmul.f32.gmra.mxu1 %v2519_v8 }
  0xb5   :  { %506 = vmatmul.f32.gmra.mxu3 %v2657_v31 }
  0xb6   :  { %v2703_v40 = vpop.f32.mrf.mxu0 }
  0xb9   :  { %v2690_v39 = vpop.f32.mrf.mxu1  ;;  %553 = vmatmul.f32.gmra.mxu0 %v2581_v61 }
  0xbc   :  { %385 = vmatmul.f32.gmra.mxu1 %v2521_v9 }
  0xbd   :  { %v2693_v51 = vpop.f32.mrf.mxu2  ;;  %509 = vmatmul.f32.gmra.mxu3 %v2664_v33 }
  0xbe   :  { %v2714_v38 = vpop.f32.mrf.mxu0 }
  0xc1   :  { %v2695_v1 = vpop.f32.mrf.mxu1  ;;  %556 = vmatmul.f32.gmra.mxu0 %v2583_v62 }
  0xc4   :  { %388 = vmatmul.f32.gmra.mxu1 %v2535_v21 }
  0xc5   :  { %v2699_v42 = vpop.f32.mrf.mxu2  ;;  %512 = vmatmul.f32.gmra.mxu3 %v2549_v36 }
  0xc6   :  { %v2726_v57 = vpop.f32.mrf.mxu0 }
  0xc9   :  { %v2701_v58 = vpop.f32.mrf.mxu1  ;;  %559 = vmatmul.f32.gmra.mxu0 %v2603_v11 }
  0xcc   :  { %391 = vmatmul.f32.gmra.mxu1 %v2538_v23 }
  0xcd   :  { %v2708_v63 = vpop.f32.mrf.mxu2  ;;  %515 = vmatmul.f32.gmra.mxu3 %v2562_v48 }
  0xce   :  { %v2735_v2 = vpop.f32.mrf.mxu0 }
  0xd1   :  { %v2710_v3 = vpop.f32.mrf.mxu1  ;;  %562 = vmatmul.f32.gmra.mxu0 %v2605_v12 }
  0xd4   :  { %606 = vmatmul.f32.vlgmr.msra.gmra.mxu1 %v2555_v44  ;;  %v740_v44 = vld [vmem:[#allocation9 + $0x58] sm:$0xff] }
  0xd5   :  { %v2717_v25 = vpop.f32.mrf.mxu2  ;;  %749 = vmatpush.msrb.mxu2 %v740_v44  ;;  %770 = vmatpush.msrb.mxu3 %v740_v44 }
  0xd6   :  { %v2744_v7 = vpop.f32.mrf.mxu0  ;;  %518 = vmatmul.f32.gmra.mxu3 %v2572_v55 }
  0xd7   :  { %750 = vmatpush.msrb.mxu2 %v739_v52  ;;  %771 = vmatpush.msrb.mxu3 %v739_v52 }
  0xd9   :  { %v2719_v50 = vpop.f32.mrf.mxu1  ;;  %751 = vmatpush.msrb.mxu2 %v738_v54  ;;  %772 = vmatpush.msrb.mxu3 %v738_v54 }
  0xda   :  { %565 = vmatmul.f32.gmra.mxu0 %v2623_v17 }
  0xdc   :  { %609 = vmatmul.f32.gmra.mxu1 %v2570_v53 }
  0xdd   :  { %v2724_v27 = vpop.f32.mrf.mxu2 }
  0xde   :  { %v2757_v56 = vpop.f32.mrf.mxu0  ;;  %521 = vmatmul.f32.gmra.mxu3 %v2586_v0 }
  0xe1   :  { %v2728_v49 = vpop.f32.mrf.mxu1 }
  0xe2   :  { %568 = vmatmul.f32.gmra.mxu0 %v2625_v18  ;;  %v354_v33 = vadd.f32 %v2728_v49, %v2726_v57 }
  0xe4   :  { %612 = vmatmul.f32.gmra.mxu1 %v2579_v60 }
  0xe5   :  { %v2733_v45 = vpop.f32.mrf.mxu2 }
  0xe6   :  { %v300_v11 = vpop.f32.mrf.mxu0 }
  0xe9   :  { %v2737_v53 = vpop.f32.mrf.mxu1 }
  0xea   :  { %571 = vmatmul.f32.gmra.mxu0 %v2643_v26  ;;  %v351_v26 = vadd.f32 %v2719_v50, %v2714_v38  ;;  %v419_v38 = vadd.f32 %v2708_v63, %v354_v33  ;;  %v731_v50 = vld [vmem:[#allocation9 + $0x10] sm:$0xff] }
  0xec   :  { %615 = vmatmul.f32.gmra.mxu1 %v2594_v5  ;;  %v737_v5 = vld [vmem:[#allocation9 + $0x40] sm:$0xff]  ;;  %v416_v44 = vadd.f32 %v2699_v42, %v351_v26  ;;  %v2816_v48 = vmax.f32 %v419_v38, 0.0 }
  0xed   :  { %v2742_v46 = vpop.f32.mrf.mxu2  ;;  %752 = vmatpush.msrb.mxu2 %v737_v5  ;;  %773 = vmatpush.msrb.mxu3 %v737_v5 }
  0xee   :  { %v2808_v42 = vmax.f32 %v416_v44, 0.0  ;;  %v694_v54 = vmul.f32 %v2816_v48, %v2816_v48 }
  0xf1   :  { %v2746_v60 = vpop.f32.mrf.mxu1 }
  0xf2   :  { %574 = vmatmul.f32.gmra.mxu0 %v2645_v28  ;;  %v357_v28 = vadd.f32 %v2737_v53, %v2735_v2  ;;  %v693_v2 = vmul.f32 %v2808_v42, %v2808_v42 }
  0xf4   :  { %618 = vmatmul.f32.gmra.mxu1 %v2601_v10  ;;  %v736_v10 = vld [vmem:[#allocation9 + $0x38] sm:$0xff] }
  0xf5   :  { %v2753_v13 = vpop.f32.mrf.mxu2  ;;  %753 = vmatpush.msrb.mxu2 %v736_v10  ;;  %774 = vmatpush.msrb.mxu3 %v736_v10 }
  0xf7   :  { %754 = vmatpush.msrb.mxu2 %v735_v59  ;;  %775 = vmatpush.msrb.mxu3 %v735_v59 }
  0xf9   :  { %v2751_v61 = vpop.f32.mrf.mxu1  ;;  %755 = vmatpush.msrb.mxu2 %v734_v4  ;;  %776 = vmatpush.msrb.mxu3 %v734_v4 }
  0xfa   :  { %577 = vmatmul.f32.gmra.mxu0 %v2519_v8  ;;  %v422_v8 = vadd.f32 %v2717_v25, %v357_v28 }
  0xfc   :  { %621 = vmatmul.f32.gmra.mxu1 %v2614_v14  ;;  %v303_v14 = vpop.f32.mrf.mxu0  ;;  %v2822_v53 = vmax.f32 %v422_v8, 0.0 }
  0xfd   :  { %v2764_v15 = vpop.f32.mrf.mxu2 }
  0xfe   :  { %v695_v55 = vmul.f32 %v2822_v53, %v2822_v53 }
 0x101   :  { %v2760_v62 = vpop.f32.mrf.mxu1 }
 0x102   :  { %v366_v49 = vadd.f32 %v2760_v62, %v300_v11  ;;  %580 = vmatmul.f32.gmra.mxu0 %v2521_v9 }
 0x104   :  { %624 = vmatmul.f32.gmra.mxu1 %v2621_v16  ;;  %v306_v17 = vpop.f32.mrf.mxu0 }
 0x105   :  { %v2770_v12 = vpop.f32.mrf.mxu2 }
 0x109   :  { %v368_v19 = vpop.f32.mrf.mxu1 }
 0x10a   :  { %v369_v25 = vadd.f32 %v368_v19, %v303_v14  ;;  %583 = vmatmul.f32.gmra.mxu0 %v2535_v21 }
 0x10c   :  { %627 = vmatmul.f32.gmra.mxu1 %v2634_v20  ;;  %v733_v20 = vld [vmem:[#allocation9 + $0x20] sm:$0xff]  ;;  %v309_v41 = vpop.f32.mrf.mxu0  ;;  %v434_v19 = vadd.f32 %v2753_v13, %v369_v25 }
 0x10d   :  { %v2777_v16 = vpop.f32.mrf.mxu2  ;;  %756 = vmatpush.msrb.mxu2 %v733_v20  ;;  %777 = vmatpush.msrb.mxu3 %v733_v20 }
 0x10e   :  { %v2855_v33 = vmax.f32 %v434_v19, 0.0 }
 0x110   :  { %v699_v0 = vmul.f32 %v2855_v33, %v2855_v33 }
 0x111   :  { %v2772_v22 = vpop.f32.mrf.mxu1 }
 0x112   :  { %v372_v62 = vadd.f32 %v2772_v22, %v306_v17  ;;  %586 = vmatmul.f32.gmra.mxu0 %v2538_v23  ;;  %v2894_v23 = vpop.f32.mrf.mxu3 }
 0x114   :  { %630 = vmatmul.f32.gmra.mxu1 %v2641_v24  ;;  %v732_v24 = vld [vmem:[#allocation9 + $0x18] sm:$0xff]  ;;  %v312_v63 = vpop.f32.mrf.mxu0  ;;  %v437_v17 = vadd.f32 %v2764_v15, %v372_v62 }
 0x115   :  { %v2786_v31 = vpop.f32.mrf.mxu2  ;;  %757 = vmatpush.msrb.mxu2 %v732_v24  ;;  %778 = vmatpush.msrb.mxu3 %v732_v24 }
 0x117   :  { %758 = vmatpush.msrb.mxu2 %v731_v50  ;;  %779 = vmatpush.msrb.mxu3 %v731_v50 }
 0x119   :  { %v2779_v29 = vpop.f32.mrf.mxu1 }
 0x11a   :  { %v375_v14 = vadd.f32 %v2779_v29, %v309_v41 }
 0x11c   :  { %633 = vmatmul.f32.gmra.mxu1 %v2654_v30  ;;  %v348_v30 = vadd.f32 %v2710_v3, %v2703_v40  ;;  %v315_v20 = vpop.f32.mrf.mxu0  ;;  %v440_v41 = vadd.f32 %v2770_v12, %v375_v14 }
 0x11d   :  { %v2806_v40 = vpop.f32.mrf.mxu2 }
 0x11e   :  { %v413_v52 = vadd.f32 %v2693_v51, %v348_v30  ;;  %v363_v51 = vadd.f32 %v2751_v61, %v2757_v56  ;;  %v729_v61 = vld [vmem:[#allocation9] sm:$0xff] }
 0x120   :  { %v2814_v3 = vmax.f32 %v413_v52, 0.0  ;;  %v2863_v52 = vmax.f32 %v437_v17, 0.0 }
 0x121   :  { %v2784_v18 = vpop.f32.mrf.mxu1 }
 0x122   :  { %v671_v5 = vadd.f32 %v2808_v42, %v2814_v3  ;;  %v378_v24 = vadd.f32 %v2784_v18, %v312_v63 }
 0x124   :  { %636 = vmatmul.f32.gmra.mxu1 %v2661_v32  ;;  %v360_v32 = vadd.f32 %v2746_v60, %v2744_v7  ;;  %v692_v60 = vmul.f32 %v2814_v3, %v2814_v3  ;;  %v672_v10 = vadd.f32 %v671_v5, %v2816_v48  ;;  %v443_v38 = vadd.f32 %v2777_v16, %v378_v24 }
 0x125   :  { %v451_v59 = vpop.f32.mrf.mxu2 }
 0x126   :  { %v425_v57 = vadd.f32 %v2724_v27, %v360_v32  ;;  %v730_v27 = vld [vmem:[#allocation9 + $0x8] sm:$0xff]  ;;  %v708_v9 = vadd.f32 %v693_v2, %v692_v60  ;;  %v673_v22 = vadd.f32 %v672_v10, %v2822_v53 }
 0x127   :  { %759 = vmatpush.msrb.mxu2 %v730_v27  ;;  %780 = vmatpush.msrb.mxu3 %v730_v27 }
 0x128   :  { %v2833_v56 = vmax.f32 %v425_v57, 0.0 }
 0x129   :  { %v380_v36 = vpop.f32.mrf.mxu1  ;;  %760 = vmatpush.msrb.mxu2 %v729_v61  ;;  %781 = vmatpush.msrb.mxu3 %v729_v61 }
 0x12a   :  { %v674_v13 = vadd.f32 %v673_v22, %v2833_v56  ;;  %v381_v44 = vadd.f32 %v380_v36, %v315_v20  ;;  %v2871_v36 = vmax.f32 %v440_v41, 0.0 }
 0x12c   :  { %639 = vmatmul.f32.gmra.mxu1 %v2668_v34  ;;  %v428_v34 = vadd.f32 %v2733_v45, %v363_v51  ;;  %v431_v45 = vadd.f32 %v2742_v46, %v366_v49  ;;  %v709_v46 = vadd.f32 %v708_v9, %v694_v54  ;;  %v446_v32 = vadd.f32 %v2786_v31, %v381_v44 }
 0x12d   :  { %v454_v16 = vpop.f32.mrf.mxu2 }
 0x12e   :  { %v2841_v11 = vmax.f32 %v428_v34, 0.0  ;;  %v2848_v4 = vmax.f32 %v431_v45, 0.0  ;;  %v710_v26 = vadd.f32 %v709_v46, %v695_v55  ;;  %v2885_v31 = vmax.f32 %v446_v32, 0.0 }
 0x130   :  { %v697_v30 = vmul.f32 %v2841_v11, %v2841_v11  ;;  %v675_v28 = vadd.f32 %v674_v13, %v2841_v11  ;;  %v698_v18 = vmul.f32 %v2848_v4, %v2848_v4  ;;  %v703_v62 = vmul.f32 %v2885_v31, %v2885_v31  ;;  %v2914_v13 = vpop.f32.mrf.mxu3 }
 0x131   :  { %v383_v7 = vpop.f32.mrf.mxu1 }
 0x132   :  { %v384_v50 = vadd.f32 %v383_v7, %v2686_v43  ;;  %v676_v12 = vadd.f32 %v675_v28, %v2848_v4  ;;  %v700_v43 = vmul.f32 %v2863_v52, %v2863_v52 }
 0x134   :  { %642 = vmatmul.f32.gmra.mxu1 %v2672_v35  ;;  %v696_v35 = vmul.f32 %v2833_v56, %v2833_v56  ;;  %v677_v63 = vadd.f32 %v676_v12, %v2855_v33  ;;  %v449_v57 = vadd.f32 %v2806_v40, %v384_v50 }
 0x136   :  { %v711_v15 = vadd.f32 %v710_v26, %v696_v35  ;;  %v678_v2 = vadd.f32 %v677_v63, %v2863_v52  ;;  %v2891_v27 = vmax.f32 %v449_v57, 0.0  ;;  %v882_v63 = vld [vmem:[#allocation8 + $0x178] sm:$0xff] }
 0x137   :  { %1061 = vmatpush.msra.mxu0 %v882_v63 }
 0x138   :  { %v712_v21 = vadd.f32 %v711_v15, %v697_v30  ;;  %v679_v54 = vadd.f32 %v678_v2, %v2871_v36  ;;  %v704_v55 = vmul.f32 %v2891_v27, %v2891_v27  ;;  %v881_v2 = vld [vmem:[#allocation8 + $0x170] sm:$0xff] }
 0x139   :  { %v386_v29 = vpop.f32.mrf.mxu1  ;;  %1062 = vmatpush.msra.mxu0 %v881_v2  ;;  %v3018_v2 = vld [vmem:[#allocation8 + $0x90] sm:$0xff] }
 0x13a   :  { %v387_v8 = vadd.f32 %v386_v29, %v2690_v39  ;;  %v713_v51 = vadd.f32 %v712_v21, %v698_v18  ;;  %v701_v39 = vmul.f32 %v2871_v36, %v2871_v36 }
 0x13c   :  { %645 = vmatmul.f32.gmra.mxu1 %v2676_v37  ;;  %v2878_v37 = vmax.f32 %v443_v38, 0.0  ;;  %v714_v49 = vadd.f32 %v713_v51, %v699_v0  ;;  %v452_v25 = vadd.f32 %v451_v59, %v387_v8 }
 0x13e   :  { %v715_v60 = vadd.f32 %v714_v49, %v700_v43  ;;  %v702_v40 = vmul.f32 %v2878_v37, %v2878_v37  ;;  %v680_v45 = vadd.f32 %v679_v54, %v2878_v37 }
 0x140   :  { %v716_v5 = vadd.f32 %v715_v60, %v701_v39  ;;  %v681_v10 = vadd.f32 %v680_v45, %v2885_v31  ;;  %v878_v60 = vld [vmem:[#allocation8 + $0x158] sm:$0xff]  ;;  %v875_v45 = vld [vmem:[#allocation8 + $0x140] sm:$0xff] }
 0x141   :  { %v389_v34 = vpop.f32.mrf.mxu1 }
 0x142   :  { %v390_v7 = vadd.f32 %v389_v34, %v2695_v1  ;;  %v2899_v1 = vmax.f32 %v452_v25, 0.0  ;;  %v717_v9 = vadd.f32 %v716_v5, %v702_v40  ;;  %v682_v14 = vadd.f32 %v681_v10, %v2891_v27  ;;  %v880_v34 = vld [vmem:[#allocation8 + $0x168] sm:$0xff]  ;;  %v879_v25 = vld [vmem:[#allocation8 + $0x160] sm:$0xff]  ;;  %v877_v40 = vld [vmem:[#allocation8 + $0x150] sm:$0xff] }
 0x143   :  { %1063 = vmatpush.msra.mxu0 %v880_v34  ;;  %v876_v5 = vld [vmem:[#allocation8 + $0x148] sm:$0xff] }
 0x144   :  { %v455_v61 = vadd.f32 %v454_v16, %v390_v7  ;;  %648 = vmatmul.f32.gmra.mxu1 %v2680_v47  ;;  %v457_v47 = vpop.f32.mrf.mxu2  ;;  %v718_v46 = vadd.f32 %v717_v9, %v703_v62  ;;  %v705_v22 = vmul.f32 %v2899_v1, %v2899_v1  ;;  %v683_v20 = vadd.f32 %v682_v14, %v2899_v1  ;;  %v874_v9 = vld [vmem:[#allocation8 + $0x138] sm:$0xff]  ;;  %v872_v34 = vld [vmem:[#allocation8 + $0x128] sm:$0xff] }
 0x145   :  { %1064 = vmatpush.msra.mxu0 %v879_v25  ;;  %v2944_v14 = vld [vmem:[#allocation8 + $0xf8] sm:$0xff]  ;;  %v871_v25 = vld [vmem:[#allocation8 + $0x120] sm:$0xff] }
 0x146   :  { %v2904_v19 = vmax.f32 %v455_v61, 0.0  ;;  %v719_v17 = vadd.f32 %v718_v46, %v704_v55  ;;  %v873_v55 = vld [vmem:[#allocation8 + $0x130] sm:$0xff]  ;;  %996 = vmatpush.msra.mxu3 %v2944_v14 }
 0x147   :  { %1065 = vmatpush.msra.mxu0 %v878_v60  ;;  %v3022_v60 = vld [vmem:[#allocation8 + $0x28] sm:$0xff] }
 0x148   :  { %v706_v24 = vmul.f32 %v2904_v19, %v2904_v19  ;;  %v720_v30 = vadd.f32 %v719_v17, %v705_v22  ;;  %v684_v29 = vadd.f32 %v683_v20, %v2904_v19  ;;  %v2947_v22 = vld [vmem:[#allocation8 + $0xf0] sm:$0xff]  ;;  %v2952_v17 = vld [vmem:[#allocation8 + $0xe8] sm:$0xff]  ;;  %v2955_v20 = vld [vmem:[#allocation8 + $0xe0] sm:$0xff] }
 0x149   :  { %v392_v59 = vpop.f32.mrf.mxu1  ;;  %1066 = vmatpush.msra.mxu0 %v877_v40  ;;  %997 = vmatpush.msra.mxu3 %v2947_v22  ;;  %v3024_v40 = vld [vmem:[#allocation8 + $0x88] sm:$0xff] }
 0x14a   :  { %v393_v35 = vadd.f32 %v392_v59, %v2701_v58  ;;  %v721_v44 = vadd.f32 %v720_v30, %v706_v24  ;;  %v2958_v24 = vld [vmem:[#allocation8 + $0x78] sm:$0xff]  ;;  %v2964_v30 = vld [vmem:[#allocation8 + $0x70] sm:$0xff] }
 0x14b   :  { %1067 = vmatpush.msra.mxu0 %v876_v5  ;;  %998 = vmatpush.msra.mxu3 %v2952_v17  ;;  %v870_v5 = vld [vmem:[#allocation8 + $0x118] sm:$0xff] }
 0x14c   :  { %v458_v26 = vadd.f32 %v457_v47, %v393_v35  ;;  %651 = vmatmul.f32.gmra.mxu1 %v2684_v6  ;;  %v2922_v6 = vpop.f32.mrf.mxu3  ;;  %931 = vmatpush.msra.mxu2 %v2958_v24 }
 0x14d   :  { %1068 = vmatpush.msra.mxu0 %v875_v45  ;;  %999 = vmatpush.msra.mxu3 %v2955_v20  ;;  %v3028_v45 = vld [vmem:[#allocation8 + $0x20] sm:$0xff] }
 0x14e   :  { %v2917_v41 = vmax.f32 %v458_v26, 0.0  ;;  %v2960_v26 = vld [vmem:[#allocation8 + $0xd8] sm:$0xff]  ;;  %932 = vmatpush.msra.mxu2 %v2964_v30 }
 0x14f   :  { %1069 = vmatpush.msra.mxu0 %v874_v9  ;;  %1000 = vmatpush.msra.mxu3 %v2960_v26  ;;  %v3030_v9 = vld [vmem:[#allocation8 + $0x80] sm:$0xff] }
 0x150   :  { %v685_v15 = vadd.f32 %v684_v29, %v2917_v41  ;;  %v707_v58 = vmul.f32 %v2917_v41, %v2917_v41  ;;  %v2966_v29 = vld [vmem:[#allocation8 + $0xd0] sm:$0xff] }
 0x151   :  { %1070 = vmatpush.msra.mxu0 %v873_v55  ;;  %1001 = vmatpush.msra.mxu3 %v2966_v29 }
 0x152   :  { %v686_v28 = vrot.slane %v685_v15, 4  ;;  %v722_v18 = vadd.f32 %v721_v44, %v707_v58  ;;  %v2970_v44 = vld [vmem:[#allocation8 + $0x68] sm:$0xff] }
 0x153   :  { %933 = vmatpush.msra.mxu2 %v2970_v44  ;;  %1071 = vmatpush.msra.mxu0 %v872_v34  ;;  %v3034_v34 = vld [vmem:[#allocation8 + $0x18] sm:$0xff] }
 0x154   :  { %v687_v38 = vadd.f32 %v686_v28, %v685_v15  ;;  %v723_v50 = vrot.slane %v722_v18, 4  ;;  %v2924_v49 = vpop.f32.mrf.mxu3  ;;  %v2972_v15 = vld [vmem:[#allocation8 + $0xc8] sm:$0xff]  ;;  %v2978_v28 = vld [vmem:[#allocation8 + $0x60] sm:$0xff] }
 0x155   :  { %1002 = vmatpush.msra.mxu3 %v2972_v15  ;;  %934 = vmatpush.msra.mxu2 %v2978_v28 }
 0x156   :  { %v688_v21 = vrot.slane %v687_v38, 2  ;;  %v724_v12 = vadd.f32 %v723_v50, %v722_v18  ;;  %v2980_v18 = vld [vmem:[#allocation8 + $0xc0] sm:$0xff]  ;;  %v2986_v50 = vld [vmem:[#allocation8 + $0xb8] sm:$0xff]  ;;  %1072 = vmatpush.msra.mxu0 %v871_v25  ;;  %v3040_v25 = vld [vmem:[#allocation8 + $0x8] sm:$0xff] }
 0x157   :  { %1003 = vmatpush.msra.mxu3 %v2980_v18 }
 0x158   :  { %v689_v0 = vadd.f32 %v688_v21, %v687_v38  ;;  %v725_v32 = vrot.slane %v724_v12, 2  ;;  %v2984_v38 = vld [vmem:[#allocation8 + $0x58] sm:$0xff]  ;;  %v2990_v21 = vld [vmem:[#allocation8 + $0x50] sm:$0xff]  ;;  %1073 = vmatpush.msra.mxu0 %v870_v5  ;;  %v3044_v5 = vld [vmem:[#allocation8] sm:$0xff] }
 0x159   :  { %935 = vmatpush.msra.mxu2 %v2984_v38  ;;  %1004 = vmatpush.msra.mxu3 %v2986_v50 }
 0x15a   :  { %v690_v8 = vrot.slane %v689_v0, 1  ;;  %v726_v51 = vadd.f32 %v725_v32, %v724_v12  ;;  %v2992_v12 = vld [vmem:[#allocation8 + $0xb0] sm:$0xff]  ;;  %v2998_v32 = vld [vmem:[#allocation8 + $0xa8] sm:$0xff] }
 0x15b   :  { %936 = vmatpush.msra.mxu2 %v2990_v21  ;;  %1005 = vmatpush.msra.mxu3 %v2992_v12 }
 0x15c   :  { %v691_v43 = vadd.f32 %v690_v8, %v689_v0  ;;  %v727_v16 = vrot.slane %v726_v51, 1  ;;  %v2926_v39 = vpop.f32.mrf.mxu3  ;;  %v2996_v0 = vld [vmem:[#allocation8 + $0x48] sm:$0xff]  ;;  %v3002_v8 = vld [vmem:[#allocation8 + $0x40] sm:$0xff] }
 0x15d   :  { %937 = vmatpush.msra.mxu2 %v2996_v0  ;;  %1006 = vmatpush.msra.mxu3 %v2998_v32 }
 0x15e   :  { %761 = vmatmul.f32.vlgmr.msrb.gmra.mxu2 %v691_v43  ;;  %v728_v57 = vadd.f32 %v727_v16, %v726_v51  ;;  %v3004_v51 = vld [vmem:[#allocation8 + $0xa0] sm:$0xff]  ;;  %v3010_v43 = vld [vmem:[#allocation8 + $0x38] sm:$0xff] }
 0x15f   :  { %938 = vmatpush.msra.mxu2 %v3002_v8  ;;  %1007 = vmatpush.msra.mxu3 %v3004_v51  ;;  %v3012_v16 = vld [vmem:[#allocation8 + $0x98] sm:$0xff] }
 0x160   :  { %782 = vmatmul.f32.vlgmr.msrb.gmra.mxu3 %v728_v57  ;;  %v3016_v57 = vld [vmem:[#allocation8 + $0x30] sm:$0xff] }
 0x161   :  { %939 = vmatpush.msra.mxu2 %v3010_v43  ;;  %1008 = vmatpush.msra.mxu3 %v3012_v16 }
 0x163   :  { %940 = vmatpush.msra.mxu2 %v3016_v57  ;;  %1009 = vmatpush.msra.mxu3 %v3018_v2 }
 0x164   :  { %v2928_v7 = vpop.f32.mrf.mxu3 }
 0x165   :  { %941 = vmatpush.msra.mxu2 %v3022_v60  ;;  %1010 = vmatpush.msra.mxu3 %v3024_v40 }
 0x167   :  { %942 = vmatpush.msra.mxu2 %v3028_v45  ;;  %1011 = vmatpush.msra.mxu3 %v3030_v9 }
 0x169   :  { %1467 = vmatpush.msrb.mxu3 %v2944_v14  ;;  %943 = vmatpush.msra.mxu2 %v3034_v34  ;;  %v3048_v14 = vpop.f32.mrf.mxu0 }
 0x16b   :  { %1468 = vmatpush.msrb.mxu3 %v2947_v22 }
 0x16c   :  { %v2930_v54 = vpop.f32.mrf.mxu3 }
 0x16d   :  { %1469 = vmatpush.msrb.mxu3 %v2952_v17 }
 0x16f   :  { %1470 = vmatpush.msrb.mxu3 %v2955_v20 }
 0x171   :  { %1471 = vmatpush.msrb.mxu3 %v2960_v26 }
 0x173   :  { %1472 = vmatpush.msrb.mxu3 %v2966_v29 }
 0x174   :  { %v2932_v61 = vpop.f32.mrf.mxu3 }
 0x175   :  { %4077 = vst [vmem:[#allocation16_spill] sm:$0xff] %v2932_v61  ;;  %1473 = vmatpush.msrb.mxu3 %v2972_v15 }
 0x177   :  { %1474 = vmatpush.msrb.mxu3 %v2980_v18 }
 0x179   :  { %1475 = vmatpush.msrb.mxu3 %v2986_v50 }
 0x17b   :  { %1476 = vmatpush.msrb.mxu3 %v2992_v12 }
 0x17c   :  { %v2934_v62 = vpop.f32.mrf.mxu3 }
 0x17d   :  { %4078 = vst [vmem:[#allocation17_spill] sm:$0xff] %v2934_v62  ;;  %v867_v62 = vld [vmem:[#allocation8 + $0x100] sm:$0xff]  ;;  %1477 = vmatpush.msrb.mxu3 %v2998_v32 }
 0x17f   :  { %1478 = vmatpush.msrb.mxu3 %v3004_v51 }
 0x181   :  { %1479 = vmatpush.msrb.mxu3 %v3012_v16 }
 0x183   :  { %1480 = vmatpush.msrb.mxu3 %v3018_v2 }
 0x184   :  { %v2936_v10 = vpop.f32.mrf.mxu3 }
 0x185   :  { %4079 = vst [vmem:[#allocation18_spill] sm:$0xff] %v2936_v10  ;;  %v868_v10 = vld [vmem:[#allocation8 + $0x108] sm:$0xff]  ;;  %1481 = vmatpush.msrb.mxu3 %v3024_v40 }
 0x187   :  { %1482 = vmatpush.msrb.mxu3 %v3030_v9 }
 0x18c   :  { %v2938_v59 = vpop.f32.mrf.mxu3 }
 0x18d   :  { %4080 = vst [vmem:[#allocation19_spill] sm:$0xff] %v2938_v59 }
 0x194   :  { %v2940_v47 = vpop.f32.mrf.mxu3 }
 0x195   :  { %4081 = vst [vmem:[#allocation20_spill] sm:$0xff] %v2940_v47 }
 0x19c   :  { %v2942_v46 = vpop.f32.mrf.mxu3 }
 0x19d   :  { %4082 = vst [vmem:[#allocation21_spill] sm:$0xff] %v2942_v46  ;;  %v3036_v46 = vld [vmem:[#allocation8 + $0x10] sm:$0xff] }
 0x19e   :  { %944 = vmatpush.msra.mxu2 %v3036_v46 }
 0x1a0   :  { %945 = vmatpush.msra.mxu2 %v3040_v25 }
 0x1a2   :  { %946 = vmatpush.msra.mxu2 %v3044_v5 }
 0x1a4   :  { %v2949_v35 = vpop.f32.mrf.mxu3  ;;  %1402 = vmatpush.msrb.mxu2 %v2958_v24 }
 0x1a5   :  { %4083 = vst [vmem:[#allocation22_spill] sm:$0xff] %v2949_v35 }
 0x1a6   :  { %1403 = vmatpush.msrb.mxu2 %v2964_v30 }
 0x1a8   :  { %1404 = vmatpush.msrb.mxu2 %v2970_v44 }
 0x1aa   :  { %1405 = vmatpush.msrb.mxu2 %v2978_v28 }
 0x1ac   :  { %v2974_v58 = vpop.f32.mrf.mxu3  ;;  %1406 = vmatpush.msrb.mxu2 %v2984_v38 }
 0x1ad   :  { %4084 = vst [vmem:[#allocation23_spill] sm:$0xff] %v2974_v58  ;;  %v869_v58 = vld [vmem:[#allocation8 + $0x110] sm:$0xff] }
 0x1ae   :  { %1074 = vmatpush.msra.mxu0 %v869_v58  ;;  %1407 = vmatpush.msrb.mxu2 %v2990_v21 }
 0x1b0   :  { %1075 = vmatpush.msra.mxu0 %v868_v10  ;;  %v3061_v10 = vpop.f32.mrf.mxu0  ;;  %1408 = vmatpush.msrb.mxu2 %v2996_v0 }
 0x1b2   :  { %1076 = vmatpush.msra.mxu0 %v867_v62  ;;  %1409 = vmatpush.msrb.mxu2 %v3002_v8 }
 0x1b4   :  { %v3006_v63 = vpop.f32.mrf.mxu3  ;;  %1410 = vmatpush.msrb.mxu2 %v3010_v43 }
 0x1b5   :  { %4085 = vst [vmem:[#allocation24_spill] sm:$0xff] %v3006_v63 }
 0x1b6   :  { %1411 = vmatpush.msrb.mxu2 %v3016_v57 }
 0x1b8   :  { %v3075_v26 = vpop.f32.mrf.mxu0  ;;  %1412 = vmatpush.msrb.mxu2 %v3022_v60 }
 0x1ba   :  { %1413 = vmatpush.msrb.mxu2 %v3028_v45 }
 0x1bc   :  { %1414 = vmatpush.msrb.mxu2 %v3034_v34 }
 0x1be   :  { %1415 = vmatpush.msrb.mxu2 %v3036_v46 }
 0x1c0   :  { %v3119_v51 = vpop.f32.mrf.mxu0  ;;  %1416 = vmatpush.msrb.mxu2 %v3040_v25 }
 0x1c2   :  { %1417 = vmatpush.msrb.mxu2 %v3044_v5 }
 0x1e1   :  { %v762_v55 = vpop.f32.mrf.mxu2 }
 0x1e2   :  { %v765_v63 = vmul.f32 0.00048828125, %v762_v55 }
 0x1e3   :  { %v783_v35 = vpop.f32.mrf.mxu3 }
 0x1e4   :  { %v787_v47 = vmul.f32 %v765_v63, %v765_v63  ;;  %v786_v59 = vmul.f32 0.00048828125, %v783_v35  ;;  %v3069_v17 = vperm.slane %v765_v63, 0 }
 0x1e6   :  { %v788_v55 = vsub.f32 %v786_v59, %v787_v47  ;;  %v791_v29 = vsub.f32 %v2814_v3, %v3069_v17  ;;  %v792_v44 = vsub.f32 %v2808_v42, %v3069_v17  ;;  %v793_v15 = vsub.f32 %v2816_v48, %v3069_v17 }
 0x1e7   :  { %v794_v58 = vsub.f32 %v2822_v53, %v3069_v17  ;;  %v795_v50 = vsub.f32 %v2833_v56, %v3069_v17  ;;  %v796_v42 = vsub.f32 %v2841_v11, %v3069_v17  ;;  %v797_v53 = vsub.f32 %v2848_v4, %v3069_v17 }
 0x1e8   :  { %v789_v61 = vmax.f32 %v788_v55, 0.0  ;;  %v798_v56 = vsub.f32 %v2855_v33, %v3069_v17  ;;  %v799_v11 = vsub.f32 %v2863_v52, %v3069_v17  ;;  %v800_v4 = vsub.f32 %v2871_v36, %v3069_v17 }
 0x1e9   :  { %v801_v33 = vsub.f32 %v2878_v37, %v3069_v17  ;;  %v802_v8 = vsub.f32 %v2885_v31, %v3069_v17  ;;  %v803_v63 = vsub.f32 %v2891_v27, %v3069_v17  ;;  %v804_v43 = vsub.f32 %v2899_v1, %v3069_v17 }
 0x1ea   :  { %v807_v35 = vadd.f32 1e-05, %v789_v61  ;;  %v805_v27 = vsub.f32 %v2904_v19, %v3069_v17  ;;  %v806_v2 = vsub.f32 %v2917_v41, %v3069_v17  ;;  %v3153_v41 = vpop.f32.mrf.mxu0 }
 0x1ec   :  { %2311 = vrsqrt.f32 %v807_v35  ;;  %vm814_vm1 = vweird.f32 %v807_v35 }
 0x1f2   :  { %v2312_v61 = vpop.eup %2311  ;;  %v3155_v34 = vpop.f32.mrf.mxu0 }
 0x1f3   :  { %v809_v62 = vmul.f32 %v2312_v61, %v807_v35  ;;  %vm815_vm0 = vweird.f32 %v2312_v61 }
 0x1f4   :  { %vm816_vm2 = vmor %vm814_vm1, %vm815_vm0 }
 0x1f5   :  { %v810_v59 = vmul.f32 %v2312_v61, %v809_v62 }
 0x1f7   :  { %v811_v47 = vmul.f32 0.5, %v810_v59 }
 0x1f9   :  { %v812_v22 = vsub.f32 1.5, %v811_v47 }
 0x1fa   :  { %v3157_v5 = vpop.f32.mrf.mxu0 }
 0x1fb   :  { %v813_v20 = vmul.f32 %v2312_v61, %v812_v22 }
 0x1fd   :  { %v817_v24 = vsel %vm816_vm2, %v2312_v61, %v813_v20 }
 0x1fe   :  { %v818_v30 = vperm.slane %v817_v24, 0 }
 0x200   :  { %v819_v28 = vmul.f32 %v818_v30, %v791_v29  ;;  %v820_v18 = vmul.f32 %v818_v30, %v792_v44  ;;  %v821_v38 = vmul.f32 %v818_v30, %v793_v15  ;;  %v822_v3 = vmul.f32 %v818_v30, %v794_v58 }
 0x201   :  { %v823_v48 = vmul.f32 %v818_v30, %v795_v50  ;;  %v3095_v21 = vmul.f32 %v818_v30, %v796_v42  ;;  %v3099_v12 = vmul.f32 %v818_v30, %v797_v53  ;;  %v3105_v0 = vmul.f32 %v818_v30, %v798_v56  ;;  %v3179_v56 = vpop.f32.mrf.mxu1 }
 0x202   :  { %883 = vst [vmem:[#allocation2 + $0x1] sm:$0xff] %v819_v28  ;;  %1012 = vmatmul.f32.vlgmr.msra.gmra.mxu3 %v819_v28  ;;  %v3109_v32 = vmul.f32 %v818_v30, %v799_v11  ;;  %v3115_v52 = vmul.f32 %v818_v30, %v800_v4  ;;  %v3122_v36 = vmul.f32 %v818_v30, %v801_v33  ;;  %v3160_v62 = vpop.f32.mrf.mxu0 }
 0x203   :  { %884 = vst [vmem:[#allocation2 + $0x9] sm:$0xff] %v820_v18  ;;  %v3128_v46 = vmul.f32 %v818_v30, %v802_v8  ;;  %v3133_v16 = vmul.f32 %v818_v30, %v803_v63  ;;  %v3138_v57 = vmul.f32 %v818_v30, %v804_v43  ;;  %v3144_v1 = vmul.f32 %v818_v30, %v805_v27 }
 0x204   :  { %885 = vst [vmem:[#allocation2 + $0x19] sm:$0xff] %v821_v38  ;;  %v3147_v60 = vmul.f32 %v818_v30, %v806_v2 }
 0x205   :  { %886 = vst [vmem:[#allocation2 + $0x21] sm:$0xff] %v822_v3 }
 0x206   :  { %887 = vst [vmem:[#allocation2 + $0x31] sm:$0xff] %v823_v48 }
 0x207   :  { %888 = vst [vmem:[#allocation2 + $0x39] sm:$0xff] %v3095_v21 }
 0x208   :  { %889 = vst [vmem:[#allocation2 + $0x49] sm:$0xff] %v3099_v12 }
 0x209   :  { %v899_v37 = vld [vmem:[#allocation2] sm:$0xff]  ;;  %890 = vst [vmem:[#allocation2 + $0x51] sm:$0xff] %v3105_v0 }
 0x20a   :  { %947 = vmatmul.f32.vlgmr.msra.gmra.mxu2 %v899_v37  ;;  %1015 = vmatmul.f32.gmra.mxu3 %v820_v18  ;;  %v915_v31 = vld [vmem:[#allocation2 + $0x2] sm:$0xff]  ;;  %891 = vst [vmem:[#allocation2 + $0x61] sm:$0xff] %v3109_v32  ;;  %v916_v40 = vld [vmem:[#allocation2 + $0xa] sm:$0xff]  ;;  %v3163_v17 = vpop.f32.mrf.mxu0  ;;  %v3194_v37 = vld [vmem:[#allocation9 + $0x78] sm:$0xff] }
 0x20b   :  { %1077 = vmatmul.f32.vlgmr.msra.gmra.mxu0 %v915_v31  ;;  %892 = vst [vmem:[#allocation2 + $0x69] sm:$0xff] %v3115_v52  ;;  %v900_v19 = vld [vmem:[#allocation2 + $0x8] sm:$0xff]  ;;  %v901_v45 = vld [vmem:[#allocation2 + $0x18] sm:$0xff]  ;;  %1216 = vmatpush.msrb.mxu1 %v3194_v37 }
 0x20c   :  { %893 = vst [vmem:[#allocation2 + $0x79] sm:$0xff] %v3122_v36  ;;  %v917_v9 = vld [vmem:[#allocation2 + $0x1a] sm:$0xff]  ;;  %v918_v55 = vld [vmem:[#allocation2 + $0x22] sm:$0xff]  ;;  %1687 = vmatpush.msrb.mxu0 %v3194_v37 }
 0x20d   :  { %894 = vst [vmem:[#allocation2 + $0x81] sm:$0xff] %v3128_v46  ;;  %v902_v25 = vld [vmem:[#allocation2 + $0x20] sm:$0xff]  ;;  %v903_v35 = vld [vmem:[#allocation2 + $0x30] sm:$0xff] }
 0x20e   :  { %895 = vst [vmem:[#allocation2 + $0x91] sm:$0xff] %v3133_v16  ;;  %v919_v61 = vld [vmem:[#allocation2 + $0x32] sm:$0xff]  ;;  %v920_v47 = vld [vmem:[#allocation2 + $0x3a] sm:$0xff] }
 0x20f   :  { %896 = vst [vmem:[#allocation2 + $0x99] sm:$0xff] %v3138_v57  ;;  %v904_v59 = vld [vmem:[#allocation2 + $0x38] sm:$0xff]  ;;  %v905_v22 = vld [vmem:[#allocation2 + $0x48] sm:$0xff] }
 0x210   :  { %897 = vst [vmem:[#allocation2 + $0xa9] sm:$0xff] %v3144_v1  ;;  %v921_v20 = vld [vmem:[#allocation2 + $0x4a] sm:$0xff]  ;;  %v922_v30 = vld [vmem:[#allocation2 + $0x52] sm:$0xff] }
 0x211   :  { %898 = vst [vmem:[#allocation2 + $0xb1] sm:$0xff] %v3147_v60  ;;  %v906_v24 = vld [vmem:[#allocation2 + $0x50] sm:$0xff]  ;;  %v907_v44 = vld [vmem:[#allocation2 + $0x60] sm:$0xff] }
 0x212   :  { %950 = vmatmul.f32.gmra.mxu2 %v900_v19  ;;  %1018 = vmatmul.f32.gmra.mxu3 %v821_v38  ;;  %v3167_v29 = vpop.f32.mrf.mxu0  ;;  %v923_v15 = vld [vmem:[#allocation2 + $0x62] sm:$0xff]  ;;  %v924_v18 = vld [vmem:[#allocation2 + $0x6a] sm:$0xff] }
 0x213   :  { %1080 = vmatmul.f32.gmra.mxu0 %v916_v40  ;;  %v908_v28 = vld [vmem:[#allocation2 + $0x68] sm:$0xff]  ;;  %v909_v50 = vld [vmem:[#allocation2 + $0x78] sm:$0xff] }
 0x214   :  { %v910_v42 = vld [vmem:[#allocation2 + $0x80] sm:$0xff]  ;;  %v3214_v19 = vld [vmem:[#allocation9 + $0x68] sm:$0xff] }
 0x215   :  { %v926_v53 = vld [vmem:[#allocation2 + $0x82] sm:$0xff]  ;;  %4089 = vst [vmem:[#allocation28_spill] sm:$0xff] %v3214_v19 }
 0x216   :  { %v928_v4 = vld [vmem:[#allocation2 + $0x9a] sm:$0xff] }
 0x218   :  { %v929_v8 = vld [vmem:[#allocation2 + $0xaa] sm:$0xff]  ;;  %v930_v43 = vld [vmem:[#allocation2 + $0xb2] sm:$0xff] }
 0x21a   :  { %953 = vmatmul.f32.gmra.mxu2 %v901_v45  ;;  %1021 = vmatmul.f32.gmra.mxu3 %v822_v3  ;;  %v3170_v58 = vpop.f32.mrf.mxu0  ;;  %v925_v3 = vld [vmem:[#allocation2 + $0x7a] sm:$0xff] }
 0x21b   :  { %1083 = vmatmul.f32.gmra.mxu0 %v917_v9 }
 0x222   :  { %956 = vmatmul.f32.gmra.mxu2 %v902_v25  ;;  %1024 = vmatmul.f32.gmra.mxu3 %v823_v48  ;;  %v3173_v38 = vpop.f32.mrf.mxu0 }
 0x223   :  { %1086 = vmatmul.f32.gmra.mxu0 %v918_v55  ;;  %v3226_v55 = vld [vmem:[#allocation9 + $0x60] sm:$0xff] }
 0x224   :  { %4090 = vst [vmem:[#allocation29_spill] sm:$0xff] %v3226_v55 }
 0x22a   :  { %959 = vmatmul.f32.gmra.mxu2 %v903_v35  ;;  %1027 = vmatmul.f32.gmra.mxu3 %v3095_v21  ;;  %v3176_v48 = vpop.f32.mrf.mxu0  ;;  %v911_v21 = vld [vmem:[#allocation2 + $0x90] sm:$0xff] }
 0x22b   :  { %1089 = vmatmul.f32.gmra.mxu0 %v919_v61 }
 0x232   :  { %962 = vmatmul.f32.gmra.mxu2 %v904_v59  ;;  %1030 = vmatmul.f32.gmra.mxu3 %v3099_v12  ;;  %v927_v12 = vld [vmem:[#allocation2 + $0x92] sm:$0xff]  ;;  %v3182_v11 = vpop.f32.mrf.mxu0 }
 0x233   :  { %1092 = vmatmul.f32.gmra.mxu0 %v920_v47 }
 0x23a   :  { %965 = vmatmul.f32.gmra.mxu2 %v905_v22  ;;  %1033 = vmatmul.f32.gmra.mxu3 %v3105_v0  ;;  %v912_v0 = vld [vmem:[#allocation2 + $0x98] sm:$0xff]  ;;  %v3187_v33 = vpop.f32.mrf.mxu0 }
 0x23b   :  { %1095 = vmatmul.f32.gmra.mxu0 %v921_v20  ;;  %4086 = vst [vmem:[#allocation25_spill] sm:$0xff] %v3187_v33  ;;  %v3238_v22 = vld [vmem:[#allocation9 + $0x58] sm:$0xff] }
 0x23c   :  { %4091 = vst [vmem:[#allocation30_spill] sm:$0xff] %v3238_v22 }
 0x242   :  { %968 = vmatmul.f32.gmra.mxu2 %v906_v24  ;;  %1036 = vmatmul.f32.gmra.mxu3 %v3109_v32  ;;  %v3185_v32 = vpop.f32.mrf.mxu1  ;;  %v3192_v63 = vpop.f32.mrf.mxu0 }
 0x243   :  { %1098 = vmatmul.f32.gmra.mxu0 %v922_v30  ;;  %4087 = vst [vmem:[#allocation26_spill] sm:$0xff] %v3192_v63 }
 0x24a   :  { %971 = vmatmul.f32.gmra.mxu2 %v907_v44  ;;  %1039 = vmatmul.f32.gmra.mxu3 %v3115_v52  ;;  %v913_v52 = vld [vmem:[#allocation2 + $0xa8] sm:$0xff] }
 0x24b   :  { %1101 = vmatmul.f32.gmra.mxu0 %v923_v15  ;;  %v3250_v15 = vld [vmem:[#allocation9 + $0x50] sm:$0xff] }
 0x24c   :  { %4092 = vst [vmem:[#allocation31_spill] sm:$0xff] %v3250_v15 }
 0x252   :  { %974 = vmatmul.f32.gmra.mxu2 %v908_v28  ;;  %1042 = vmatmul.f32.gmra.mxu3 %v3122_v36  ;;  %v3190_v36 = vpop.f32.mrf.mxu1 }
 0x253   :  { %1104 = vmatmul.f32.gmra.mxu0 %v924_v18 }
 0x25a   :  { %977 = vmatmul.f32.gmra.mxu2 %v909_v50  ;;  %1045 = vmatmul.f32.gmra.mxu3 %v3128_v46  ;;  %v914_v46 = vld [vmem:[#allocation2 + $0xb0] sm:$0xff] }
 0x25b   :  { %1107 = vmatmul.f32.gmra.mxu0 %v925_v3 }
 0x262   :  { %980 = vmatmul.f32.gmra.mxu2 %v910_v42  ;;  %1048 = vmatmul.f32.gmra.mxu3 %v3133_v16  ;;  %v3200_v16 = vpop.f32.mrf.mxu1  ;;  %v3262_v42 = vld [vmem:[#allocation9 + $0x48] sm:$0xff] }
 0x263   :  { %1110 = vmatmul.f32.gmra.mxu0 %v926_v53  ;;  %4093 = vst [vmem:[#allocation32_spill] sm:$0xff] %v3262_v42 }
 0x26a   :  { %983 = vmatmul.f32.gmra.mxu2 %v911_v21  ;;  %1051 = vmatmul.f32.gmra.mxu3 %v3138_v57  ;;  %v3204_v57 = vld [vmem:[#allocation9 + $0x70] sm:$0xff]  ;;  %v3218_v40 = vpop.f32.mrf.mxu1 }
 0x26b   :  { %1113 = vmatmul.f32.gmra.mxu0 %v927_v12  ;;  %4088 = vst [vmem:[#allocation27_spill] sm:$0xff] %v3204_v57  ;;  %1217 = vmatpush.msrb.mxu1 %v3204_v57 }
 0x26c   :  { %1688 = vmatpush.msrb.mxu0 %v3204_v57 }
 0x26d   :  { %1218 = vmatpush.msrb.mxu1 %v3214_v19 }
 0x26e   :  { %1689 = vmatpush.msrb.mxu0 %v3214_v19 }
 0x26f   :  { %1219 = vmatpush.msrb.mxu1 %v3226_v55 }
 0x270   :  { %1690 = vmatpush.msrb.mxu0 %v3226_v55 }
 0x271   :  { %1220 = vmatpush.msrb.mxu1 %v3238_v22 }
 0x272   :  { %986 = vmatmul.f32.gmra.mxu2 %v912_v0  ;;  %1054 = vmatmul.f32.gmra.mxu3 %v3144_v1  ;;  %v3230_v35 = vpop.f32.mrf.mxu1  ;;  %v3272_v0 = vld [vmem:[#allocation9 + $0x40] sm:$0xff] }
 0x273   :  { %1116 = vmatmul.f32.gmra.mxu0 %v928_v4  ;;  %1221 = vmatpush.msrb.mxu1 %v3250_v15  ;;  %4095 = vst [vmem:[#allocation34_spill] sm:$0xff] %v3272_v0 }
 0x274   :  { %1691 = vmatpush.msrb.mxu0 %v3238_v22  ;;  %v3296_v22 = vld [vmem:[#allocation9 + $0x30] sm:$0xff] }
 0x275   :  { %1222 = vmatpush.msrb.mxu1 %v3262_v42  ;;  %4100 = vst [vmem:[#allocation39_spill] sm:$0xff] %v3296_v22 }
 0x276   :  { %1692 = vmatpush.msrb.mxu0 %v3250_v15 }
 0x277   :  { %1223 = vmatpush.msrb.mxu1 %v3272_v0 }
 0x278   :  { %1693 = vmatpush.msrb.mxu0 %v3262_v42 }
 0x27a   :  { %989 = vmatmul.f32.gmra.mxu2 %v913_v52  ;;  %1057 = vmatmul.f32.gmra.mxu3 %v3147_v60  ;;  %v3246_v30 = vpop.f32.mrf.mxu1 }
 0x27b   :  { %1119 = vmatmul.f32.gmra.mxu0 %v929_v8 }
 0x27c   :  { %1694 = vmatpush.msrb.mxu0 %v3272_v0 }
 0x282   :  { %992 = vmatmul.f32.gmra.mxu2 %v914_v46  ;;  %v3258_v50 = vpop.f32.mrf.mxu1 }
 0x283   :  { %1122 = vmatmul.f32.gmra.mxu0 %v930_v43  ;;  %v3284_v43 = vld [vmem:[#allocation9 + $0x38] sm:$0xff] }
 0x284   :  { %4097 = vst [vmem:[#allocation36_spill] sm:$0xff] %v3284_v43  ;;  %1224 = vmatpush.msrb.mxu1 %v3284_v43  ;;  %1695 = vmatpush.msrb.mxu0 %v3284_v43 }
 0x285   :  { %v3198_v31 = vpop.f32.mrf.mxu3 }
 0x286   :  { %1225 = vmatpush.msrb.mxu1 %v3296_v22  ;;  %1696 = vmatpush.msrb.mxu0 %v3296_v22  ;;  %v546_v22 = vadd.f32 %v3061_v10, %v2914_v13  ;;  %v552_v13 = vadd.f32 %v3119_v51, %v2924_v49 }
 0x288   :  { %v3202_v27 = vpop.f32.mrf.mxu0 }
 0x28a   :  { %v3276_v4 = vpop.f32.mrf.mxu1 }
 0x28d   :  { %v3208_v2 = vpop.f32.mrf.mxu2  ;;  %v3210_v1 = vpop.f32.mrf.mxu3 }
 0x290   :  { %v3212_v60 = vpop.f32.mrf.mxu0 }
 0x292   :  { %v3288_v63 = vpop.f32.mrf.mxu1 }
 0x295   :  { %v3220_v45 = vpop.f32.mrf.mxu2  ;;  %v3222_v9 = vpop.f32.mrf.mxu3 }
 0x298   :  { %v3224_v25 = vpop.f32.mrf.mxu0 }
 0x29a   :  { %v3304_v19 = vpop.f32.mrf.mxu1 }
 0x29d   :  { %v3232_v61 = vpop.f32.mrf.mxu2  ;;  %v3234_v59 = vpop.f32.mrf.mxu3 }
 0x2a0   :  { %v3236_v47 = vpop.f32.mrf.mxu0 }
 0x2a2   :  { %v3322_v57 = vpop.f32.mrf.mxu1 }
 0x2a5   :  { %v3242_v20 = vpop.f32.mrf.mxu2  ;;  %v3244_v24 = vpop.f32.mrf.mxu3 }
 0x2a8   :  { %v3248_v44 = vpop.f32.mrf.mxu0 }
 0x2ad   :  { %v3254_v28 = vpop.f32.mrf.mxu2  ;;  %v3256_v18 = vpop.f32.mrf.mxu3 }
 0x2b0   :  { %v3260_v3 = vpop.f32.mrf.mxu0 }
 0x2b5   :  { %v3266_v53 = vpop.f32.mrf.mxu2  ;;  %v3268_v21 = vpop.f32.mrf.mxu3 }
 0x2b8   :  { %v3270_v12 = vpop.f32.mrf.mxu0 }
 0x2b9   :  { %4094 = vst [vmem:[#allocation33_spill] sm:$0xff] %v3270_v12  ;;  %v3308_v12 = vld [vmem:[#allocation9 + $0x28] sm:$0xff] }
 0x2ba   :  { %4103 = vst [vmem:[#allocation42_spill] sm:$0xff] %v3308_v12  ;;  %1226 = vmatpush.msrb.mxu1 %v3308_v12  ;;  %1697 = vmatpush.msrb.mxu0 %v3308_v12  ;;  %v543_v12 = vadd.f32 %v3048_v14, %v2894_v23  ;;  %v555_v23 = vadd.f32 %v3153_v41, %v2926_v39 }
 0x2bc   :  { %v3365_v41 = vadd.f32 %v3218_v40, %v555_v23  ;;  %v4109_v40 = vld [vmem:[#allocation16_spill] sm:$0xff] }
 0x2bd   :  { %v3278_v52 = vpop.f32.mrf.mxu2  ;;  %v3280_v8 = vpop.f32.mrf.mxu3 }
 0x2c0   :  { %v3282_v46 = vpop.f32.mrf.mxu0 }
 0x2c1   :  { %4096 = vst [vmem:[#allocation35_spill] sm:$0xff] %v3282_v46 }
 0x2c5   :  { %v3290_v42 = vpop.f32.mrf.mxu2  ;;  %v3292_v15 = vpop.f32.mrf.mxu3 }
 0x2c6   :  { %4098 = vst [vmem:[#allocation37_spill] sm:$0xff] %v3292_v15 }
 0x2c8   :  { %v3294_v0 = vpop.f32.mrf.mxu0 }
 0x2c9   :  { %4099 = vst [vmem:[#allocation38_spill] sm:$0xff] %v3294_v0 }
 0x2cd   :  { %v3300_v55 = vpop.f32.mrf.mxu2  ;;  %v3302_v46 = vpop.f32.mrf.mxu3 }
 0x2ce   :  { %4101 = vst [vmem:[#allocation40_spill] sm:$0xff] %v3302_v46  ;;  %v3320_v46 = vld [vmem:[#allocation9 + $0x20] sm:$0xff] }
 0x2cf   :  { %1227 = vmatpush.msrb.mxu1 %v3320_v46  ;;  %1698 = vmatpush.msrb.mxu0 %v3320_v46 }
 0x2d0   :  { %v3306_v43 = vpop.f32.mrf.mxu0 }
 0x2d1   :  { %4102 = vst [vmem:[#allocation41_spill] sm:$0xff] %v3306_v43  ;;  %v549_v43 = vadd.f32 %v3075_v26, %v2922_v6  ;;  %v3350_v26 = vadd.f32 %v3200_v16, %v552_v13  ;;  %v3395_v13 = vld [vmem:[#allocation9 + $0x10] sm:$0xff] }
 0x2d3   :  { %v958_v16 = vadd.f32 %v3242_v20, %v3350_v26 }
 0x2d5   :  { %v3312_v0 = vpop.f32.mrf.mxu2  ;;  %v3314_v15 = vpop.f32.mrf.mxu3 }
 0x2d6   :  { %4104 = vst [vmem:[#allocation43_spill] sm:$0xff] %v3312_v0  ;;  %v3341_v0 = vadd.f32 %v3190_v36, %v549_v43 }
 0x2d7   :  { %4105 = vst [vmem:[#allocation44_spill] sm:$0xff] %v3314_v15  ;;  %v3331_v15 = vadd.f32 %v3185_v32, %v546_v22  ;;  %v558_v32 = vadd.f32 %v3155_v34, %v2928_v7 }
 0x2d8   :  { %v3318_v33 = vpop.f32.mrf.mxu0  ;;  %4108 = vst [vmem:[#allocation47_spill] sm:$0xff] %v3341_v0  ;;  %v955_v51 = vadd.f32 %v3232_v61, %v3341_v0  ;;  %v961_v61 = vadd.f32 %v3254_v28, %v3365_v41 }
 0x2d9   :  { %4106 = vst [vmem:[#allocation45_spill] sm:$0xff] %v3318_v33  ;;  %v3338_v33 = vadd.f32 %v3179_v56, %v543_v12  ;;  %v952_v6 = vadd.f32 %v3220_v45, %v3331_v15  ;;  %v3356_v56 = vld [vmem:[#allocation9 + $0x18] sm:$0xff]  ;;  %v643_v45 = vpop.f32.mrf.mxu1  ;;  %v3377_v22 = vadd.f32 %v3230_v35, %v558_v32 }
 0x2da   :  { %4107 = vst [vmem:[#allocation46_spill] sm:$0xff] %v3331_v15  ;;  %1228 = vmatpush.msrb.mxu1 %v3356_v56  ;;  %1699 = vmatpush.msrb.mxu0 %v3356_v56  ;;  %v1020_v34 = vadd.f32 %v3222_v9, %v955_v51 }
 0x2db   :  { %v949_v49 = vadd.f32 %v3208_v2, %v3338_v33  ;;  %v1017_v36 = vadd.f32 %v3210_v1, %v952_v6  ;;  %v561_v2 = vadd.f32 %v3157_v5, %v2930_v54  ;;  %v564_v1 = vadd.f32 %v3160_v62, %v4109_v40 }
 0x2dc   :  { %v1023_v54 = vadd.f32 %v3234_v59, %v958_v16  ;;  %v964_v28 = vadd.f32 %v3266_v53, %v3377_v22  ;;  %v1085_v43 = vadd.f32 %v3224_v25, %v1020_v34  ;;  %v1026_v62 = vadd.f32 %v3244_v24, %v961_v61  ;;  %1229 = vmatpush.msrb.mxu1 %v3395_v13  ;;  %v4113_v24 = vld [vmem:[#allocation20_spill] sm:$0xff] }
 0x2dd   :  { %v3335_v10 = vpop.f32.mrf.mxu2  ;;  %v3347_v14 = vpop.f32.mrf.mxu3  ;;  %v1014_v7 = vadd.f32 %v3198_v31, %v949_v49  ;;  %v1082_v20 = vadd.f32 %v3212_v60, %v1017_v36  ;;  %v3386_v5 = vadd.f32 %v3246_v30, %v561_v2  ;;  %v4110_v31 = vld [vmem:[#allocation17_spill] sm:$0xff]  ;;  %v3400_v59 = vadd.f32 %v3258_v50, %v564_v1  ;;  %v4111_v30 = vld [vmem:[#allocation18_spill] sm:$0xff]  ;;  %1700 = vmatpush.msrb.mxu0 %v3395_v13  ;;  %v4116_v1 = vld [vmem:[#allocation43_spill] sm:$0xff] }
 0x2de   :  { %v567_v9 = vadd.f32 %v3163_v17, %v4110_v31  ;;  %v3397_v60 = vld [vmem:[#allocation9 + $0x8] sm:$0xff]  ;;  %v570_v23 = vadd.f32 %v3167_v29, %v4111_v30  ;;  %v576_v6 = vadd.f32 %v3173_v38, %v4113_v24  ;;  %v1088_v49 = vadd.f32 %v3236_v47, %v1023_v54  ;;  %v3417_v29 = vld [vmem:[#allocation9] sm:$0xff]  ;;  %v4123_v24 = vld [vmem:[#allocation35_spill] sm:$0xff] }
 0x2df   :  { %v1079_v35 = vadd.f32 %v3202_v27, %v1014_v7  ;;  %v967_v17 = vadd.f32 %v3278_v52, %v3386_v5  ;;  %v4112_v27 = vld [vmem:[#allocation19_spill] sm:$0xff]  ;;  %v3414_v50 = vmax.f32 %v1082_v20, 0.0  ;;  %v1029_v51 = vadd.f32 %v3256_v18, %v964_v28  ;;  %1230 = vmatpush.msrb.mxu1 %v3397_v60  ;;  %1701 = vmatpush.msrb.mxu0 %v3397_v60  ;;  %v4120_v28 = vld [vmem:[#allocation33_spill] sm:$0xff] }
 0x2e0   :  { %v3360_v39 = vpop.f32.mrf.mxu0  ;;  %v573_v25 = vadd.f32 %v3170_v58, %v4112_v27  ;;  %v3420_v52 = vadd.f32 %v3276_v4, %v567_v9  ;;  %v970_v32 = vadd.f32 %v3290_v42, %v3400_v59  ;;  %v4114_v58 = vld [vmem:[#allocation21_spill] sm:$0xff]  ;;  %v3433_v16 = vmax.f32 %v1085_v43, 0.0  ;;  %v4122_v27 = vld [vmem:[#allocation28_spill] sm:$0xff] }
 0x2e1   :  { %v579_v38 = vadd.f32 %v3176_v48, %v4114_v58  ;;  %v3431_v47 = vmax.f32 %v1079_v35, 0.0  ;;  %v1091_v4 = vadd.f32 %v3248_v44, %v1026_v62  ;;  %v3437_v18 = vadd.f32 %v3288_v63, %v570_v23  ;;  %v646_v2 = vpop.f32.mrf.mxu1  ;;  %1231 = vmatpush.msrb.mxu1 %v3417_v29  ;;  %1702 = vmatpush.msrb.mxu0 %v3417_v29  ;;  %v4121_v43 = vld [vmem:[#allocation37_spill] sm:$0xff] }
 0x2e2   :  { %v1032_v42 = vadd.f32 %v3268_v21, %v967_v17  ;;  %v973_v7 = vadd.f32 %v3300_v55, %v3420_v52  ;;  %v3445_v48 = vadd.f32 %v3304_v19, %v573_v25  ;;  %v3448_v61 = vadd.f32 %v3322_v57, %v576_v6  ;;  %v4115_v55 = vld [vmem:[#allocation22_spill] sm:$0xff] }
 0x2e3   :  { %v1164_v63 = vmul.f32 %v3414_v50, %v3414_v50  ;;  %v3452_v44 = vmax.f32 %v1088_v49, 0.0  ;;  %1237 = vmatpush.msra.mxu1 %v3194_v37  ;;  %1708 = vmatpush.msra.mxu0 %v3194_v37  ;;  %v582_v21 = vadd.f32 %v3182_v11, %v4115_v55  ;;  %v1094_v40 = vadd.f32 %v3260_v3, %v1029_v51  ;;  %v4117_v37 = vld [vmem:[#allocation27_spill] sm:$0xff]  ;;  %v4119_v3 = vld [vmem:[#allocation25_spill] sm:$0xff]  ;;  %v4124_v49 = vld [vmem:[#allocation40_spill] sm:$0xff] }
 0x2e4   :  { %v1035_v19 = vadd.f32 %v3280_v8, %v970_v32  ;;  %v976_v57 = vadd.f32 %v4116_v1, %v3437_v18  ;;  %v3462_v20 = vadd.f32 %v643_v45, %v579_v38  ;;  %v1163_v54 = vmul.f32 %v3431_v47, %v3431_v47  ;;  %v4118_v11 = vld [vmem:[#allocation23_spill] sm:$0xff] }
 0x2e5   :  { %v3381_v12 = vpop.f32.mrf.mxu2  ;;  %v3406_v53 = vpop.f32.mrf.mxu3  ;;  %v1165_v31 = vmul.f32 %v3433_v16, %v3433_v16  ;;  %v3468_v9 = vmax.f32 %v1091_v4, 0.0  ;;  %1238 = vmatpush.msra.mxu1 %v4117_v37  ;;  %1709 = vmatpush.msra.mxu0 %v4117_v37  ;;  %v585_v8 = vadd.f32 %v4119_v3, %v4118_v11  ;;  %v1097_v35 = vadd.f32 %v4120_v28, %v1032_v42  ;;  %v4125_v42 = vld [vmem:[#allocation29_spill] sm:$0xff]  ;;  %v4128_v11 = vld [vmem:[#allocation30_spill] sm:$0xff] }
 0x2e6   :  { %v1038_v45 = vadd.f32 %v4121_v43, %v973_v7  ;;  %v979_v62 = vadd.f32 %v3335_v10, %v3445_v48  ;;  %v1142_v30 = vadd.f32 %v3414_v50, %v3431_v47  ;;  %v1179_v23 = vadd.f32 %v1164_v63, %v1163_v54  ;;  %v4126_v63 = vld [vmem:[#allocation38_spill] sm:$0xff]  ;;  %v4129_v43 = vld [vmem:[#allocation41_spill] sm:$0xff] }
 0x2e7   :  { %v1166_v17 = vmul.f32 %v3452_v44, %v3452_v44  ;;  %1239 = vmatpush.msra.mxu1 %v4122_v27  ;;  %1710 = vmatpush.msra.mxu0 %v4122_v27  ;;  %v3484_v25 = vmax.f32 %v1094_v40, 0.0  ;;  %v1100_v6 = vadd.f32 %v4123_v24, %v1035_v19  ;;  %v1041_v51 = vadd.f32 %v4124_v49, %v976_v57  ;;  %v4127_v40 = vld [vmem:[#allocation44_spill] sm:$0xff]  ;;  %v4131_v27 = vld [vmem:[#allocation45_spill] sm:$0xff] }
 0x2e8   :  { %v3425_v36 = vpop.f32.mrf.mxu0  ;;  %v982_v10 = vadd.f32 %v3381_v12, %v3448_v61  ;;  %v1143_v58 = vadd.f32 %v1142_v30, %v3433_v16  ;;  %v1180_v38 = vadd.f32 %v1179_v23, %v1165_v31  ;;  %v1167_v4 = vmul.f32 %v3468_v9, %v3468_v9  ;;  %v4130_v30 = vld [vmem:[#allocation31_spill] sm:$0xff]  ;;  %v4132_v49 = vld [vmem:[#allocation32_spill] sm:$0xff] }
 0x2e9   :  { %1240 = vmatpush.msra.mxu1 %v4125_v42  ;;  %1711 = vmatpush.msra.mxu0 %v4125_v42  ;;  %v3495_v7 = vmax.f32 %v1097_v35, 0.0  ;;  %v1103_v55 = vadd.f32 %v4126_v63, %v1038_v45  ;;  %v1044_v19 = vadd.f32 %v4127_v40, %v979_v62  ;;  %v3500_v54 = vadd.f32 %v646_v2, %v582_v21  ;;  %v649_v3 = vpop.f32.mrf.mxu1 }
 0x2ea   :  { %v1144_v31 = vadd.f32 %v1143_v58, %v3452_v44  ;;  %v1181_v37 = vadd.f32 %v1180_v38, %v1166_v17  ;;  %v1168_v28 = vmul.f32 %v3484_v25, %v3484_v25  ;;  %v3507_v35 = vmax.f32 %v1100_v6, 0.0 }
 0x2eb   :  { %1241 = vmatpush.msra.mxu1 %v4128_v11  ;;  %1712 = vmatpush.msra.mxu0 %v4128_v11  ;;  %v1106_v45 = vadd.f32 %v4129_v43, %v1041_v51  ;;  %v1169_v23 = vmul.f32 %v3495_v7, %v3495_v7  ;;  %v3517_v17 = vmax.f32 %v1103_v55, 0.0  ;;  %v1109_v24 = vadd.f32 %v4131_v27, %v1044_v19  ;;  %v4136_v11 = vld [vmem:[#allocation26_spill] sm:$0xff] }
 0x2ec   :  { %v1145_v2 = vadd.f32 %v1144_v31, %v3468_v9  ;;  %v1182_v21 = vadd.f32 %v1181_v37, %v1167_v4  ;;  %v3529_v4 = vadd.f32 %v649_v3, %v585_v8  ;;  %v4134_v37 = vld [vmem:[#allocation36_spill] sm:$0xff] }
 0x2ed   :  { %v984_v34 = vpop.f32.mrf.mxu2  ;;  %v1052_v32 = vpop.f32.mrf.mxu3  ;;  %1242 = vmatpush.msra.mxu1 %v4130_v30  ;;  %1713 = vmatpush.msra.mxu0 %v4130_v30  ;;  %v3526_v58 = vmax.f32 %v1106_v45, 0.0  ;;  %v1171_v40 = vmul.f32 %v3517_v17, %v3517_v17  ;;  %v3536_v19 = vmax.f32 %v1109_v24, 0.0 }
 0x2ee   :  { %v985_v1 = vadd.f32 %v984_v34, %v3462_v20  ;;  %v1047_v34 = vadd.f32 %v3347_v14, %v982_v10  ;;  %v1146_v14 = vadd.f32 %v1145_v2, %v3484_v25  ;;  %v1183_v51 = vadd.f32 %v1182_v21, %v1168_v28 }
 0x2ef   :  { %1243 = vmatpush.msra.mxu1 %v4132_v49  ;;  %1714 = vmatpush.msra.mxu0 %v4132_v49  ;;  %v1170_v10 = vmul.f32 %v3507_v35, %v3507_v35  ;;  %v1172_v43 = vmul.f32 %v3526_v58, %v3526_v58  ;;  %v1173_v27 = vmul.f32 %v3536_v19, %v3536_v19  ;;  %v4138_v49 = vld [vmem:[#allocation42_spill] sm:$0xff] }
 0x2f0   :  { %v1117_v12 = vpop.f32.mrf.mxu0  ;;  %v1050_v6 = vadd.f32 %v3406_v53, %v985_v1  ;;  %v1112_v38 = vadd.f32 %v3360_v39, %v1047_v34  ;;  %v1147_v42 = vadd.f32 %v1146_v14, %v3495_v7  ;;  %v4133_v53 = vld [vmem:[#allocation34_spill] sm:$0xff]  ;;  %v1184_v55 = vadd.f32 %v1183_v51, %v1169_v23 }
 0x2f1   :  { %1244 = vmatpush.msra.mxu1 %v4133_v53  ;;  %1715 = vmatpush.msra.mxu0 %v4133_v53  ;;  %v652_v30 = vpop.f32.mrf.mxu1 }
 0x2f2   :  { %v1115_v1 = vadd.f32 %v3425_v36, %v1050_v6  ;;  %v1148_v39 = vadd.f32 %v1147_v42, %v3507_v35  ;;  %v1185_v28 = vadd.f32 %v1184_v55, %v1170_v10  ;;  %v3547_v45 = vmax.f32 %v1112_v38, 0.0 }
 0x2f3   :  { %1245 = vmatpush.msra.mxu1 %v4134_v37  ;;  %1716 = vmatpush.msra.mxu0 %v4134_v37 }
 0x2f4   :  { %v1149_v34 = vadd.f32 %v1148_v39, %v3517_v17  ;;  %v1186_v23 = vadd.f32 %v1185_v28, %v1171_v40  ;;  %v3554_v24 = vmax.f32 %v1115_v1, 0.0  ;;  %v1174_v51 = vmul.f32 %v3547_v45, %v3547_v45 }
 0x2f5   :  { %v987_v57 = vpop.f32.mrf.mxu2 }
 0x2f6   :  { %v988_v62 = vadd.f32 %v987_v57, %v3500_v54  ;;  %v1055_v57 = vpop.f32.mrf.mxu3  ;;  %v1150_v6 = vadd.f32 %v1149_v34, %v3526_v58  ;;  %v1175_v53 = vmul.f32 %v3554_v24, %v3554_v24 }
 0x2f8   :  { %v1053_v63 = vadd.f32 %v1052_v32, %v988_v62  ;;  %v4135_v32 = vld [vmem:[#allocation24_spill] sm:$0xff]  ;;  %v1120_v36 = vpop.f32.mrf.mxu0  ;;  %v4137_v62 = vld [vmem:[#allocation39_spill] sm:$0xff]  ;;  %v1151_v38 = vadd.f32 %v1150_v6, %v3536_v19 }
 0x2f9   :  { %v588_v3 = vadd.f32 %v4136_v11, %v4135_v32  ;;  %1246 = vmatpush.msra.mxu1 %v4137_v62  ;;  %1717 = vmatpush.msra.mxu0 %v4137_v62 }
 0x2fa   :  { %v1118_v2 = vadd.f32 %v1117_v12, %v1053_v63  ;;  %v1187_v12 = vadd.f32 %v1186_v23, %v1172_v43  ;;  %v1152_v40 = vadd.f32 %v1151_v38, %v3547_v45 }
 0x2fb   :  { %1247 = vmatpush.msra.mxu1 %v4138_v49  ;;  %1718 = vmatpush.msra.mxu0 %v4138_v49  ;;  %v3561_v10 = vadd.f32 %v652_v30, %v588_v3 }
 0x2fc   :  { %v3564_v42 = vmax.f32 %v1118_v2, 0.0  ;;  %v1188_v63 = vadd.f32 %v1187_v12, %v1173_v27 }
 0x2fd   :  { %v990_v31 = vpop.f32.mrf.mxu2  ;;  %1248 = vmatpush.msra.mxu1 %v3320_v46  ;;  %1719 = vmatpush.msra.mxu0 %v3320_v46 }
 0x2fe   :  { %v991_v8 = vadd.f32 %v990_v31, %v3529_v4  ;;  %v1189_v31 = vadd.f32 %v1188_v63, %v1174_v51  ;;  %v1058_v39 = vpop.f32.mrf.mxu3  ;;  %v1176_v46 = vmul.f32 %v3564_v42, %v3564_v42 }
 0x2ff   :  { %1249 = vmatpush.msra.mxu1 %v3356_v56  ;;  %1720 = vmatpush.msra.mxu0 %v3356_v56 }
 0x300   :  { %v1056_v21 = vadd.f32 %v1055_v57, %v991_v8  ;;  %v1153_v8 = vadd.f32 %v1152_v40, %v3554_v24  ;;  %v1190_v32 = vadd.f32 %v1189_v31, %v1175_v53  ;;  %v1123_v11 = vpop.f32.mrf.mxu0  ;;  %v3594_v53 = vld [vmem:[#allocation8 + $0x178] sm:$0xff]  ;;  %v3597_v40 = vld [vmem:[#allocation8 + $0x170] sm:$0xff]  ;;  %v3603_v31 = vld [vmem:[#allocation8 + $0x160] sm:$0xff] }
 0x301   :  { %1250 = vmatpush.msra.mxu1 %v3395_v13  ;;  %1721 = vmatpush.msra.mxu0 %v3395_v13  ;;  %4139 = vst [vmem:[#allocation16_spill] sm:$0xff] %v3594_v53 }
 0x302   :  { %v1121_v14 = vadd.f32 %v1120_v36, %v1056_v21  ;;  %v1154_v3 = vadd.f32 %v1153_v8, %v3564_v42  ;;  %v1191_v43 = vadd.f32 %v1190_v32, %v1176_v46  ;;  %4140 = vst [vmem:[#allocation17_spill] sm:$0xff] %v3597_v40  ;;  %v3608_v46 = vld [vmem:[#allocation8 + $0x150] sm:$0xff]  ;;  %v3611_v32 = vld [vmem:[#allocation8 + $0x148] sm:$0xff] }
 0x303   :  { %1251 = vmatpush.msra.mxu1 %v3397_v60  ;;  %1722 = vmatpush.msra.mxu0 %v3397_v60  ;;  %4142 = vst [vmem:[#allocation19_spill] sm:$0xff] %v3603_v31 }
 0x304   :  { %v3571_v1 = vmax.f32 %v1121_v14, 0.0  ;;  %4144 = vst [vmem:[#allocation21_spill] sm:$0xff] %v3608_v46 }
 0x305   :  { %v993_v55 = vpop.f32.mrf.mxu2  ;;  %1252 = vmatpush.msra.mxu1 %v3417_v29  ;;  %1723 = vmatpush.msra.mxu0 %v3417_v29  ;;  %4145 = vst [vmem:[#allocation22_spill] sm:$0xff] %v3611_v32 }
 0x306   :  { %v994_v57 = vadd.f32 %v993_v55, %v3561_v10  ;;  %v1177_v28 = vmul.f32 %v3571_v1, %v3571_v1  ;;  %v1155_v36 = vadd.f32 %v1154_v3, %v3571_v1 }
 0x308   :  { %v1059_v37 = vadd.f32 %v1058_v39, %v994_v57  ;;  %v1192_v13 = vadd.f32 %v1191_v43, %v1177_v28  ;;  %v3600_v57 = vld [vmem:[#allocation8 + $0x168] sm:$0xff]  ;;  %v3605_v39 = vld [vmem:[#allocation8 + $0x158] sm:$0xff]  ;;  %v3614_v28 = vld [vmem:[#allocation8 + $0x140] sm:$0xff] }
 0x309   :  { %4141 = vst [vmem:[#allocation18_spill] sm:$0xff] %v3600_v57  ;;  %v3617_v43 = vld [vmem:[#allocation8 + $0x138] sm:$0xff] }
 0x30a   :  { %v1124_v56 = vadd.f32 %v1123_v11, %v1059_v37  ;;  %4143 = vst [vmem:[#allocation20_spill] sm:$0xff] %v3605_v39 }
 0x30b   :  { %4146 = vst [vmem:[#allocation43_spill] sm:$0xff] %v3614_v28 }
 0x30c   :  { %v3587_v34 = vmax.f32 %v1124_v56, 0.0  ;;  %4147 = vst [vmem:[#allocation27_spill] sm:$0xff] %v3617_v43 }
 0x30e   :  { %v1156_v2 = vadd.f32 %v1155_v36, %v3587_v34  ;;  %v1178_v21 = vmul.f32 %v3587_v34, %v3587_v34 }
 0x310   :  { %v1157_v62 = vrot.slane %v1156_v2, 4  ;;  %v1193_v30 = vadd.f32 %v1192_v13, %v1178_v21  ;;  %v3620_v13 = vld [vmem:[#allocation8 + $0x130] sm:$0xff]  ;;  %v3623_v21 = vld [vmem:[#allocation8 + $0x128] sm:$0xff] }
 0x311   :  { %4148 = vst [vmem:[#allocation23_spill] sm:$0xff] %v3620_v13 }
 0x312   :  { %v1158_v23 = vadd.f32 %v1157_v62, %v1156_v2  ;;  %v1194_v27 = vrot.slane %v1193_v30, 4  ;;  %4149 = vst [vmem:[#allocation25_spill] sm:$0xff] %v3623_v21  ;;  %v3626_v62 = vld [vmem:[#allocation8 + $0x120] sm:$0xff] }
 0x313   :  { %4150 = vst [vmem:[#allocation33_spill] sm:$0xff] %v3626_v62 }
 0x314   :  { %v1159_v60 = vrot.slane %v1158_v23, 2  ;;  %v1195_v6 = vadd.f32 %v1194_v27, %v1193_v30 }
 0x316   :  { %v1160_v14 = vadd.f32 %v1159_v60, %v1158_v23  ;;  %v1196_v49 = vrot.slane %v1195_v6, 2  ;;  %v2319_v23 = vld [vmem:[#allocation8 + $0x118] sm:$0xff]  ;;  %v2320_v60 = vld [vmem:[#allocation8 + $0x110] sm:$0xff] }
 0x318   :  { %v1161_v12 = vrot.slane %v1160_v14, 1  ;;  %v1197_v38 = vadd.f32 %v1196_v49, %v1195_v6 }
 0x31a   :  { %v1162_v51 = vadd.f32 %v1161_v12, %v1160_v14  ;;  %v1198_v63 = vrot.slane %v1197_v38, 1  ;;  %v2321_v14 = vld [vmem:[#allocation8 + $0x108] sm:$0xff]  ;;  %v2322_v12 = vld [vmem:[#allocation8 + $0x100] sm:$0xff] }
 0x31c   :  { %1232 = vmatmul.f32.vlgmr.msrb.gmra.mxu1 %v1162_v51  ;;  %v1199_v29 = vadd.f32 %v1198_v63, %v1197_v38 }
 0x31d   :  { %1532 = vmatpush.msrb.mxu1 %v3594_v53 }
 0x31f   :  { %1533 = vmatpush.msrb.mxu1 %v3597_v40 }
 0x321   :  { %1534 = vmatpush.msrb.mxu1 %v3600_v57 }
 0x323   :  { %1535 = vmatpush.msrb.mxu1 %v3603_v31 }
 0x324   :  { %1253 = vmatmul.f32.vlgmr.msra.gmra.mxu1 %v1199_v29 }
 0x325   :  { %1536 = vmatpush.msrb.mxu1 %v3605_v39 }
 0x327   :  { %1537 = vmatpush.msrb.mxu1 %v3608_v46 }
 0x329   :  { %1538 = vmatpush.msrb.mxu1 %v3611_v32 }
 0x32b   :  { %1539 = vmatpush.msrb.mxu1 %v3614_v28 }
 0x32d   :  { %1540 = vmatpush.msrb.mxu1 %v3617_v43 }
 0x32f   :  { %1541 = vmatpush.msrb.mxu1 %v3620_v13 }
 0x331   :  { %1542 = vmatpush.msrb.mxu1 %v3623_v21 }
 0x333   :  { %1543 = vmatpush.msrb.mxu1 %v3626_v62 }
 0x335   :  { %1544 = vmatpush.msrb.mxu1 %v2319_v23 }
 0x337   :  { %1545 = vmatpush.msrb.mxu1 %v2320_v60 }
 0x339   :  { %1546 = vmatpush.msrb.mxu1 %v2321_v14 }
 0x33b   :  { %1547 = vmatpush.msrb.mxu1 %v2322_v12 }
 0x399   :  { %v1233_v55 = vpop.f32.mrf.mxu1 }
 0x39a   :  { %v1236_v8 = vmul.f32 0.00048828125, %v1233_v55 }
 0x39c   :  { %v1258_v11 = vmul.f32 %v1236_v8, %v1236_v8  ;;  %v1261_v38 = vperm.slane %v1236_v8, 0 }
 0x39e   :  { %v1266_v60 = vsub.f32 %v3468_v9, %v1261_v38  ;;  %v1267_v8 = vsub.f32 %v3484_v25, %v1261_v38  ;;  %v1271_v9 = vsub.f32 %v3526_v58, %v1261_v38  ;;  %v1272_v25 = vsub.f32 %v3536_v19, %v1261_v38 }
 0x39f   :  { %v1275_v58 = vsub.f32 %v3564_v42, %v1261_v38 }
 0x3a1   :  { %v1254_v37 = vpop.f32.mrf.mxu1 }
 0x3a2   :  { %v1257_v3 = vmul.f32 0.00048828125, %v1254_v37  ;;  %v1262_v37 = vsub.f32 %v3431_v47, %v1261_v38 }
 0x3a4   :  { %v1259_v56 = vsub.f32 %v1257_v3, %v1258_v11  ;;  %v1263_v11 = vsub.f32 %v3414_v50, %v1261_v38  ;;  %v1264_v3 = vsub.f32 %v3433_v16, %v1261_v38  ;;  %v1269_v50 = vsub.f32 %v3507_v35, %v1261_v38 }
 0x3a5   :  { %v1274_v35 = vsub.f32 %v3554_v24, %v1261_v38  ;;  %v1277_v24 = vsub.f32 %v3587_v34, %v1261_v38 }
 0x3a6   :  { %v1260_v36 = vmax.f32 %v1259_v56, 0.0  ;;  %v1265_v56 = vsub.f32 %v3452_v44, %v1261_v38  ;;  %v1270_v44 = vsub.f32 %v3517_v17, %v1261_v38 }
 0x3a8   :  { %v1278_v2 = vadd.f32 1e-05, %v1260_v36 }
 0x3aa   :  { %2313 = vrsqrt.f32 %v1278_v2  ;;  %vm1285_vm4 = vweird.f32 %v1278_v2 }
 0x3b0   :  { %v2314_v30 = vpop.eup %2313 }
 0x3b1   :  { %v1280_v27 = vmul.f32 %v2314_v30, %v1278_v2  ;;  %vm1286_vm3 = vweird.f32 %v2314_v30 }
 0x3b2   :  { %vm1287_vm5 = vmor %vm1285_vm4, %vm1286_vm3 }
 0x3b3   :  { %v1281_v6 = vmul.f32 %v2314_v30, %v1280_v27 }
 0x3b5   :  { %v1282_v49 = vmul.f32 0.5, %v1281_v6 }
 0x3b7   :  { %v1283_v51 = vsub.f32 1.5, %v1282_v49 }
 0x3b9   :  { %v1284_v63 = vmul.f32 %v2314_v30, %v1283_v51 }
 0x3bb   :  { %v1288_v29 = vsel %vm1287_vm5, %v2314_v30, %v1284_v63  ;;  %v1268_v30 = vsub.f32 %v3495_v7, %v1261_v38  ;;  %v1273_v7 = vsub.f32 %v3547_v45, %v1261_v38 }
 0x3bc   :  { %v1289_v55 = vperm.slane %v1288_v29, 0 }
 0x3be   :  { %v1290_v36 = vmul.f32 %v1289_v55, %v1262_v37  ;;  %v1291_v23 = vmul.f32 %v1289_v55, %v1263_v11  ;;  %v1292_v27 = vmul.f32 %v1289_v55, %v1264_v3  ;;  %v1293_v6 = vmul.f32 %v1289_v55, %v1265_v56 }
 0x3bf   :  { %v1294_v2 = vmul.f32 %v1289_v55, %v1266_v60  ;;  %v1295_v47 = vmul.f32 %v1289_v55, %v1267_v8  ;;  %v1296_v16 = vmul.f32 %v1289_v55, %v1268_v30  ;;  %v1297_v14 = vmul.f32 %v1289_v55, %v1269_v50 }
 0x3c0   :  { %1483 = vmatmul.f32.vlgmr.msrb.gmra.mxu3 %v1290_v36  ;;  %1354 = vst [vmem:[#allocation2 + $0x1] sm:$0xff] %v1290_v36  ;;  %v1298_v49 = vmul.f32 %v1289_v55, %v1270_v44  ;;  %v3641_v12 = vmul.f32 %v1289_v55, %v1271_v9  ;;  %v3644_v51 = vmul.f32 %v1289_v55, %v1272_v25 }
 0x3c1   :  { %1355 = vst [vmem:[#allocation2 + $0x9] sm:$0xff] %v1291_v23  ;;  %v3647_v17 = vmul.f32 %v1289_v55, %v1273_v7  ;;  %v3650_v19 = vmul.f32 %v1289_v55, %v1274_v35  ;;  %v1276_v37 = vsub.f32 %v3571_v1, %v1261_v38  ;;  %v3654_v45 = vmul.f32 %v1289_v55, %v1275_v58 }
 0x3c2   :  { %1356 = vst [vmem:[#allocation2 + $0x19] sm:$0xff] %v1292_v27  ;;  %v3661_v42 = vmul.f32 %v1289_v55, %v1277_v24 }
 0x3c3   :  { %1357 = vst [vmem:[#allocation2 + $0x21] sm:$0xff] %v1293_v6  ;;  %v3658_v11 = vmul.f32 %v1289_v55, %v1276_v37 }
 0x3c4   :  { %1358 = vst [vmem:[#allocation2 + $0x31] sm:$0xff] %v1294_v2 }
 0x3c5   :  { %1359 = vst [vmem:[#allocation2 + $0x39] sm:$0xff] %v1295_v47 }
 0x3c6   :  { %1360 = vst [vmem:[#allocation2 + $0x49] sm:$0xff] %v1296_v16 }
 0x3c7   :  { %v1370_v63 = vld [vmem:[#allocation2] sm:$0xff]  ;;  %1361 = vst [vmem:[#allocation2 + $0x51] sm:$0xff] %v1297_v14 }
 0x3c8   :  { %1418 = vmatmul.f32.vlgmr.msrb.gmra.mxu2 %v1370_v63  ;;  %1486 = vmatmul.f32.gmra.mxu3 %v1291_v23  ;;  %v1386_v29 = vld [vmem:[#allocation2 + $0x2] sm:$0xff]  ;;  %1362 = vst [vmem:[#allocation2 + $0x61] sm:$0xff] %v1298_v49  ;;  %v1387_v34 = vld [vmem:[#allocation2 + $0xa] sm:$0xff] }
 0x3c9   :  { %1548 = vmatmul.f32.vlgmr.msrb.gmra.mxu1 %v1386_v29  ;;  %1363 = vst [vmem:[#allocation2 + $0x69] sm:$0xff] %v3641_v12  ;;  %v1371_v1 = vld [vmem:[#allocation2 + $0x8] sm:$0xff]  ;;  %v1372_v38 = vld [vmem:[#allocation2 + $0x18] sm:$0xff] }
 0x3ca   :  { %1364 = vst [vmem:[#allocation2 + $0x79] sm:$0xff] %v3644_v51  ;;  %v1388_v3 = vld [vmem:[#allocation2 + $0x1a] sm:$0xff]  ;;  %v1389_v56 = vld [vmem:[#allocation2 + $0x22] sm:$0xff] }
 0x3cb   :  { %1365 = vst [vmem:[#allocation2 + $0x81] sm:$0xff] %v3647_v17  ;;  %v1373_v55 = vld [vmem:[#allocation2 + $0x20] sm:$0xff]  ;;  %v1374_v36 = vld [vmem:[#allocation2 + $0x30] sm:$0xff] }
 0x3cc   :  { %1366 = vst [vmem:[#allocation2 + $0x91] sm:$0xff] %v3650_v19  ;;  %v1390_v23 = vld [vmem:[#allocation2 + $0x32] sm:$0xff] }
 0x3cd   :  { %1367 = vst [vmem:[#allocation2 + $0x99] sm:$0xff] %v3654_v45  ;;  %v1375_v60 = vld [vmem:[#allocation2 + $0x38] sm:$0xff]  ;;  %v1376_v8 = vld [vmem:[#allocation2 + $0x48] sm:$0xff] }
 0x3ce   :  { %1368 = vst [vmem:[#allocation2 + $0xa9] sm:$0xff] %v3658_v11  ;;  %v1377_v30 = vld [vmem:[#allocation2 + $0x50] sm:$0xff] }
 0x3cf   :  { %1369 = vst [vmem:[#allocation2 + $0xb1] sm:$0xff] %v3661_v42  ;;  %v1378_v50 = vld [vmem:[#allocation2 + $0x60] sm:$0xff] }
 0x3d0   :  { %1421 = vmatmul.f32.gmra.mxu2 %v1371_v1  ;;  %1489 = vmatmul.f32.gmra.mxu3 %v1292_v27  ;;  %v1391_v27 = vld [vmem:[#allocation2 + $0x3a] sm:$0xff]  ;;  %v1379_v44 = vld [vmem:[#allocation2 + $0x68] sm:$0xff] }
 0x3d1   :  { %1551 = vmatmul.f32.gmra.mxu1 %v1387_v34 }
 0x3d2   :  { %v1396_v9 = vld [vmem:[#allocation2 + $0x7a] sm:$0xff]  ;;  %v1397_v25 = vld [vmem:[#allocation2 + $0x82] sm:$0xff] }
 0x3d4   :  { %v1398_v7 = vld [vmem:[#allocation2 + $0x92] sm:$0xff]  ;;  %v1399_v35 = vld [vmem:[#allocation2 + $0x9a] sm:$0xff] }
 0x3d5   :  { %v1384_v63 = vld [vmem:[#allocation2 + $0xa8] sm:$0xff] }
 0x3d6   :  { %v1385_v58 = vld [vmem:[#allocation2 + $0xb0] sm:$0xff] }
 0x3d7   :  { %v1401_v29 = vld [vmem:[#allocation2 + $0xb2] sm:$0xff] }
 0x3d8   :  { %1424 = vmatmul.f32.gmra.mxu2 %v1372_v38  ;;  %1492 = vmatmul.f32.gmra.mxu3 %v1293_v6  ;;  %v1392_v6 = vld [vmem:[#allocation2 + $0x4a] sm:$0xff] }
 0x3d9   :  { %1554 = vmatmul.f32.gmra.mxu1 %v1388_v3 }
 0x3e0   :  { %1427 = vmatmul.f32.gmra.mxu2 %v1373_v55  ;;  %1495 = vmatmul.f32.gmra.mxu3 %v1294_v2  ;;  %v1393_v2 = vld [vmem:[#allocation2 + $0x52] sm:$0xff] }
 0x3e1   :  { %1557 = vmatmul.f32.gmra.mxu1 %v1389_v56 }
 0x3e8   :  { %1430 = vmatmul.f32.gmra.mxu2 %v1374_v36  ;;  %1498 = vmatmul.f32.gmra.mxu3 %v1295_v47  ;;  %v1394_v47 = vld [vmem:[#allocation2 + $0x62] sm:$0xff] }
 0x3e9   :  { %1560 = vmatmul.f32.gmra.mxu1 %v1390_v23 }
 0x3f0   :  { %1433 = vmatmul.f32.gmra.mxu2 %v1375_v60  ;;  %1501 = vmatmul.f32.gmra.mxu3 %v1296_v16  ;;  %v1395_v16 = vld [vmem:[#allocation2 + $0x6a] sm:$0xff] }
 0x3f1   :  { %1563 = vmatmul.f32.gmra.mxu1 %v1391_v27 }
 0x3f8   :  { %1436 = vmatmul.f32.gmra.mxu2 %v1376_v8  ;;  %1504 = vmatmul.f32.gmra.mxu3 %v1297_v14  ;;  %v1380_v14 = vld [vmem:[#allocation2 + $0x78] sm:$0xff] }
 0x3f9   :  { %1566 = vmatmul.f32.gmra.mxu1 %v1392_v6 }
 0x400   :  { %1439 = vmatmul.f32.gmra.mxu2 %v1377_v30  ;;  %1507 = vmatmul.f32.gmra.mxu3 %v1298_v49  ;;  %v1381_v49 = vld [vmem:[#allocation2 + $0x80] sm:$0xff] }
 0x401   :  { %1569 = vmatmul.f32.gmra.mxu1 %v1393_v2 }
 0x408   :  { %1442 = vmatmul.f32.gmra.mxu2 %v1378_v50  ;;  %1510 = vmatmul.f32.gmra.mxu3 %v3641_v12  ;;  %v1382_v12 = vld [vmem:[#allocation2 + $0x90] sm:$0xff] }
 0x409   :  { %1572 = vmatmul.f32.gmra.mxu1 %v1394_v47 }
 0x410   :  { %1445 = vmatmul.f32.gmra.mxu2 %v1379_v44  ;;  %1513 = vmatmul.f32.gmra.mxu3 %v3644_v51  ;;  %v1383_v51 = vld [vmem:[#allocation2 + $0x98] sm:$0xff] }
 0x411   :  { %1575 = vmatmul.f32.gmra.mxu1 %v1395_v16 }
 0x418   :  { %1448 = vmatmul.f32.gmra.mxu2 %v1380_v14  ;;  %1516 = vmatmul.f32.gmra.mxu3 %v3647_v17  ;;  %v1400_v17 = vld [vmem:[#allocation2 + $0xaa] sm:$0xff] }
 0x419   :  { %1578 = vmatmul.f32.gmra.mxu1 %v1396_v9 }
 0x420   :  { %1451 = vmatmul.f32.gmra.mxu2 %v1381_v49  ;;  %1519 = vmatmul.f32.gmra.mxu3 %v3650_v19 }
 0x421   :  { %1581 = vmatmul.f32.gmra.mxu1 %v1397_v25 }
 0x428   :  { %1454 = vmatmul.f32.gmra.mxu2 %v1382_v12  ;;  %1522 = vmatmul.f32.gmra.mxu3 %v3654_v45 }
 0x429   :  { %1584 = vmatmul.f32.gmra.mxu1 %v1398_v7 }
 0x430   :  { %1457 = vmatmul.f32.gmra.mxu2 %v1383_v51  ;;  %1525 = vmatmul.f32.gmra.mxu3 %v3658_v11 }
 0x431   :  { %1587 = vmatmul.f32.gmra.mxu1 %v1399_v35 }
 0x438   :  { %1460 = vmatmul.f32.gmra.mxu2 %v1384_v63  ;;  %1528 = vmatmul.f32.gmra.mxu3 %v3661_v42 }
 0x439   :  { %1590 = vmatmul.f32.gmra.mxu1 %v1400_v17 }
 0x440   :  { %1463 = vmatmul.f32.gmra.mxu2 %v1385_v58 }
 0x441   :  { %1593 = vmatmul.f32.gmra.mxu1 %v1401_v29 }
 0x443   :  { %v1484_v19 = vpop.f32.mrf.mxu3 }
 0x446   :  { %v1549_v37 = vpop.f32.mrf.mxu1 }
 0x44b   :  { %v1419_v45 = vpop.f32.mrf.mxu2  ;;  %v1487_v24 = vpop.f32.mrf.mxu3 }
 0x44c   :  { %v1420_v29 = vadd.f32 %v1419_v45, %v3338_v33 }
 0x44e   :  { %v1552_v1 = vpop.f32.mrf.mxu1  ;;  %v1485_v28 = vadd.f32 %v1484_v19, %v1420_v29 }
 0x453   :  { %v1422_v34 = vpop.f32.mrf.mxu2  ;;  %v1490_v38 = vpop.f32.mrf.mxu3 }
 0x454   :  { %v1423_v17 = vadd.f32 %v1422_v34, %v3331_v15  ;;  %v1550_v15 = vadd.f32 %v1549_v37, %v1485_v28 }
 0x456   :  { %v1555_v11 = vpop.f32.mrf.mxu1  ;;  %v1488_v13 = vadd.f32 %v1487_v24, %v1423_v17 }
 0x458   :  { %v1553_v31 = vadd.f32 %v1552_v1, %v1488_v13 }
 0x45b   :  { %v1425_v3 = vpop.f32.mrf.mxu2  ;;  %v1493_v55 = vpop.f32.mrf.mxu3 }
 0x45c   :  { %v1426_v62 = vadd.f32 %v1425_v3, %v3341_v0  ;;  %v3689_v0 = vmax.f32 %v1553_v31, 0.0 }
 0x45e   :  { %v1558_v56 = vpop.f32.mrf.mxu1  ;;  %v1491_v32 = vadd.f32 %v1490_v38, %v1426_v62  ;;  %v3692_v38 = vmax.f32 %v1550_v15, 0.0 }
 0x460   :  { %v1556_v40 = vadd.f32 %v1555_v11, %v1491_v32  ;;  %v1634_v15 = vmul.f32 %v3692_v38, %v3692_v38 }
 0x463   :  { %v1428_v36 = vpop.f32.mrf.mxu2  ;;  %v1496_v23 = vpop.f32.mrf.mxu3 }
 0x464   :  { %v1429_v43 = vadd.f32 %v1428_v36, %v3350_v26  ;;  %v3694_v36 = vmax.f32 %v1556_v40, 0.0 }
 0x466   :  { %v1561_v42 = vpop.f32.mrf.mxu1  ;;  %v1494_v57 = vadd.f32 %v1493_v55, %v1429_v43  ;;  %v1636_v40 = vmul.f32 %v3694_v36, %v3694_v36 }
 0x468   :  { %v1559_v24 = vadd.f32 %v1558_v56, %v1494_v57 }
 0x46a   :  { %v3699_v37 = vmax.f32 %v1559_v24, 0.0 }
 0x46b   :  { %v1431_v60 = vpop.f32.mrf.mxu2  ;;  %v1499_v27 = vpop.f32.mrf.mxu3 }
 0x46c   :  { %v1432_v46 = vadd.f32 %v1431_v60, %v3365_v41  ;;  %v1637_v60 = vmul.f32 %v3699_v37, %v3699_v37 }
 0x46e   :  { %v1564_v8 = vpop.f32.mrf.mxu1  ;;  %v1497_v53 = vadd.f32 %v1496_v23, %v1432_v46  ;;  %v1635_v46 = vmul.f32 %v3689_v0, %v3689_v0  ;;  %v1613_v23 = vadd.f32 %v3689_v0, %v3692_v38 }
 0x470   :  { %v1562_v43 = vadd.f32 %v1561_v42, %v1497_v53  ;;  %v1650_v42 = vadd.f32 %v1635_v46, %v1634_v15 }
 0x472   :  { %v3706_v53 = vmax.f32 %v1562_v43, 0.0 }
 0x473   :  { %v1434_v6 = vpop.f32.mrf.mxu2  ;;  %v1502_v30 = vpop.f32.mrf.mxu3 }
 0x474   :  { %v1435_v34 = vadd.f32 %v1434_v6, %v3377_v22 }
 0x476   :  { %v1567_v2 = vpop.f32.mrf.mxu1  ;;  %v1500_v17 = vadd.f32 %v1499_v27, %v1435_v34 }
 0x478   :  { %v1565_v31 = vadd.f32 %v1564_v8, %v1500_v17 }
 0x47a   :  { %v3713_v27 = vmax.f32 %v1565_v31, 0.0 }
 0x47b   :  { %v1437_v50 = vpop.f32.mrf.mxu2  ;;  %v1505_v47 = vpop.f32.mrf.mxu3 }
 0x47c   :  { %v1438_v45 = vadd.f32 %v1437_v50, %v3386_v5  ;;  %v1614_v50 = vadd.f32 %v1613_v23, %v3694_v36 }
 0x47e   :  { %v1570_v44 = vpop.f32.mrf.mxu1  ;;  %v1503_v13 = vadd.f32 %v1502_v30, %v1438_v45  ;;  %v1615_v34 = vadd.f32 %v1614_v50, %v3699_v37  ;;  %v1639_v45 = vmul.f32 %v3713_v27, %v3713_v27 }
 0x480   :  { %v1568_v11 = vadd.f32 %v1567_v2, %v1503_v13  ;;  %v1616_v17 = vadd.f32 %v1615_v34, %v3706_v53 }
 0x483   :  { %v1440_v16 = vpop.f32.mrf.mxu2  ;;  %v1508_v14 = vpop.f32.mrf.mxu3 }
 0x484   :  { %v1441_v19 = vadd.f32 %v1440_v16, %v3400_v59  ;;  %v1638_v16 = vmul.f32 %v3706_v53, %v3706_v53 }
 0x486   :  { %v1573_v9 = vpop.f32.mrf.mxu1  ;;  %v1506_v57 = vadd.f32 %v1505_v47, %v1441_v19  ;;  %v1651_v47 = vadd.f32 %v1650_v42, %v1636_v40 }
 0x488   :  { %v1571_v8 = vadd.f32 %v1570_v44, %v1506_v57 }
 0x48a   :  { %v3725_v24 = vmax.f32 %v1571_v8, 0.0 }
 0x48b   :  { %v1443_v49 = vpop.f32.mrf.mxu2  ;;  %v1511_v25 = vpop.f32.mrf.mxu3 }
 0x48c   :  { %v1444_v28 = vadd.f32 %v1443_v49, %v3420_v52 }
 0x48e   :  { %v3674_v12 = vpop.f32.mrf.mxu1  ;;  %v1509_v55 = vadd.f32 %v1508_v14, %v1444_v28  ;;  %v3719_v14 = vmax.f32 %v1568_v11, 0.0 }
 0x490   :  { %v1574_v49 = vadd.f32 %v1573_v9, %v1509_v55  ;;  %v1640_v43 = vmul.f32 %v3719_v14, %v3719_v14 }
 0x492   :  { %v3733_v13 = vmax.f32 %v1574_v49, 0.0 }
 0x493   :  { %v1446_v7 = vpop.f32.mrf.mxu2  ;;  %v1514_v51 = vpop.f32.mrf.mxu3 }
 0x494   :  { %v1447_v1 = vadd.f32 %v1446_v7, %v3437_v18  ;;  %v1642_v11 = vmul.f32 %v3733_v13, %v3733_v13 }
 0x496   :  { %v3676_v35 = vpop.f32.mrf.mxu1  ;;  %v1512_v6 = vadd.f32 %v1511_v25, %v1447_v1  ;;  %v1652_v25 = vadd.f32 %v1651_v47, %v1637_v60 }
 0x49b   :  { %v1449_v63 = vpop.f32.mrf.mxu2  ;;  %v3679_v58 = vpop.f32.mrf.mxu3 }
 0x49c   :  { %v1450_v56 = vadd.f32 %v1449_v63, %v3445_v48 }
 0x49e   :  { %v3683_v21 = vpop.f32.mrf.mxu1  ;;  %v1515_v7 = vadd.f32 %v1514_v51, %v1450_v56  ;;  %v1653_v51 = vadd.f32 %v1652_v25, %v1638_v16 }
 0x4a0   :  { %v1580_v28 = vadd.f32 %v3676_v35, %v1515_v7  ;;  %v1654_v31 = vadd.f32 %v1653_v51, %v1639_v45  ;;  %v1792_v45 = vld [vmem:[#allocation8 + $0x78] sm:$0xff] }
 0x4a1   :  { %1873 = vmatpush.msra.mxu2 %v1792_v45 }
 0x4a2   :  { %v1655_v40 = vadd.f32 %v1654_v31, %v1640_v43  ;;  %v3745_v55 = vmax.f32 %v1580_v28, 0.0  ;;  %v1806_v31 = vld [vmem:[#allocation8 + $0xe8] sm:$0xff] }
 0x4a3   :  { %v1452_v39 = vpop.f32.mrf.mxu2  ;;  %v1520_v3 = vpop.f32.mrf.mxu3 }
 0x4a4   :  { %v1453_v2 = vadd.f32 %v1452_v39, %v3448_v61  ;;  %v1577_v39 = vadd.f32 %v3674_v12, %v1512_v6  ;;  %v1641_v12 = vmul.f32 %v3725_v24, %v3725_v24  ;;  %v1644_v16 = vmul.f32 %v3745_v55, %v3745_v55 }
 0x4a6   :  { %v1585_v62 = vpop.f32.mrf.mxu1  ;;  %v1518_v19 = vadd.f32 %v3679_v58, %v1453_v2  ;;  %v3739_v57 = vmax.f32 %v1577_v39, 0.0  ;;  %v1656_v60 = vadd.f32 %v1655_v40, %v1641_v12  ;;  %v1791_v39 = vld [vmem:[#allocation8 + $0x70] sm:$0xff] }
 0x4a7   :  { %1874 = vmatpush.msra.mxu2 %v1791_v39  ;;  %v1785_v39 = vld [vmem:[#allocation8 + $0x40] sm:$0xff] }
 0x4a8   :  { %v1583_v1 = vadd.f32 %v3683_v21, %v1518_v19  ;;  %v1643_v8 = vmul.f32 %v3739_v57, %v3739_v57  ;;  %v1657_v2 = vadd.f32 %v1656_v60, %v1642_v11  ;;  %v1789_v11 = vld [vmem:[#allocation8 + $0x60] sm:$0xff] }
 0x4ab   :  { %v1455_v32 = vpop.f32.mrf.mxu2  ;;  %v1523_v30 = vpop.f32.mrf.mxu3 }
 0x4ac   :  { %v1456_v44 = vadd.f32 %v1455_v32, %v3462_v20  ;;  %v1617_v32 = vadd.f32 %v1616_v17, %v3713_v27 }
 0x4ae   :  { %v1588_v63 = vpop.f32.mrf.mxu1  ;;  %v1521_v46 = vadd.f32 %v1520_v3, %v1456_v44  ;;  %v1618_v58 = vadd.f32 %v1617_v32, %v3719_v14 }
 0x4b0   :  { %v1619_v3 = vadd.f32 %v1618_v58, %v3725_v24  ;;  %v1586_v23 = vadd.f32 %v1585_v62, %v1521_v46  ;;  %v1790_v46 = vld [vmem:[#allocation8 + $0x68] sm:$0xff] }
 0x4b1   :  { %1875 = vmatpush.msra.mxu2 %v1790_v46 }
 0x4b2   :  { %v1620_v21 = vadd.f32 %v1619_v3, %v3733_v13  ;;  %v3757_v62 = vmax.f32 %v1586_v23, 0.0 }
 0x4b3   :  { %v1458_v29 = vpop.f32.mrf.mxu2  ;;  %v1526_v35 = vpop.f32.mrf.mxu3  ;;  %1876 = vmatpush.msra.mxu2 %v1789_v11 }
 0x4b4   :  { %v1459_v9 = vadd.f32 %v1458_v29, %v3500_v54  ;;  %v1621_v49 = vadd.f32 %v1620_v21, %v3739_v57  ;;  %v1658_v29 = vadd.f32 %v1657_v2, %v1643_v8  ;;  %v1646_v43 = vmul.f32 %v3757_v62, %v3757_v62  ;;  %v1788_v8 = vld [vmem:[#allocation8 + $0x58] sm:$0xff]  ;;  %v1787_v2 = vld [vmem:[#allocation8 + $0x50] sm:$0xff] }
 0x4b5   :  { %1877 = vmatpush.msra.mxu2 %v1788_v8  ;;  %v4154_v8 = vld [vmem:[#allocation19_spill] sm:$0xff] }
 0x4b6   :  { %v1524_v15 = vadd.f32 %v1523_v30, %v1459_v9  ;;  %v1591_v6 = vpop.f32.mrf.mxu1  ;;  %v3752_v30 = vmax.f32 %v1583_v1, 0.0  ;;  %v1622_v34 = vadd.f32 %v1621_v49, %v3745_v55  ;;  %v1659_v17 = vadd.f32 %v1658_v29, %v1644_v16  ;;  %v1807_v9 = vld [vmem:[#allocation8 + $0xf0] sm:$0xff] }
 0x4b7   :  { %v1803_v16 = vld [vmem:[#allocation8 + $0xd0] sm:$0xff]  ;;  %1878 = vmatpush.msra.mxu2 %v1787_v2  ;;  %v4158_v2 = vld [vmem:[#allocation43_spill] sm:$0xff] }
 0x4b8   :  { %v1589_v50 = vadd.f32 %v1588_v63, %v1524_v15  ;;  %v1645_v44 = vmul.f32 %v3752_v30, %v3752_v30  ;;  %v1808_v63 = vld [vmem:[#allocation8 + $0xf8] sm:$0xff]  ;;  %v1623_v51 = vadd.f32 %v1622_v34, %v3752_v30  ;;  %v1786_v34 = vld [vmem:[#allocation8 + $0x48] sm:$0xff] }
 0x4b9   :  { %1938 = vmatpush.msra.mxu3 %v1808_v63  ;;  %1879 = vmatpush.msra.mxu2 %v1786_v34  ;;  %v1798_v34 = vld [vmem:[#allocation8 + $0xa8] sm:$0xff] }
 0x4ba   :  { %v3762_v25 = vmax.f32 %v1589_v50, 0.0  ;;  %v1660_v58 = vadd.f32 %v1659_v17, %v1645_v44  ;;  %v1624_v1 = vadd.f32 %v1623_v51, %v3757_v62  ;;  %v1802_v44 = vld [vmem:[#allocation8 + $0xc8] sm:$0xff]  ;;  %v1801_v17 = vld [vmem:[#allocation8 + $0xc0] sm:$0xff]  ;;  %v1784_v51 = vld [vmem:[#allocation8 + $0x38] sm:$0xff] }
 0x4bb   :  { %v1461_v56 = vpop.f32.mrf.mxu2  ;;  %v1529_v12 = vpop.f32.mrf.mxu3  ;;  %1939 = vmatpush.msra.mxu3 %v1807_v9  ;;  %1880 = vmatpush.msra.mxu2 %v1785_v39  ;;  %v1780_v39 = vld [vmem:[#allocation8 + $0x18] sm:$0xff] }
 0x4bc   :  { %v1462_v42 = vadd.f32 %v1461_v56, %v3529_v4  ;;  %v1647_v15 = vmul.f32 %v3762_v25, %v3762_v25  ;;  %v1661_v3 = vadd.f32 %v1660_v58, %v1646_v43  ;;  %v1625_v23 = vadd.f32 %v1624_v1, %v3762_v25  ;;  %v1800_v43 = vld [vmem:[#allocation8 + $0xb8] sm:$0xff] }
 0x4bd   :  { %1940 = vmatpush.msra.mxu3 %v1806_v31  ;;  %v1783_v31 = vld [vmem:[#allocation8 + $0x30] sm:$0xff]  ;;  %1881 = vmatpush.msra.mxu2 %v1784_v51 }
 0x4be   :  { %v1527_v47 = vadd.f32 %v1526_v35, %v1462_v42  ;;  %v1805_v35 = vld [vmem:[#allocation8 + $0xe0] sm:$0xff]  ;;  %v1594_v56 = vpop.f32.mrf.mxu1  ;;  %v1662_v21 = vadd.f32 %v1661_v3, %v1647_v15  ;;  %v1782_v15 = vld [vmem:[#allocation8 + $0x28] sm:$0xff]  ;;  %v1795_v51 = vld [vmem:[#allocation8 + $0x90] sm:$0xff] }
 0x4bf   :  { %1941 = vmatpush.msra.mxu3 %v1805_v35  ;;  %1882 = vmatpush.msra.mxu2 %v1783_v31  ;;  %v1812_v31 = vld [vmem:[#allocation8 + $0x118] sm:$0xff] }
 0x4c0   :  { %v1592_v7 = vadd.f32 %v1591_v6, %v1527_v47  ;;  %v1804_v6 = vld [vmem:[#allocation8 + $0xd8] sm:$0xff] }
 0x4c1   :  { %1942 = vmatpush.msra.mxu3 %v1804_v6  ;;  %1883 = vmatpush.msra.mxu2 %v1782_v15  ;;  %v4155_v6 = vld [vmem:[#allocation20_spill] sm:$0xff] }
 0x4c2   :  { %v3767_v28 = vmax.f32 %v1592_v7, 0.0 }
 0x4c3   :  { %v1464_v19 = vpop.f32.mrf.mxu2  ;;  %1943 = vmatpush.msra.mxu3 %v1803_v16  ;;  %v4159_v16 = vld [vmem:[#allocation27_spill] sm:$0xff] }
 0x4c4   :  { %v1465_v32 = vadd.f32 %v1464_v19, %v3561_v10  ;;  %v1648_v42 = vmul.f32 %v3767_v28, %v3767_v28  ;;  %v1626_v50 = vadd.f32 %v1625_v23, %v3767_v28  ;;  %v4152_v23 = vld [vmem:[#allocation17_spill] sm:$0xff] }
 0x4c5   :  { %1944 = vmatpush.msra.mxu3 %v1802_v44  ;;  %v1781_v44 = vld [vmem:[#allocation8 + $0x20] sm:$0xff] }
 0x4c6   :  { %v1530_v40 = vadd.f32 %v1529_v12, %v1465_v32  ;;  %v1663_v49 = vadd.f32 %v1662_v21, %v1648_v42  ;;  %v1799_v12 = vld [vmem:[#allocation8 + $0xb0] sm:$0xff]  ;;  %v4156_v21 = vld [vmem:[#allocation21_spill] sm:$0xff]  ;;  %1884 = vmatpush.msra.mxu2 %v1781_v44 }
 0x4c7   :  { %1945 = vmatpush.msra.mxu3 %v1801_v17  ;;  %v4153_v42 = vld [vmem:[#allocation18_spill] sm:$0xff]  ;;  %v1796_v17 = vld [vmem:[#allocation8 + $0x98] sm:$0xff] }
 0x4c8   :  { %v1595_v60 = vadd.f32 %v1594_v56, %v1530_v40  ;;  %v4151_v56 = vld [vmem:[#allocation16_spill] sm:$0xff]  ;;  %1885 = vmatpush.msra.mxu2 %v1780_v39 }
 0x4c9   :  { %1946 = vmatpush.msra.mxu3 %v1800_v43  ;;  %v1778_v43 = vld [vmem:[#allocation8 + $0x8] sm:$0xff] }
 0x4ca   :  { %v3777_v47 = vmax.f32 %v1595_v60, 0.0 }
 0x4cb   :  { %1947 = vmatpush.msra.mxu3 %v1799_v12 }
 0x4cc   :  { %v1627_v7 = vadd.f32 %v1626_v50, %v3777_v47  ;;  %v1649_v29 = vmul.f32 %v3777_v47, %v3777_v47  ;;  %v4157_v50 = vld [vmem:[#allocation22_spill] sm:$0xff] }
 0x4cd   :  { %1948 = vmatpush.msra.mxu3 %v1798_v34 }
 0x4ce   :  { %v1628_v45 = vrot.slane %v1627_v7, 4  ;;  %v1664_v63 = vadd.f32 %v1663_v49, %v1649_v29  ;;  %v4160_v49 = vld [vmem:[#allocation23_spill] sm:$0xff]  ;;  %v4162_v29 = vld [vmem:[#allocation33_spill] sm:$0xff] }
 0x4d0   :  { %v1629_v19 = vadd.f32 %v1628_v45, %v1627_v7  ;;  %v1665_v9 = vrot.slane %v1664_v63, 4  ;;  %v4161_v7 = vld [vmem:[#allocation25_spill] sm:$0xff] }
 0x4d2   :  { %v1630_v32 = vrot.slane %v1629_v19, 2  ;;  %v1666_v46 = vadd.f32 %v1665_v9, %v1664_v63  ;;  %v1797_v63 = vld [vmem:[#allocation8 + $0xa0] sm:$0xff] }
 0x4d3   :  { %1949 = vmatpush.msra.mxu3 %v1797_v63 }
 0x4d4   :  { %v1631_v58 = vadd.f32 %v1630_v32, %v1629_v19  ;;  %v1667_v1 = vrot.slane %v1666_v46, 2  ;;  %v1779_v19 = vld [vmem:[#allocation8 + $0x10] sm:$0xff]  ;;  %v1794_v32 = vld [vmem:[#allocation8 + $0x88] sm:$0xff] }
 0x4d5   :  { %1950 = vmatpush.msra.mxu3 %v1796_v17  ;;  %1886 = vmatpush.msra.mxu2 %v1779_v19 }
 0x4d6   :  { %v1632_v40 = vrot.slane %v1631_v58, 1  ;;  %v1668_v35 = vadd.f32 %v1667_v1, %v1666_v46  ;;  %v1777_v46 = vld [vmem:[#allocation8] sm:$0xff] }
 0x4d7   :  { %1951 = vmatpush.msra.mxu3 %v1795_v51  ;;  %1887 = vmatpush.msra.mxu2 %v1778_v43 }
 0x4d8   :  { %v1633_v11 = vadd.f32 %v1632_v40, %v1631_v58  ;;  %v1669_v3 = vrot.slane %v1668_v35, 1  ;;  %v1811_v58 = vld [vmem:[#allocation8 + $0x110] sm:$0xff]  ;;  %v1793_v40 = vld [vmem:[#allocation8 + $0x80] sm:$0xff] }
 0x4d9   :  { %1952 = vmatpush.msra.mxu3 %v1794_v32  ;;  %1888 = vmatpush.msra.mxu2 %v1777_v46 }
 0x4da   :  { %1703 = vmatmul.f32.vlgmr.msrb.gmra.mxu0 %v1633_v11  ;;  %v1670_v60 = vadd.f32 %v1669_v3, %v1668_v35  ;;  %v1810_v11 = vld [vmem:[#allocation8 + $0x108] sm:$0xff] }
 0x4db   :  { %2003 = vmatpush.msrb.mxu0 %v4151_v56  ;;  %1953 = vmatpush.msra.mxu3 %v1793_v40  ;;  %v1809_v56 = vld [vmem:[#allocation8 + $0x100] sm:$0xff] }
 0x4dd   :  { %2004 = vmatpush.msrb.mxu0 %v4152_v23 }
 0x4df   :  { %2005 = vmatpush.msrb.mxu0 %v4153_v42 }
 0x4e1   :  { %2006 = vmatpush.msrb.mxu0 %v4154_v8 }
 0x4e2   :  { %1724 = vmatmul.f32.vlgmr.msra.gmra.mxu0 %v1670_v60 }
 0x4e3   :  { %2007 = vmatpush.msrb.mxu0 %v4155_v6 }
 0x4e5   :  { %2008 = vmatpush.msrb.mxu0 %v4156_v21 }
 0x4e7   :  { %2009 = vmatpush.msrb.mxu0 %v4157_v50 }
 0x4e9   :  { %2010 = vmatpush.msrb.mxu0 %v4158_v2 }
 0x4eb   :  { %2011 = vmatpush.msrb.mxu0 %v4159_v16 }
 0x4ed   :  { %2012 = vmatpush.msrb.mxu0 %v4160_v49 }
 0x4ef   :  { %2013 = vmatpush.msrb.mxu0 %v4161_v7 }
 0x4f1   :  { %2014 = vmatpush.msrb.mxu0 %v4162_v29 }
 0x4f3   :  { %2015 = vmatpush.msrb.mxu0 %v1812_v31 }
 0x4f5   :  { %2016 = vmatpush.msrb.mxu0 %v1811_v58 }
 0x4f7   :  { %2017 = vmatpush.msrb.mxu0 %v1810_v11 }
 0x4f9   :  { %2018 = vmatpush.msrb.mxu0 %v1809_v56 }
 0x557   :  { %v1704_v45 = vpop.f32.mrf.mxu0 }
 0x558   :  { %v1707_v9 = vmul.f32 0.00048828125, %v1704_v45 }
 0x55a   :  { %v1729_v1 = vmul.f32 %v1707_v9, %v1707_v9  ;;  %v1732_v50 = vperm.slane %v1707_v9, 0 }
 0x55c   :  { %v1733_v7 = vsub.f32 %v3692_v38, %v1732_v50  ;;  %v1734_v29 = vsub.f32 %v3689_v0, %v1732_v50  ;;  %v1735_v34 = vsub.f32 %v3694_v36, %v1732_v50  ;;  %v1736_v44 = vsub.f32 %v3699_v37, %v1732_v50 }
 0x55d   :  { %v1737_v17 = vsub.f32 %v3706_v53, %v1732_v50  ;;  %v1738_v9 = vsub.f32 %v3713_v27, %v1732_v50  ;;  %v1739_v43 = vsub.f32 %v3719_v14, %v1732_v50  ;;  %v1740_v0 = vsub.f32 %v3725_v24, %v1732_v50 }
 0x55e   :  { %v1741_v37 = vsub.f32 %v3733_v13, %v1732_v50  ;;  %v1742_v53 = vsub.f32 %v3739_v57, %v1732_v50  ;;  %v1743_v27 = vsub.f32 %v3745_v55, %v1732_v50  ;;  %v1744_v14 = vsub.f32 %v3752_v30, %v1732_v50 }
 0x55f   :  { %v1725_v12 = vpop.f32.mrf.mxu0  ;;  %v1745_v24 = vsub.f32 %v3757_v62, %v1732_v50  ;;  %v1746_v57 = vsub.f32 %v3762_v25, %v1732_v50  ;;  %v1748_v62 = vsub.f32 %v3777_v47, %v1732_v50 }
 0x560   :  { %v1728_v15 = vmul.f32 0.00048828125, %v1725_v12 }
 0x562   :  { %v1730_v35 = vsub.f32 %v1728_v15, %v1729_v1  ;;  %v1747_v15 = vsub.f32 %v3767_v28, %v1732_v50 }
 0x564   :  { %v1731_v3 = vmax.f32 %v1730_v35, 0.0 }
 0x566   :  { %v1749_v23 = vadd.f32 1e-05, %v1731_v3 }
 0x568   :  { %2315 = vrsqrt.f32 %v1749_v23  ;;  %vm1756_vm7 = vweird.f32 %v1749_v23 }
 0x56e   :  { %v2316_v42 = vpop.eup %2315 }
 0x56f   :  { %v1751_v60 = vmul.f32 %v2316_v42, %v1749_v23  ;;  %vm1757_vm6 = vweird.f32 %v2316_v42 }
 0x570   :  { %vm1758_vm8 = vmor %vm1756_vm7, %vm1757_vm6 }
 0x571   :  { %v1752_v8 = vmul.f32 %v2316_v42, %v1751_v60 }
 0x573   :  { %v1753_v6 = vmul.f32 0.5, %v1752_v8 }
 0x575   :  { %v1754_v21 = vsub.f32 1.5, %v1753_v6 }
 0x577   :  { %v1755_v2 = vmul.f32 %v2316_v42, %v1754_v21 }
 0x579   :  { %v1759_v16 = vsel %vm1758_vm8, %v2316_v42, %v1755_v2 }
 0x57a   :  { %v1760_v49 = vperm.slane %v1759_v16, 0 }
 0x57c   :  { %v1761_v45 = vmul.f32 %v1760_v49, %v1733_v7  ;;  %v1762_v63 = vmul.f32 %v1760_v49, %v1734_v29  ;;  %v1763_v39 = vmul.f32 %v1760_v49, %v1735_v34  ;;  %v1764_v19 = vmul.f32 %v1760_v49, %v1736_v44 }
 0x57d   :  { %v1765_v51 = vmul.f32 %v1760_v49, %v1737_v17  ;;  %v1766_v38 = vmul.f32 %v1760_v49, %v1738_v9  ;;  %v1767_v36 = vmul.f32 %v1760_v49, %v1739_v43  ;;  %v1768_v32 = vmul.f32 %v1760_v49, %v1740_v0 }
 0x57e   :  { %1954 = vmatmul.f32.vlgmr.msra.gmra.mxu3 %v1761_v45  ;;  %1825 = vst [vmem:[#allocation2 + $0x1] sm:$0xff] %v1761_v45  ;;  %v1769_v46 = vmul.f32 %v1760_v49, %v1741_v37  ;;  %v3805_v31 = vmul.f32 %v1760_v49, %v1742_v53  ;;  %v3808_v12 = vmul.f32 %v1760_v49, %v1743_v27  ;;  %v3841_v53 = vld [vmem:[#allocation9 + $0x70] sm:$0xff] }
 0x57f   :  { %1826 = vst [vmem:[#allocation2 + $0x9] sm:$0xff] %v1762_v63  ;;  %v3811_v13 = vmul.f32 %v1760_v49, %v1744_v14  ;;  %v3814_v55 = vmul.f32 %v1760_v49, %v1745_v24  ;;  %v3818_v30 = vmul.f32 %v1760_v49, %v1746_v57  ;;  %v3822_v40 = vmul.f32 %v1760_v49, %v1747_v15  ;;  %v3845_v24 = vld [vmem:[#allocation9 + $0x68] sm:$0xff] }
 0x580   :  { %1827 = vst [vmem:[#allocation2 + $0x19] sm:$0xff] %v1763_v39  ;;  %v3825_v25 = vmul.f32 %v1760_v49, %v1748_v62  ;;  %v3851_v62 = vld [vmem:[#allocation9 + $0x60] sm:$0xff] }
 0x581   :  { %1828 = vst [vmem:[#allocation2 + $0x21] sm:$0xff] %v1764_v19 }
 0x582   :  { %1829 = vst [vmem:[#allocation2 + $0x31] sm:$0xff] %v1765_v51 }
 0x583   :  { %1830 = vst [vmem:[#allocation2 + $0x39] sm:$0xff] %v1766_v38 }
 0x584   :  { %1831 = vst [vmem:[#allocation2 + $0x49] sm:$0xff] %v1767_v36 }
 0x585   :  { %v1841_v58 = vld [vmem:[#allocation2] sm:$0xff]  ;;  %1832 = vst [vmem:[#allocation2 + $0x51] sm:$0xff] %v1768_v32 }
 0x586   :  { %1889 = vmatmul.f32.vlgmr.msra.gmra.mxu2 %v1841_v58  ;;  %1957 = vmatmul.f32.gmra.mxu3 %v1762_v63  ;;  %v1857_v1 = vld [vmem:[#allocation2 + $0x2] sm:$0xff]  ;;  %1833 = vst [vmem:[#allocation2 + $0x61] sm:$0xff] %v1769_v46  ;;  %v1858_v47 = vld [vmem:[#allocation2 + $0xa] sm:$0xff] }
 0x587   :  { %2019 = vmatmul.f32.vlgmr.msrb.gmra.mxu0 %v1857_v1  ;;  %1834 = vst [vmem:[#allocation2 + $0x69] sm:$0xff] %v3805_v31  ;;  %v1842_v28 = vld [vmem:[#allocation2 + $0x8] sm:$0xff]  ;;  %v1843_v11 = vld [vmem:[#allocation2 + $0x18] sm:$0xff]  ;;  %v4163_v1 = vld [vmem:[#allocation46_spill] sm:$0xff] }
 0x588   :  { %1835 = vst [vmem:[#allocation2 + $0x79] sm:$0xff] %v3808_v12  ;;  %v1859_v35 = vld [vmem:[#allocation2 + $0x1a] sm:$0xff]  ;;  %v1860_v3 = vld [vmem:[#allocation2 + $0x22] sm:$0xff] }
 0x589   :  { %1836 = vst [vmem:[#allocation2 + $0x81] sm:$0xff] %v3811_v13  ;;  %v1844_v56 = vld [vmem:[#allocation2 + $0x20] sm:$0xff]  ;;  %v1845_v23 = vld [vmem:[#allocation2 + $0x30] sm:$0xff] }
 0x58a   :  { %1837 = vst [vmem:[#allocation2 + $0x91] sm:$0xff] %v3814_v55  ;;  %v1861_v42 = vld [vmem:[#allocation2 + $0x32] sm:$0xff]  ;;  %v1862_v8 = vld [vmem:[#allocation2 + $0x3a] sm:$0xff] }
 0x58b   :  { %1838 = vst [vmem:[#allocation2 + $0x99] sm:$0xff] %v3818_v30  ;;  %v1846_v60 = vld [vmem:[#allocation2 + $0x38] sm:$0xff]  ;;  %v1847_v6 = vld [vmem:[#allocation2 + $0x48] sm:$0xff] }
 0x58c   :  { %1839 = vst [vmem:[#allocation2 + $0xa9] sm:$0xff] %v3822_v40  ;;  %v1863_v21 = vld [vmem:[#allocation2 + $0x4a] sm:$0xff]  ;;  %v1864_v2 = vld [vmem:[#allocation2 + $0x52] sm:$0xff] }
 0x58d   :  { %1840 = vst [vmem:[#allocation2 + $0xb1] sm:$0xff] %v3825_v25  ;;  %v1848_v50 = vld [vmem:[#allocation2 + $0x50] sm:$0xff]  ;;  %v1849_v16 = vld [vmem:[#allocation2 + $0x60] sm:$0xff] }
 0x58e   :  { %1892 = vmatmul.f32.gmra.mxu2 %v1842_v28  ;;  %1960 = vmatmul.f32.gmra.mxu3 %v1763_v39  ;;  %v1865_v49 = vld [vmem:[#allocation2 + $0x62] sm:$0xff]  ;;  %v1866_v29 = vld [vmem:[#allocation2 + $0x6a] sm:$0xff]  ;;  %v4164_v28 = vld [vmem:[#allocation47_spill] sm:$0xff] }
 0x58f   :  { %2022 = vmatmul.f32.gmra.mxu0 %v1858_v47  ;;  %v1850_v7 = vld [vmem:[#allocation2 + $0x68] sm:$0xff]  ;;  %v1851_v34 = vld [vmem:[#allocation2 + $0x78] sm:$0xff] }
 0x590   :  { %v1867_v44 = vld [vmem:[#allocation2 + $0x7a] sm:$0xff]  ;;  %v1868_v63 = vld [vmem:[#allocation2 + $0x82] sm:$0xff] }
 0x591   :  { %v1852_v45 = vld [vmem:[#allocation2 + $0x80] sm:$0xff]  ;;  %v1853_v39 = vld [vmem:[#allocation2 + $0x90] sm:$0xff] }
 0x592   :  { %v1869_v17 = vld [vmem:[#allocation2 + $0x92] sm:$0xff]  ;;  %v1870_v9 = vld [vmem:[#allocation2 + $0x9a] sm:$0xff] }
 0x594   :  { %v1871_v43 = vld [vmem:[#allocation2 + $0xaa] sm:$0xff] }
 0x595   :  { %v1856_v0 = vld [vmem:[#allocation2 + $0xb0] sm:$0xff] }
 0x596   :  { %1895 = vmatmul.f32.gmra.mxu2 %v1843_v11  ;;  %1963 = vmatmul.f32.gmra.mxu3 %v1764_v19  ;;  %v1854_v19 = vld [vmem:[#allocation2 + $0x98] sm:$0xff] }
 0x597   :  { %2025 = vmatmul.f32.gmra.mxu0 %v1859_v35 }
 0x59e   :  { %1898 = vmatmul.f32.gmra.mxu2 %v1844_v56  ;;  %1966 = vmatmul.f32.gmra.mxu3 %v1765_v51  ;;  %v1855_v51 = vld [vmem:[#allocation2 + $0xa8] sm:$0xff]  ;;  %v3855_v56 = vld [vmem:[#allocation9 + $0x58] sm:$0xff] }
 0x59f   :  { %2028 = vmatmul.f32.gmra.mxu0 %v1860_v3 }
 0x5a6   :  { %1901 = vmatmul.f32.gmra.mxu2 %v1845_v23  ;;  %1969 = vmatmul.f32.gmra.mxu3 %v1766_v38  ;;  %v3838_v38 = vld [vmem:[#allocation9 + $0x78] sm:$0xff] }
 0x5a7   :  { %2031 = vmatmul.f32.gmra.mxu0 %v1861_v42  ;;  %2158 = vmatpush.msra.mxu1 %v3838_v38 }
 0x5a9   :  { %2159 = vmatpush.msra.mxu1 %v3841_v53 }
 0x5ab   :  { %2160 = vmatpush.msra.mxu1 %v3845_v24 }
 0x5ad   :  { %2161 = vmatpush.msra.mxu1 %v3851_v62 }
 0x5ae   :  { %1904 = vmatmul.f32.gmra.mxu2 %v1846_v60  ;;  %1972 = vmatmul.f32.gmra.mxu3 %v1767_v36  ;;  %v1872_v36 = vld [vmem:[#allocation2 + $0xb2] sm:$0xff] }
 0x5af   :  { %2034 = vmatmul.f32.gmra.mxu0 %v1862_v8  ;;  %2162 = vmatpush.msra.mxu1 %v3855_v56 }
 0x5b6   :  { %1907 = vmatmul.f32.gmra.mxu2 %v1847_v6  ;;  %1975 = vmatmul.f32.gmra.mxu3 %v1768_v32 }
 0x5b7   :  { %2037 = vmatmul.f32.gmra.mxu0 %v1863_v21  ;;  %v3859_v21 = vld [vmem:[#allocation9 + $0x50] sm:$0xff] }
 0x5b8   :  { %2163 = vmatpush.msra.mxu1 %v3859_v21 }
 0x5be   :  { %1910 = vmatmul.f32.gmra.mxu2 %v1848_v50  ;;  %1978 = vmatmul.f32.gmra.mxu3 %v1769_v46 }
 0x5bf   :  { %2040 = vmatmul.f32.gmra.mxu0 %v1864_v2 }
 0x5c6   :  { %1913 = vmatmul.f32.gmra.mxu2 %v1849_v16  ;;  %1981 = vmatmul.f32.gmra.mxu3 %v3805_v31 }
 0x5c7   :  { %2043 = vmatmul.f32.gmra.mxu0 %v1865_v49 }
 0x5ce   :  { %1916 = vmatmul.f32.gmra.mxu2 %v1850_v7  ;;  %1984 = vmatmul.f32.gmra.mxu3 %v3808_v12 }
 0x5cf   :  { %2046 = vmatmul.f32.gmra.mxu0 %v1866_v29 }
 0x5d6   :  { %1919 = vmatmul.f32.gmra.mxu2 %v1851_v34  ;;  %1987 = vmatmul.f32.gmra.mxu3 %v3811_v13  ;;  %v3863_v34 = vld [vmem:[#allocation9 + $0x48] sm:$0xff] }
 0x5d7   :  { %2049 = vmatmul.f32.gmra.mxu0 %v1867_v44  ;;  %2164 = vmatpush.msra.mxu1 %v3863_v34 }
 0x5de   :  { %1922 = vmatmul.f32.gmra.mxu2 %v1852_v45  ;;  %1990 = vmatmul.f32.gmra.mxu3 %v3814_v55 }
 0x5df   :  { %2052 = vmatmul.f32.gmra.mxu0 %v1868_v63 }
 0x5e6   :  { %1925 = vmatmul.f32.gmra.mxu2 %v1853_v39  ;;  %1993 = vmatmul.f32.gmra.mxu3 %v3818_v30  ;;  %v3866_v39 = vld [vmem:[#allocation9 + $0x40] sm:$0xff] }
 0x5e7   :  { %2055 = vmatmul.f32.gmra.mxu0 %v1869_v17  ;;  %2165 = vmatpush.msra.mxu1 %v3866_v39 }
 0x5ee   :  { %1928 = vmatmul.f32.gmra.mxu2 %v1854_v19  ;;  %1996 = vmatmul.f32.gmra.mxu3 %v3822_v40 }
 0x5ef   :  { %2058 = vmatmul.f32.gmra.mxu0 %v1870_v9 }
 0x5f6   :  { %1931 = vmatmul.f32.gmra.mxu2 %v1855_v51  ;;  %1999 = vmatmul.f32.gmra.mxu3 %v3825_v25  ;;  %v3869_v51 = vld [vmem:[#allocation9 + $0x38] sm:$0xff] }
 0x5f7   :  { %2061 = vmatmul.f32.gmra.mxu0 %v1871_v43  ;;  %2166 = vmatpush.msra.mxu1 %v3869_v51 }
 0x5fe   :  { %1934 = vmatmul.f32.gmra.mxu2 %v1856_v0 }
 0x5ff   :  { %2064 = vmatmul.f32.gmra.mxu0 %v1872_v36  ;;  %v3874_v36 = vld [vmem:[#allocation9 + $0x30] sm:$0xff] }
 0x600   :  { %2167 = vmatpush.msra.mxu1 %v3874_v36 }
 0x601   :  { %v1955_v37 = vpop.f32.mrf.mxu3 }
 0x604   :  { %v2020_v32 = vpop.f32.mrf.mxu0 }
 0x609   :  { %v1890_v46 = vpop.f32.mrf.mxu2  ;;  %v1958_v27 = vpop.f32.mrf.mxu3 }
 0x60a   :  { %v1891_v31 = vadd.f32 %v1890_v46, %v3338_v33 }
 0x60c   :  { %v1956_v14 = vadd.f32 %v1955_v37, %v1891_v31  ;;  %v2023_v12 = vpop.f32.mrf.mxu0 }
 0x60e   :  { %v3848_v58 = vadd.f32 %v2020_v32, %v1956_v14 }
 0x611   :  { %v1893_v13 = vpop.f32.mrf.mxu2  ;;  %v1961_v57 = vpop.f32.mrf.mxu3 }
 0x612   :  { %v1894_v55 = vadd.f32 %v1893_v13, %v4163_v1  ;;  %v3884_v13 = vld [vmem:[#allocation9 + $0x20] sm:$0xff] }
 0x614   :  { %v1959_v15 = vadd.f32 %v1958_v27, %v1894_v55  ;;  %v2026_v30 = vpop.f32.mrf.mxu0  ;;  %v3879_v27 = vld [vmem:[#allocation9 + $0x28] sm:$0xff]  ;;  %v3887_v55 = vld [vmem:[#allocation9 + $0x18] sm:$0xff] }
 0x615   :  { %2168 = vmatpush.msra.mxu1 %v3879_v27 }
 0x616   :  { %v2024_v40 = vadd.f32 %v2023_v12, %v1959_v15 }
 0x617   :  { %2169 = vmatpush.msra.mxu1 %v3884_v13 }
 0x619   :  { %v1896_v33 = vpop.f32.mrf.mxu2  ;;  %v1964_v25 = vpop.f32.mrf.mxu3  ;;  %2170 = vmatpush.msra.mxu1 %v3887_v55 }
 0x61a   :  { %v1897_v47 = vadd.f32 %v1896_v33, %v4164_v28  ;;  %v3895_v28 = vld [vmem:[#allocation9 + $0x8] sm:$0xff] }
 0x61c   :  { %v1962_v11 = vadd.f32 %v1961_v57, %v1897_v47  ;;  %v2029_v35 = vpop.f32.mrf.mxu0 }
 0x61e   :  { %v2027_v3 = vadd.f32 %v2026_v30, %v1962_v11 }
 0x621   :  { %v1899_v23 = vpop.f32.mrf.mxu2  ;;  %v1967_v42 = vpop.f32.mrf.mxu3 }
 0x622   :  { %v1900_v60 = vadd.f32 %v1899_v23, %v3350_v26  ;;  %v3901_v23 = vld [vmem:[#allocation9] sm:$0xff] }
 0x624   :  { %v1965_v8 = vadd.f32 %v1964_v25, %v1900_v60  ;;  %v2032_v6 = vpop.f32.mrf.mxu0  ;;  %v3893_v25 = vld [vmem:[#allocation9 + $0x10] sm:$0xff] }
 0x625   :  { %2171 = vmatpush.msra.mxu1 %v3893_v25 }
 0x626   :  { %v2030_v50 = vadd.f32 %v2029_v35, %v1965_v8  ;;  %v3899_v35 = vmax.f32 %v2024_v40, 0.0 }
 0x627   :  { %2172 = vmatpush.msra.mxu1 %v3895_v28 }
 0x628   :  { %v2106_v40 = vmul.f32 %v3899_v35, %v3899_v35 }
 0x629   :  { %v1902_v2 = vpop.f32.mrf.mxu2  ;;  %v1970_v16 = vpop.f32.mrf.mxu3  ;;  %2173 = vmatpush.msra.mxu1 %v3901_v23 }
 0x62a   :  { %v1903_v49 = vadd.f32 %v1902_v2, %v3365_v41 }
 0x62b   :  { %2179 = vmatpush.msrb.mxu1 %v3838_v38 }
 0x62c   :  { %v1968_v7 = vadd.f32 %v1967_v42, %v1903_v49  ;;  %v2035_v29 = vpop.f32.mrf.mxu0 }
 0x62d   :  { %2180 = vmatpush.msrb.mxu1 %v3841_v53 }
 0x62e   :  { %v2033_v44 = vadd.f32 %v2032_v6, %v1968_v7  ;;  %v3910_v6 = vmax.f32 %v2027_v3, 0.0 }
 0x62f   :  { %2181 = vmatpush.msrb.mxu1 %v3845_v24 }
 0x631   :  { %v1905_v45 = vpop.f32.mrf.mxu2  ;;  %v1973_v26 = vpop.f32.mrf.mxu3  ;;  %2182 = vmatpush.msrb.mxu1 %v3851_v62 }
 0x632   :  { %v1906_v33 = vadd.f32 %v1905_v45, %v3377_v22  ;;  %v3908_v22 = vmax.f32 %v3848_v58, 0.0  ;;  %v3925_v45 = vmax.f32 %v2033_v44, 0.0 }
 0x633   :  { %2183 = vmatpush.msrb.mxu1 %v3855_v56 }
 0x634   :  { %v2038_v63 = vpop.f32.mrf.mxu0  ;;  %v1971_v42 = vadd.f32 %v1970_v16, %v1906_v33  ;;  %v2105_v3 = vmul.f32 %v3908_v22, %v3908_v22 }
 0x635   :  { %2184 = vmatpush.msrb.mxu1 %v3859_v21 }
 0x636   :  { %v2036_v16 = vadd.f32 %v2035_v29, %v1971_v42  ;;  %v2121_v29 = vadd.f32 %v2106_v40, %v2105_v3 }
 0x637   :  { %2185 = vmatpush.msrb.mxu1 %v3863_v34 }
 0x639   :  { %v1908_v17 = vpop.f32.mrf.mxu2  ;;  %v1976_v19 = vpop.f32.mrf.mxu3  ;;  %2186 = vmatpush.msrb.mxu1 %v3866_v39 }
 0x63a   :  { %v1909_v47 = vadd.f32 %v1908_v17, %v3386_v5 }
 0x63b   :  { %2187 = vmatpush.msrb.mxu1 %v3869_v51 }
 0x63c   :  { %v2041_v9 = vpop.f32.mrf.mxu0  ;;  %v1974_v5 = vadd.f32 %v1973_v26, %v1909_v47 }
 0x63d   :  { %2188 = vmatpush.msrb.mxu1 %v3874_v36 }
 0x63e   :  { %v2039_v26 = vadd.f32 %v2038_v63, %v1974_v5 }
 0x63f   :  { %2189 = vmatpush.msrb.mxu1 %v3879_v27 }
 0x641   :  { %v1911_v41 = vpop.f32.mrf.mxu2  ;;  %v1979_v43 = vpop.f32.mrf.mxu3  ;;  %2190 = vmatpush.msrb.mxu1 %v3884_v13 }
 0x642   :  { %v1912_v60 = vadd.f32 %v1911_v41, %v3400_v59  ;;  %v3917_v59 = vmax.f32 %v2030_v50, 0.0  ;;  %v2084_v50 = vadd.f32 %v3899_v35, %v3908_v22 }
 0x643   :  { %2191 = vmatpush.msrb.mxu1 %v3887_v55 }
 0x644   :  { %v3872_v0 = vpop.f32.mrf.mxu0  ;;  %v1977_v7 = vadd.f32 %v1976_v19, %v1912_v60  ;;  %v3933_v19 = vmax.f32 %v2036_v16, 0.0  ;;  %v2085_v44 = vadd.f32 %v2084_v50, %v3910_v6 }
 0x645   :  { %2192 = vmatpush.msrb.mxu1 %v3893_v25 }
 0x646   :  { %v2042_v41 = vadd.f32 %v2041_v9, %v1977_v7  ;;  %v2086_v9 = vadd.f32 %v2085_v44, %v3917_v59 }
 0x647   :  { %2193 = vmatpush.msrb.mxu1 %v3895_v28 }
 0x648   :  { %v3948_v62 = vmax.f32 %v2042_v41, 0.0  ;;  %v2087_v60 = vadd.f32 %v2086_v9, %v3925_v45 }
 0x649   :  { %v1914_v37 = vpop.f32.mrf.mxu2  ;;  %v1982_v32 = vpop.f32.mrf.mxu3  ;;  %2194 = vmatpush.msrb.mxu1 %v3901_v23 }
 0x64a   :  { %v1915_v2 = vadd.f32 %v1914_v37, %v3420_v52  ;;  %v2107_v52 = vmul.f32 %v3910_v6, %v3910_v6 }
 0x64c   :  { %v3877_v46 = vpop.f32.mrf.mxu0  ;;  %v1980_v17 = vadd.f32 %v1979_v43, %v1915_v2  ;;  %v2122_v63 = vadd.f32 %v2121_v29, %v2107_v52 }
 0x64e   :  { %v2045_v24 = vadd.f32 %v3872_v0, %v1980_v17 }
 0x650   :  { %v3956_v56 = vmax.f32 %v2045_v24, 0.0 }
 0x651   :  { %v1917_v31 = vpop.f32.mrf.mxu2  ;;  %v1985_v14 = vpop.f32.mrf.mxu3 }
 0x652   :  { %v1918_v58 = vadd.f32 %v1917_v31, %v3437_v18  ;;  %v2108_v18 = vmul.f32 %v3917_v59, %v3917_v59  ;;  %v3940_v31 = vmax.f32 %v2039_v26, 0.0 }
 0x654   :  { %v3882_v12 = vpop.f32.mrf.mxu0  ;;  %v1983_v37 = vadd.f32 %v1982_v32, %v1918_v58  ;;  %v2123_v42 = vadd.f32 %v2122_v63, %v2108_v18 }
 0x659   :  { %v1920_v57 = vpop.f32.mrf.mxu2  ;;  %v1988_v1 = vpop.f32.mrf.mxu3 }
 0x65a   :  { %v1921_v38 = vadd.f32 %v1920_v57, %v3445_v48  ;;  %v2109_v48 = vmul.f32 %v3925_v45, %v3925_v45 }
 0x65c   :  { %v3889_v15 = vpop.f32.mrf.mxu0  ;;  %v1986_v57 = vadd.f32 %v1985_v14, %v1921_v38  ;;  %v2124_v5 = vadd.f32 %v2123_v42, %v2109_v48 }
 0x65e   :  { %v2051_v2 = vadd.f32 %v3882_v12, %v1986_v57  ;;  %v2113_v12 = vmul.f32 %v3956_v56, %v3956_v56 }
 0x661   :  { %v1923_v30 = vpop.f32.mrf.mxu2  ;;  %v1991_v11 = vpop.f32.mrf.mxu3 }
 0x662   :  { %v1924_v43 = vadd.f32 %v1923_v30, %v3448_v61  ;;  %v2110_v61 = vmul.f32 %v3933_v19, %v3933_v19  ;;  %v2048_v30 = vadd.f32 %v3877_v46, %v1983_v37 }
 0x664   :  { %v3904_v8 = vpop.f32.mrf.mxu0  ;;  %v1989_v0 = vadd.f32 %v1988_v1, %v1924_v43  ;;  %v2125_v46 = vadd.f32 %v2124_v5, %v2110_v61  ;;  %v2112_v1 = vmul.f32 %v3948_v62, %v3948_v62 }
 0x666   :  { %v2054_v16 = vadd.f32 %v3889_v15, %v1989_v0 }
 0x668   :  { %v3979_v29 = vmax.f32 %v2054_v16, 0.0 }
 0x669   :  { %v1926_v49 = vpop.f32.mrf.mxu2  ;;  %v1994_v53 = vpop.f32.mrf.mxu3 }
 0x66a   :  { %v1927_v32 = vadd.f32 %v1926_v49, %v3462_v20  ;;  %v2111_v20 = vmul.f32 %v3940_v31, %v3940_v31  ;;  %v2088_v49 = vadd.f32 %v2087_v60, %v3933_v19  ;;  %v2116_v43 = vmul.f32 %v3979_v29, %v3979_v29 }
 0x66c   :  { %v2059_v33 = vpop.f32.mrf.mxu0  ;;  %v1992_v40 = vadd.f32 %v1991_v11, %v1927_v32  ;;  %v2089_v21 = vadd.f32 %v2088_v49, %v3940_v31  ;;  %v2126_v58 = vadd.f32 %v2125_v46, %v2111_v20  ;;  %v3970_v11 = vmax.f32 %v2051_v2, 0.0 }
 0x66e   :  { %v2090_v52 = vadd.f32 %v2089_v21, %v3948_v62  ;;  %v2057_v26 = vadd.f32 %v3904_v8, %v1992_v40  ;;  %v2127_v15 = vadd.f32 %v2126_v58, %v2112_v1  ;;  %v2115_v8 = vmul.f32 %v3970_v11, %v3970_v11 }
 0x670   :  { %v2091_v50 = vadd.f32 %v2090_v52, %v3956_v56  ;;  %v2128_v37 = vadd.f32 %v2127_v15, %v2113_v12  ;;  %v3985_v51 = vmax.f32 %v2057_v26, 0.0 }
 0x671   :  { %v1929_v47 = vpop.f32.mrf.mxu2  ;;  %v1997_v34 = vpop.f32.mrf.mxu3 }
 0x672   :  { %v1930_v14 = vadd.f32 %v1929_v47, %v3500_v54  ;;  %v3963_v54 = vmax.f32 %v2048_v30, 0.0 }
 0x674   :  { %v1995_v7 = vadd.f32 %v1994_v53, %v1930_v14  ;;  %v2114_v39 = vmul.f32 %v3963_v54, %v3963_v54  ;;  %v2062_v38 = vpop.f32.mrf.mxu0 }
 0x676   :  { %v2060_v18 = vadd.f32 %v2059_v33, %v1995_v7  ;;  %v2129_v44 = vadd.f32 %v2128_v37, %v2114_v39  ;;  %v2117_v33 = vmul.f32 %v3985_v51, %v3985_v51 }
 0x678   :  { %v3991_v48 = vmax.f32 %v2060_v18, 0.0  ;;  %v2130_v36 = vadd.f32 %v2129_v44, %v2115_v8 }
 0x679   :  { %v1932_v3 = vpop.f32.mrf.mxu2  ;;  %v2000_v9 = vpop.f32.mrf.mxu3 }
 0x67a   :  { %v1933_v17 = vadd.f32 %v1932_v3, %v3529_v4  ;;  %v2092_v4 = vadd.f32 %v2091_v50, %v3963_v54  ;;  %v2131_v32 = vadd.f32 %v2130_v36, %v2116_v43  ;;  %v2118_v13 = vmul.f32 %v3991_v48, %v3991_v48 }
 0x67c   :  { %v1998_v41 = vadd.f32 %v1997_v34, %v1933_v17  ;;  %v2093_v63 = vadd.f32 %v2092_v4, %v3970_v11  ;;  %v2065_v30 = vpop.f32.mrf.mxu0  ;;  %v2132_v60 = vadd.f32 %v2131_v32, %v2117_v33 }
 0x67e   :  { %v2063_v53 = vadd.f32 %v2062_v38, %v1998_v41  ;;  %v2094_v57 = vadd.f32 %v2093_v63, %v3979_v29  ;;  %v2133_v55 = vadd.f32 %v2132_v60, %v2118_v13 }
 0x680   :  { %v3997_v47 = vmax.f32 %v2063_v53, 0.0  ;;  %v2095_v42 = vadd.f32 %v2094_v57, %v3985_v51 }
 0x681   :  { %v1935_v24 = vpop.f32.mrf.mxu2 }
 0x682   :  { %v1936_v27 = vadd.f32 %v1935_v24, %v3561_v10  ;;  %v2096_v0 = vadd.f32 %v2095_v42, %v3991_v48  ;;  %v2119_v14 = vmul.f32 %v3997_v47, %v3997_v47 }
 0x684   :  { %v2001_v61 = vadd.f32 %v2000_v9, %v1936_v27  ;;  %v2097_v5 = vadd.f32 %v2096_v0, %v3997_v47  ;;  %v2134_v2 = vadd.f32 %v2133_v55, %v2119_v14 }
 0x686   :  { %v2066_v10 = vadd.f32 %v2065_v30, %v2001_v61 }
 0x688   :  { %v4010_v20 = vmax.f32 %v2066_v10, 0.0 }
 0x68a   :  { %v2098_v25 = vadd.f32 %v2097_v5, %v4010_v20  ;;  %v2120_v49 = vmul.f32 %v4010_v20, %v4010_v20 }
 0x68c   :  { %v2099_v40 = vrot.slane %v2098_v25, 4  ;;  %v2135_v46 = vadd.f32 %v2134_v2, %v2120_v49 }
 0x68e   :  { %v2100_v1 = vadd.f32 %v2099_v40, %v2098_v25  ;;  %v2136_v21 = vrot.slane %v2135_v46, 4 }
 0x690   :  { %v2101_v16 = vrot.slane %v2100_v1, 2  ;;  %v2137_v7 = vadd.f32 %v2136_v21, %v2135_v46 }
 0x692   :  { %v2102_v28 = vadd.f32 %v2101_v16, %v2100_v1  ;;  %v2138_v58 = vrot.slane %v2137_v7, 2 }
 0x694   :  { %v2103_v12 = vrot.slane %v2102_v28, 1  ;;  %v2139_v3 = vadd.f32 %v2138_v58, %v2137_v7 }
 0x696   :  { %v2104_v34 = vadd.f32 %v2103_v12, %v2102_v28  ;;  %v2140_v52 = vrot.slane %v2139_v3, 1 }
 0x698   :  { %2174 = vmatmul.f32.vlgmr.msra.gmra.mxu1 %v2104_v34  ;;  %v2141_v23 = vadd.f32 %v2140_v52, %v2139_v3 }
 0x6a0   :  { %2195 = vmatmul.f32.vlgmr.msrb.gmra.mxu1 %v2141_v23 }
 0x715   :  { %v2175_v26 = vpop.f32.mrf.mxu1 }
 0x716   :  { %v2178_v17 = vmul.f32 0.00048828125, %v2175_v26 }
 0x718   :  { %v2200_v39 = vmul.f32 %v2178_v17, %v2178_v17  ;;  %v2203_v63 = vperm.slane %v2178_v17, 0 }
 0x71a   :  { %v2204_v57 = vsub.f32 %v3908_v22, %v2203_v63  ;;  %v2205_v33 = vsub.f32 %v3899_v35, %v2203_v63  ;;  %v2206_v27 = vsub.f32 %v3910_v6, %v2203_v63  ;;  %v2207_v9 = vsub.f32 %v3917_v59, %v2203_v63 }
 0x71b   :  { %v2208_v32 = vsub.f32 %v3925_v45, %v2203_v63  ;;  %v2209_v30 = vsub.f32 %v3933_v19, %v2203_v63  ;;  %v2210_v0 = vsub.f32 %v3940_v31, %v2203_v63  ;;  %v2211_v22 = vsub.f32 %v3948_v62, %v2203_v63 }
 0x71c   :  { %v2212_v35 = vsub.f32 %v3956_v56, %v2203_v63  ;;  %v2213_v59 = vsub.f32 %v3963_v54, %v2203_v63  ;;  %v2214_v55 = vsub.f32 %v3970_v11, %v2203_v63  ;;  %v2215_v31 = vsub.f32 %v3979_v29, %v2203_v63 }
 0x71d   :  { %v2196_v15 = vpop.f32.mrf.mxu1  ;;  %v2216_v62 = vsub.f32 %v3985_v51, %v2203_v63  ;;  %v2217_v56 = vsub.f32 %v3991_v48, %v2203_v63  ;;  %v2218_v54 = vsub.f32 %v3997_v47, %v2203_v63  ;;  %v2219_v11 = vsub.f32 %v4010_v20, %v2203_v63 }
 0x71e   :  { %v2199_v38 = vmul.f32 0.00048828125, %v2196_v15 }
 0x720   :  { %v2201_v50 = vsub.f32 %v2199_v38, %v2200_v39 }
 0x722   :  { %v2202_v18 = vmax.f32 %v2201_v50, 0.0 }
 0x724   :  { %v2220_v41 = vadd.f32 1e-05, %v2202_v18 }
 0x726   :  { %2317 = vrsqrt.f32 %v2220_v41  ;;  %vm2227_vm10 = vweird.f32 %v2220_v41 }
 0x72c   :  { %v2318_v37 = vpop.eup %2317 }
 0x72d   :  { %v2222_v8 = vmul.f32 %v2318_v37, %v2220_v41  ;;  %vm2228_vm9 = vweird.f32 %v2318_v37 }
 0x72e   :  { %vm2229_vm11 = vmor %vm2227_vm10, %vm2228_vm9 }
 0x72f   :  { %v2223_v4 = vmul.f32 %v2318_v37, %v2222_v8 }
 0x731   :  { %v2224_v53 = vmul.f32 0.5, %v2223_v4 }
 0x733   :  { %v2225_v44 = vsub.f32 1.5, %v2224_v53 }
 0x735   :  { %v2226_v43 = vmul.f32 %v2318_v37, %v2225_v44 }
 0x737   :  { %v2230_v36 = vsel %vm2229_vm11, %v2318_v37, %v2226_v43 }
 0x738   :  { %v2231_v24 = vperm.slane %v2230_v36, 0 }
 0x73a   :  { %v2232_v42 = vmul.f32 %v2231_v24, %v2204_v57  ;;  %v2233_v13 = vmul.f32 %v2231_v24, %v2205_v33  ;;  %v2234_v61 = vmul.f32 %v2231_v24, %v2206_v27  ;;  %v2235_v60 = vmul.f32 %v2231_v24, %v2207_v9 }
 0x73b   :  { %v2236_v14 = vmul.f32 %v2231_v24, %v2208_v32  ;;  %v2237_v10 = vmul.f32 %v2231_v24, %v2209_v30  ;;  %v2238_v6 = vmul.f32 %v2231_v24, %v2210_v0  ;;  %v2239_v45 = vmul.f32 %v2231_v24, %v2211_v22 }
 0x73c   :  { %2248 = vst [vmem:[#allocation11] sm:$0xff] %v2232_v42  ;;  %v2240_v19 = vmul.f32 %v2231_v24, %v2212_v35  ;;  %v2241_v5 = vmul.f32 %v2231_v24, %v2213_v59  ;;  %v2242_v2 = vmul.f32 %v2231_v24, %v2214_v55  ;;  %v2243_v25 = vmul.f32 %v2231_v24, %v2215_v31 }
 0x73d   :  { %2249 = vst [vmem:[#allocation11 + $0x8] sm:$0xff] %v2233_v13  ;;  %v2244_v49 = vmul.f32 %v2231_v24, %v2216_v62  ;;  %v2245_v40 = vmul.f32 %v2231_v24, %v2217_v56  ;;  %v2246_v46 = vmul.f32 %v2231_v24, %v2218_v54  ;;  %v2247_v29 = vmul.f32 %v2231_v24, %v2219_v11 }
 0x73e   :  { %2250 = vst [vmem:[#allocation11 + $0x10] sm:$0xff] %v2234_v61 }
 0x73f   :  { %2251 = vst [vmem:[#allocation11 + $0x18] sm:$0xff] %v2235_v60 }
 0x740   :  { %2252 = vst [vmem:[#allocation11 + $0x20] sm:$0xff] %v2236_v14 }
 0x741   :  { %2253 = vst [vmem:[#allocation11 + $0x28] sm:$0xff] %v2237_v10 }
 0x742   :  { %2254 = vst [vmem:[#allocation11 + $0x30] sm:$0xff] %v2238_v6 }
 0x743   :  { %2255 = vst [vmem:[#allocation11 + $0x38] sm:$0xff] %v2239_v45 }
 0x744   :  { %2256 = vst [vmem:[#allocation11 + $0x40] sm:$0xff] %v2240_v19 }
 0x745   :  { %2257 = vst [vmem:[#allocation11 + $0x48] sm:$0xff] %v2241_v5 }
 0x746   :  { %2258 = vst [vmem:[#allocation11 + $0x50] sm:$0xff] %v2242_v2 }
 0x747   :  { %2259 = vst [vmem:[#allocation11 + $0x58] sm:$0xff] %v2243_v25 }
 0x748   :  { %2260 = vst [vmem:[#allocation11 + $0x60] sm:$0xff] %v2244_v49 }
 0x749   :  { %2261 = vst [vmem:[#allocation11 + $0x68] sm:$0xff] %v2245_v40 }
 0x74a   :  { %2262 = vst [vmem:[#allocation11 + $0x70] sm:$0xff] %v2246_v46 }
 0x74b   :  { %2263 = vst [vmem:[#allocation11 + $0x78] sm:$0xff] %v2247_v29 }
 0x74c   :  { %2276 = dma.vmem_to_hbm [thread:$0]  %s2269_s3, 2048, %s2271_s13, [#allocation5], %s2455_s27, %s2455_s27, %s2456_s28  }
 0x74d   :  { %2449 = dma.done.wait [#allocation5], 2048  }
 0x74e   :  { %2450 = vsyncadd [#allocation5], 4294965248 }
 0x74f   :  { %2281 = vsyncpa [#allocation4], 1 }
 0x750   :  { %2282 = vsyncpa [#allocation7], 1 }
 0x751   :  { %2283 = vsyncpa [#allocation10], 1 }
 0x752   :  { %2284 = vsyncpa [#allocation5], 1 }

</bundles_post_ra>
